<compile_context>
chip_gen: v7x
topology: tpu7x:2x2x1
jax: 0.10.0
libtpu: 0.0.40
codegen_flags: <defaults>
</compile_context>

<pallas_src>
import jax
import jax.numpy as jnp
from jax.experimental import pallas as pl
from jax.experimental.pallas import tpu as pltpu

# ----------------------------- small synthetic config -----------------------------
BATCH = 2
IN_CH = 3
IMG = 32
PATCH = 8                      # patchify stride (stand-in for the CNN backbone)
BACKBONE_CH = 64               # backbone output channels (stand-in for ResNet C5)
HIDDEN = 32                    # transformer hidden dim
FFN = 64                       # feed-forward dim
NHEADS = 4
DHEAD = HIDDEN // NHEADS
NUM_QUERIES = 8                # small stand-in for num_queries=50
DETR_CLASSES = 92              # class_embed.out_features of detr_resnet50 (91 + 1)
NUM_CLASSES = 14               # DETRModel(num_classes=14) -> out: 92 -> 15
FEAT = IMG // PATCH
SEQ = FEAT * FEAT
PATCH_DIM = PATCH * PATCH * IN_CH
OUT_LANES = 128                # packed output slab width (lane-dense store)
ATTN_SCALE = 1.0 / float(DHEAD) ** 0.5

# rows of the fused bias / layernorm parameter table (each row padded to 128 lanes)
R_BB_B, R_PJ_B = 0, 1
R_ENC_BO, R_ENC_F1B, R_ENC_F2B = 2, 3, 4
R_DSA_BO, R_DCA_BO = 5, 6
R_DEC_F1B, R_DEC_F2B = 7, 8
R_CLS_B, R_BB1_B, R_BB2_B, R_BB3_B = 9, 10, 11, 12
R_ENC_N1, R_ENC_N2 = 13, 15          # gamma at r, beta at r + 1
R_DEC_N1, R_DEC_N2, R_DEC_N3, R_DEC_FIN = 17, 19, 21, 23

# attention slots inside the stacked per-head weight arrays
A_ENC_SA, A_DEC_SA, A_DEC_CA = 0, 1, 2


# ----------------------------------- fused Pallas kernel -----------------------------------
def _detr_kernel(x_ref, pos_ref, qry_ref, bbw_ref, pjw_ref,
                 awq_ref, awk_ref, awv_ref, awo_ref,
                 abq_ref, abk_ref, abv_ref,
                 f1w_ref, f2w_ref,
                 cls_ref, bb1_ref, bb2_ref, bb3_ref,
                 tbl_ref, out_ref):
    f32, bf16 = jnp.float32, jnp.bfloat16

    def brow(r, n):                       # (1, n) f32 bias / LN parameter row
        return tbl_ref[r:r + 1, 0:n]

    def mm(x, w_bf):                      # bf16 MXU matmul with f32 accumulation
        return jnp.dot(x.astype(bf16), w_bf, preferred_element_type=f32)

    def layernorm(x, r):
        g, b = brow(r, HIDDEN), brow(r + 1, HIDDEN)
        mean = jnp.mean(x, axis=-1, keepdims=True)
        cent = x - mean
        var = jnp.mean(cent * cent, axis=-1, keepdims=True)
        return cent * jax.lax.rsqrt(var + 1e-5) * g + b

    def mha(q_in, k_in, v_in, a_idx, bo_row):
        # heads via static leading-axis indexing of pre-split weights; O-projection
        # accumulated per head (equivalent to concat(heads) @ Wo).
        q_bf, k_bf, v_bf = (t.astype(bf16) for t in (q_in, k_in, v_in))
        acc = jnp.zeros((q_in.shape[0], HIDDEN), f32)
        for h in range(NHEADS):
            s = a_idx * NHEADS + h
            qh = jnp.dot(q_bf, awq_ref[s], preferred_element_type=f32) + abq_ref[s]
            kh = jnp.dot(k_bf, awk_ref[s], preferred_element_type=f32) + abk_ref[s]
            vh = jnp.dot(v_bf, awv_ref[s], preferred_element_type=f32) + abv_ref[s]
            logits = jax.lax.dot_general(                       # qh @ kh^T
                qh.astype(bf16), kh.astype(bf16),
                dimension_numbers=(((1,), (1,)), ((), ())),
                preferred_element_type=f32) * ATTN_SCALE
            logits = logits - jnp.max(logits, axis=-1, keepdims=True)
            p = jnp.exp(logits)
            p = p * pl.reciprocal(jnp.sum(p, axis=-1, keepdims=True), approx=True)
            ctx = jnp.dot(p.astype(bf16), vh.astype(bf16), preferred_element_type=f32)
            acc = acc + jnp.dot(ctx.astype(bf16), awo_ref[s], preferred_element_type=f32)
        return acc + brow(bo_row, HIDDEN)

    def ffn(x, li, b1_row, b2_row):
        h1 = jnp.maximum(mm(x, f1w_ref[li]) + brow(b1_row, FFN), 0.0)
        return mm(h1, f2w_ref[li]) + brow(b2_row, HIDDEN)

    x = x_ref[0]                          # (SEQ, PATCH_DIM) f32, this image's patches
    pos = pos_ref[...]                    # (SEQ, HIDDEN)
    qpos = qry_ref[...]                   # (NUM_QUERIES, HIDDEN)

    # "backbone" (patchify conv as matmul) + input_proj (1x1 conv as matmul)
    feat = jnp.maximum(mm(x, bbw_ref[...]) + brow(R_BB_B, BACKBONE_CH), 0.0)
    src = mm(feat, pjw_ref[...]) + brow(R_PJ_B, HIDDEN)

    # ---- transformer encoder layer (post-norm) ----
    qk = src + pos
    sa = mha(qk, qk, src, A_ENC_SA, R_ENC_BO)
    src = layernorm(src + sa, R_ENC_N1)
    memory = layernorm(src + ffn(src, 0, R_ENC_F1B, R_ENC_F2B), R_ENC_N2)

    # ---- transformer decoder layer (post-norm) ----
    tgt = jnp.zeros((NUM_QUERIES, HIDDEN), f32)
    qk = tgt + qpos
    sa = mha(qk, qk, tgt, A_DEC_SA, R_DSA_BO)
    tgt = layernorm(tgt + sa, R_DEC_N1)
    ca = mha(tgt + qpos, memory + pos, memory, A_DEC_CA, R_DCA_BO)
    tgt = layernorm(tgt + ca, R_DEC_N2)
    tgt = layernorm(tgt + ffn(tgt, 1, R_DEC_F1B, R_DEC_F2B), R_DEC_N3)
    hs = layernorm(tgt, R_DEC_FIN)

    # ---- heads: fused (class_embed ∘ out) + 3-layer bbox MLP ----
    logits = mm(hs, cls_ref[...]) + brow(R_CLS_B, NUM_CLASSES + 1)      # (Q, 15)
    bb = jnp.maximum(mm(hs, bb1_ref[...]) + brow(R_BB1_B, HIDDEN), 0.0)
    bb = jnp.maximum(mm(bb, bb2_ref[...]) + brow(R_BB2_B, HIDDEN), 0.0)
    bb = mm(bb, bb3_ref[...]) + brow(R_BB3_B, 4)
    boxes = 1.0 / (1.0 + jnp.exp(-bb))    # exact sigmoid -> guaranteed in [0, 1]

    # single lane-dense (Q, 128) store: [logits | boxes | zero padding]
    zpad = jnp.zeros((NUM_QUERIES, OUT_LANES - (NUM_CLASSES + 1) - 4), f32)
    out_ref[0] = jnp.concatenate([logits, boxes, zpad], axis=-1)


# ----------------------------------- wrapper -----------------------------------
def _bcast_spec(a):
    zeros = (0,) * a.ndim
    return pl.BlockSpec(a.shape, lambda b, _z=zeros: _z)


def detr_forward(images, pk):
    """images: (B, C, H, W) NCHW; pk: packed params from pack_params()."""
    B, C, H, W = images.shape
    # patchify front-end: NCHW -> (B, SEQ, PATCH*PATCH*C).
    # TODO(synk): ~24 KiB of XLA glue; could be folded into the kernel via an
    # Element/strided index_map if the image ever gets large.
    x = images.transpose(0, 2, 3, 1)
    x = x.reshape(B, H // PATCH, PATCH, W // PATCH, PATCH, C)
    x = x.transpose(0, 1, 3, 2, 4, 5).reshape(B, SEQ, PATCH_DIM)

    operands = (x, pk["pos"], pk["qry"], pk["bb_w"], pk["pj_w"],
                pk["awq"], pk["awk"], pk["awv"], pk["awo"],
                pk["abq"], pk["abk"], pk["abv"],
                pk["f1w"], pk["f2w"],
                pk["cls_w"], pk["bb1_w"], pk["bb2_w"], pk["bb3_w"],
                pk["tbl"])
    in_specs = [pl.BlockSpec((1, SEQ, PATCH_DIM), lambda b: (b, 0, 0))]
    in_specs += [_bcast_spec(a) for a in operands[1:]]

    slab = pl.pallas_call(
        _detr_kernel,
        out_shape=jax.ShapeDtypeStruct((B, NUM_QUERIES, OUT_LANES), jnp.float32),
        grid=(B,),
        in_specs=in_specs,
        out_specs=pl.BlockSpec((1, NUM_QUERIES, OUT_LANES), lambda b: (b, 0, 0)),
        compiler_params=pltpu.CompilerParams(dimension_semantics=("parallel",)),
    )(*operands)

    return {"pred_logits": slab[:, :, :NUM_CLASSES + 1],
            "pred_boxes": slab[:, :, NUM_CLASSES + 1:NUM_CLASSES + 5]}


# ----------------------------------- parameter setup -----------------------------------
def _init_linear(key, fan_in, fan_out):
    kw, kb = jax.random.split(key)
    w = jax.random.normal(kw, (fan_in, fan_out), jnp.float32) / jnp.sqrt(float(fan_in))
    b = jax.random.normal(kb, (fan_out,), jnp.float32) * 0.01
    return w, b


def _init_mha(key, d):
    ks = jax.random.split(key, 4)
    p = {}
    for name, k in zip(("q", "k", "v", "o"), ks):
        w, b = _init_linear(k, d, d)
        p["w" + name], p["b" + name] = w, b
    return p


def sine_pos_embed(h, w, d):
    # simplified DETR PositionEmbeddingSine (half dims for y, half for x)
    half = d // 2
    ys = jnp.arange(h, dtype=jnp.float32) + 1.0
    xs = jnp.arange(w, dtype=jnp.float32) + 1.0
    dim_t = jnp.arange(half, dtype=jnp.float32)
    dim_t = 10000.0 ** (2.0 * jnp.floor(dim_t / 2.0) / half)
    px = xs[None, :, None] / dim_t
    py = ys[:, None, None] / dim_t
    px = jnp.concatenate([jnp.sin(px[..., 0::2]), jnp.cos(px[..., 1::2])], axis=-1)
    py = jnp.concatenate([jnp.sin(py[..., 0::2]), jnp.cos(py[..., 1::2])], axis=-1)
    px = jnp.broadcast_to(px, (h, w, half))
    py = jnp.broadcast_to(py, (h, w, half))
    return jnp.concatenate([py, px], axis=-1).reshape(h * w, d)


def make_params(seed=0):
    key = jax.random.PRNGKey(seed)
    ks = jax.random.split(key, 24)
    p = {}
    p["backbone_w"], p["backbone_b"] = _init_linear(ks[0], PATCH_DIM, BACKBONE_CH)
    p["proj_w"], p["proj_b"] = _init_linear(ks[1], BACKBONE_CH, HIDDEN)
    p["enc_sa"] = _init_mha(ks[2], HIDDEN)
    p["enc_ff1_w"], p["enc_ff1_b"] = _init_linear(ks[3], HIDDEN, FFN)
    p["enc_ff2_w"], p["enc_ff2_b"] = _init_linear(ks[4], FFN, HIDDEN)
    p["enc_n1_g"] = jnp.ones((HIDDEN,), jnp.float32); p["enc_n1_b"] = jnp.zeros((HIDDEN,), jnp.float32)
    p["enc_n2_g"] = jnp.ones((HIDDEN,), jnp.float32); p["enc_n2_b"] = jnp.zeros((HIDDEN,), jnp.float32)
    p["dec_sa"] = _init_mha(ks[5], HIDDEN)
    p["dec_ca"] = _init_mha(ks[6], HIDDEN)
    p["dec_ff1_w"], p["dec_ff1_b"] = _init_linear(ks[7], HIDDEN, FFN)
    p["dec_ff2_w"], p["dec_ff2_b"] = _init_linear(ks[8], FFN, HIDDEN)
    for n in ("dec_n1", "dec_n2", "dec_n3", "dec_final"):
        p[n + "_g"] = jnp.ones((HIDDEN,), jnp.float32)
        p[n + "_b"] = jnp.zeros((HIDDEN,), jnp.float32)
    p["query_embed"] = jax.random.normal(ks[9], (NUM_QUERIES, HIDDEN), jnp.float32) * 0.02
    p["pos_embed"] = sine_pos_embed(FEAT, FEAT, HIDDEN)
    p["cls_w"], p["cls_b"] = _init_linear(ks[10], HIDDEN, DETR_CLASSES)
    p["bb1_w"], p["bb1_b"] = _init_linear(ks[11], HIDDEN, HIDDEN)
    p["bb2_w"], p["bb2_b"] = _init_linear(ks[12], HIDDEN, HIDDEN)
    p["bb3_w"], p["bb3_b"] = _init_linear(ks[13], HIDDEN, 4)
    p["out_w"], p["out_b"] = _init_linear(ks[14], DETR_CLASSES, NUM_CLASSES + 1)
    return p


def pack_params(p):
    """Re-pack raw params into kernel-friendly arrays (bf16 weights, bias table, per-head slabs)."""
    f32, bf16 = jnp.float32, jnp.bfloat16

    def heads_in(w):   # (D_in, H*Dh) -> (H, D_in, Dh)
        return jnp.transpose(w.reshape(w.shape[0], NHEADS, DHEAD), (1, 0, 2))

    def heads_out(w):  # (H*Dh, D_out) -> (H, Dh, D_out)
        return w.reshape(NHEADS, DHEAD, w.shape[1])

    def heads_b(b):    # (H*Dh,) -> (H, 1, Dh)
        return b.reshape(NHEADS, 1, DHEAD)

    attns = [p["enc_sa"], p["dec_sa"], p["dec_ca"]]        # order = A_ENC_SA, A_DEC_SA, A_DEC_CA
    awq = jnp.concatenate([heads_in(a["wq"]) for a in attns], 0).astype(bf16)
    awk = jnp.concatenate([heads_in(a["wk"]) for a in attns], 0).astype(bf16)
    awv = jnp.concatenate([heads_in(a["wv"]) for a in attns], 0).astype(bf16)
    awo = jnp.concatenate([heads_out(a["wo"]) for a in attns], 0).astype(bf16)
    abq = jnp.concatenate([heads_b(a["bq"]) for a in attns], 0).astype(f32)
    abk = jnp.concatenate([heads_b(a["bk"]) for a in attns], 0).astype(f32)
    abv = jnp.concatenate([heads_b(a["bv"]) for a in attns], 0).astype(f32)

    f1w = jnp.stack([p["enc_ff1_w"], p["dec_ff1_w"]]).astype(bf16)   # (2, HIDDEN, FFN)
    f2w = jnp.stack([p["enc_ff2_w"], p["dec_ff2_w"]]).astype(bf16)   # (2, FFN, HIDDEN)

    # fold class_embed (32->92) and the extra `out` head (92->15) into one affine map
    cls_out_w = (p["cls_w"] @ p["out_w"]).astype(bf16)               # (HIDDEN, 15)
    cls_out_b = p["cls_b"] @ p["out_w"] + p["out_b"]                 # (15,)

    def row(v):
        v = jnp.asarray(v, f32).reshape(-1)
        return jnp.pad(v, (0, 128 - v.shape[0]))

    rows = [
        row(p["backbone_b"]),                                # 0
        row(p["proj_b"]),                                    # 1
        row(p["enc_sa"]["bo"]),                              # 2
        row(p["enc_ff1_b"]), row(p["enc_ff2_b"]),            # 3, 4
        row(p["dec_sa"]["bo"]), row(p["dec_ca"]["bo"]),      # 5, 6
        row(p["dec_ff1_b"]), row(p["dec_ff2_b"]),            # 7, 8
        row(cls_out_b),                                      # 9
        row(p["bb1_b"]), row(p["bb2_b"]), row(p["bb3_b"]),   # 10, 11, 12
        row(p["enc_n1_g"]), row(p["enc_n1_b"]),              # 13, 14
        row(p["enc_n2_g"]), row(p["enc_n2_b"]),              # 15, 16
        row(p["dec_n1_g"]), row(p["dec_n1_b"]),              # 17, 18
        row(p["dec_n2_g"]), row(p["dec_n2_b"]),              # 19, 20
        row(p["dec_n3_g"]), row(p["dec_n3_b"]),              # 21, 22
        row(p["dec_final_g"]), row(p["dec_final_b"]),        # 23, 24
    ]
    while len(rows) % 8 != 0:
        rows.append(jnp.zeros((128,), f32))
    tbl = jnp.stack(rows)                                    # (32, 128) f32

    return {
        "pos": p["pos_embed"].astype(f32),
        "qry": p["query_embed"].astype(f32),
        "bb_w": p["backbone_w"].astype(bf16),
        "pj_w": p["proj_w"].astype(bf16),
        "awq": awq, "awk": awk, "awv": awv, "awo": awo,
        "abq": abq, "abk": abk, "abv": abv,
        "f1w": f1w, "f2w": f2w,
        "cls_w": cls_out_w,
        "bb1_w": p["bb1_w"].astype(bf16),
        "bb2_w": p["bb2_w"].astype(bf16),
        "bb3_w": p["bb3_w"].astype(bf16),
        "tbl": tbl,
    }


# ----------------------------------- pure-JAX f32 reference (for verification) -----------------------------------
def _ref_linear(x, w, b, act="none"):
    y = x @ w + b
    if act == "relu":
        y = jnp.maximum(y, 0.0)
    elif act == "sigmoid":
        y = jax.nn.sigmoid(y)
    return y


def _ref_ln(x, g, b):
    m = jnp.mean(x, -1, keepdims=True)
    c = x - m
    v = jnp.mean(c * c, -1, keepdims=True)
    return c * jax.lax.rsqrt(v + 1e-5) * g + b


def _ref_mha(q_in, k_in, v_in, mp):
    q = q_in @ mp["wq"] + mp["bq"]
    k = k_in @ mp["wk"] + mp["bk"]
    v = v_in @ mp["wv"] + mp["bv"]
    B, Sq, D = q.shape
    Sk = k.shape[1]
    qh = q.reshape(B, Sq, NHEADS, DHEAD).transpose(0, 2, 1, 3)
    kh = k.reshape(B, Sk, NHEADS, DHEAD).transpose(0, 2, 1, 3)
    vh = v.reshape(B, Sk, NHEADS, DHEAD).transpose(0, 2, 1, 3)
    s = jnp.einsum("bhqd,bhkd->bhqk", qh, kh) * ATTN_SCALE
    p_ = jax.nn.softmax(s, axis=-1)
    o = jnp.einsum("bhqk,bhkd->bhqd", p_, vh).transpose(0, 2, 1, 3).reshape(B, Sq, D)
    return o @ mp["wo"] + mp["bo"]


def _reference_forward(images, p):
    B, C, H, W = images.shape
    x = images.transpose(0, 2, 3, 1)
    x = x.reshape(B, H // PATCH, PATCH, W // PATCH, PATCH, C)
    x = x.transpose(0, 1, 3, 2, 4, 5).reshape(B, SEQ, PATCH_DIM)
    feat = _ref_linear(x, p["backbone_w"], p["backbone_b"], "relu")
    src = _ref_linear(feat, p["proj_w"], p["proj_b"])
    pos = p["pos_embed"][None]
    qk = src + pos
    sa = _ref_mha(qk, qk, src, p["enc_sa"])
    src = _ref_ln(src + sa, p["enc_n1_g"], p["enc_n1_b"])
    ff = _ref_linear(_ref_linear(src, p["enc_ff1_w"], p["enc_ff1_b"], "relu"),
                     p["enc_ff2_w"], p["enc_ff2_b"])
    memory = _ref_ln(src + ff, p["enc_n2_g"], p["enc_n2_b"])
    qpos = p["query_embed"][None]
    tgt = jnp.zeros((B, NUM_QUERIES, HIDDEN), jnp.float32)
    qk = tgt + qpos
    sa = _ref_mha(qk, qk, tgt, p["dec_sa"])
    tgt = _ref_ln(tgt + sa, p["dec_n1_g"], p["dec_n1_b"])
    ca = _ref_mha(tgt + qpos, memory + pos, memory, p["dec_ca"])
    tgt = _ref_ln(tgt + ca, p["dec_n2_g"], p["dec_n2_b"])
    ff = _ref_linear(_ref_linear(tgt, p["dec_ff1_w"], p["dec_ff1_b"], "relu"),
                     p["dec_ff2_w"], p["dec_ff2_b"])
    tgt = _ref_ln(tgt + ff, p["dec_n3_g"], p["dec_n3_b"])
    hs = _ref_ln(tgt, p["dec_final_g"], p["dec_final_b"])
    logits = _ref_linear(hs, p["cls_w"], p["cls_b"])
    bb = _ref_linear(hs, p["bb1_w"], p["bb1_b"], "relu")
    bb = _ref_linear(bb, p["bb2_w"], p["bb2_b"], "relu")
    boxes = _ref_linear(bb, p["bb3_w"], p["bb3_b"], "sigmoid")
    logits = _ref_linear(logits, p["out_w"], p["out_b"])
    return {"pred_logits": logits, "pred_boxes": boxes}


# ----------------------------------- main -----------------------------------
if __name__ == "__main__":
    key = jax.random.PRNGKey(0)
    images = jax.random.normal(key, (BATCH, IN_CH, IMG, IMG), jnp.float32)
    params = make_params(seed=0)
    packed = pack_params(params)

    fwd = jax.jit(detr_forward)
    out = fwd(images, packed)
    jax.block_until_ready(out)

    assert out["pred_logits"].shape == (BATCH, NUM_QUERIES, NUM_CLASSES + 1)
    assert out["pred_boxes"].shape == (BATCH, NUM_QUERIES, 4)
    assert bool(jnp.all(jnp.isfinite(out["pred_logits"])))
    assert bool(jnp.all((out["pred_boxes"] >= 0.0) & (out["pred_boxes"] <= 1.0)))

    # sanity-check the fused bf16 kernel against an unfused pure-JAX f32 reference
    # (generous tolerance: only bf16-MXU / approx-reciprocal drift is expected).
    ref = jax.jit(_reference_forward)(images, params)
    d_log = float(jnp.max(jnp.abs(out["pred_logits"] - ref["pred_logits"])))
    d_box = float(jnp.max(jnp.abs(out["pred_boxes"] - ref["pred_boxes"])))
    assert d_log < 0.5 and d_box < 0.2, (d_log, d_box)

    print("KERNEL_OK")
</pallas_src>

<mosaic_0001>
module attributes {stable_mosaic.version = 11 : i64} {
  func.func @_detr_kernel(%arg0: i32, %arg1: memref<1x16x192xf32, #tpu.memory_space<vmem>>, %arg2: memref<16x32xf32, #tpu.memory_space<vmem>>, %arg3: memref<8x32xf32, #tpu.memory_space<vmem>>, %arg4: memref<192x64xbf16, #tpu.memory_space<vmem>>, %arg5: memref<64x32xbf16, #tpu.memory_space<vmem>>, %arg6: memref<12x32x8xbf16, #tpu.memory_space<vmem>>, %arg7: memref<12x32x8xbf16, #tpu.memory_space<vmem>>, %arg8: memref<12x32x8xbf16, #tpu.memory_space<vmem>>, %arg9: memref<12x8x32xbf16, #tpu.memory_space<vmem>>, %arg10: memref<12x1x8xf32, #tpu.memory_space<vmem>>, %arg11: memref<12x1x8xf32, #tpu.memory_space<vmem>>, %arg12: memref<12x1x8xf32, #tpu.memory_space<vmem>>, %arg13: memref<2x32x64xbf16, #tpu.memory_space<vmem>>, %arg14: memref<2x64x32xbf16, #tpu.memory_space<vmem>>, %arg15: memref<32x15xbf16, #tpu.memory_space<vmem>>, %arg16: memref<32x32xbf16, #tpu.memory_space<vmem>>, %arg17: memref<32x32xbf16, #tpu.memory_space<vmem>>, %arg18: memref<32x4xbf16, #tpu.memory_space<vmem>>, %arg19: memref<32x128xf32, #tpu.memory_space<vmem>>, %arg20: memref<1x8x128xf32, #tpu.memory_space<vmem>>) attributes {dimension_semantics = [#tpu.dimension_semantics<parallel>], iteration_bounds = array<i64: 2>, scalar_prefetch = 0 : i64, scratch_operands = 0 : i64, tpu.core_type = #tpu.core_type<tc>, window_params = [{transform_indices = @transform_0, window_bounds = array<i64: 1, 16, 192>}, {pipeline_mode = #tpu.pipeline_mode<synchronous>, transform_indices = @transform_1, window_bounds = array<i64: 16, 32>}, {pipeline_mode = #tpu.pipeline_mode<synchronous>, transform_indices = @transform_2, window_bounds = array<i64: 8, 32>}, {pipeline_mode = #tpu.pipeline_mode<synchronous>, transform_indices = @transform_3, window_bounds = array<i64: 192, 64>}, {pipeline_mode = #tpu.pipeline_mode<synchronous>, transform_indices = @transform_4, window_bounds = array<i64: 64, 32>}, {pipeline_mode = #tpu.pipeline_mode<synchronous>, transform_indices = @transform_5, window_bounds = array<i64: 12, 32, 8>}, {pipeline_mode = #tpu.pipeline_mode<synchronous>, transform_indices = @transform_6, window_bounds = array<i64: 12, 32, 8>}, {pipeline_mode = #tpu.pipeline_mode<synchronous>, transform_indices = @transform_7, window_bounds = array<i64: 12, 32, 8>}, {pipeline_mode = #tpu.pipeline_mode<synchronous>, transform_indices = @transform_8, window_bounds = array<i64: 12, 8, 32>}, {pipeline_mode = #tpu.pipeline_mode<synchronous>, transform_indices = @transform_9, window_bounds = array<i64: 12, 1, 8>}, {pipeline_mode = #tpu.pipeline_mode<synchronous>, transform_indices = @transform_10, window_bounds = array<i64: 12, 1, 8>}, {pipeline_mode = #tpu.pipeline_mode<synchronous>, transform_indices = @transform_11, window_bounds = array<i64: 12, 1, 8>}, {pipeline_mode = #tpu.pipeline_mode<synchronous>, transform_indices = @transform_12, window_bounds = array<i64: 2, 32, 64>}, {pipeline_mode = #tpu.pipeline_mode<synchronous>, transform_indices = @transform_13, window_bounds = array<i64: 2, 64, 32>}, {pipeline_mode = #tpu.pipeline_mode<synchronous>, transform_indices = @transform_14, window_bounds = array<i64: 32, 15>}, {pipeline_mode = #tpu.pipeline_mode<synchronous>, transform_indices = @transform_15, window_bounds = array<i64: 32, 32>}, {pipeline_mode = #tpu.pipeline_mode<synchronous>, transform_indices = @transform_16, window_bounds = array<i64: 32, 32>}, {pipeline_mode = #tpu.pipeline_mode<synchronous>, transform_indices = @transform_17, window_bounds = array<i64: 32, 4>}, {pipeline_mode = #tpu.pipeline_mode<synchronous>, transform_indices = @transform_18, window_bounds = array<i64: 32, 128>}, {transform_indices = @transform_19, window_bounds = array<i64: 1, 8, 128>}]} {
    %c0 = arith.constant 0 : index
    %c0_0 = arith.constant 0 : index
    %c0_1 = arith.constant 0 : index
    %0 = vector.load %arg1[%c0, %c0_0, %c0_1] : memref<1x16x192xf32, #tpu.memory_space<vmem>>, vector<1x16x192xf32>
    %1 = vector.shape_cast %0 : vector<1x16x192xf32> to vector<16x192xf32>
    %c0_2 = arith.constant 0 : index
    %c0_3 = arith.constant 0 : index
    %2 = vector.load %arg2[%c0_2, %c0_3] : memref<16x32xf32, #tpu.memory_space<vmem>>, vector<16x32xf32>
    %c0_4 = arith.constant 0 : index
    %c0_5 = arith.constant 0 : index
    %3 = vector.load %arg3[%c0_4, %c0_5] : memref<8x32xf32, #tpu.memory_space<vmem>>, vector<8x32xf32>
    %c0_6 = arith.constant 0 : index
    %c0_7 = arith.constant 0 : index
    %4 = vector.load %arg4[%c0_6, %c0_7] : memref<192x64xbf16, #tpu.memory_space<vmem>>, vector<192x64xbf16>
    %5 = arith.truncf %1 : vector<16x192xf32> to vector<16x192xbf16>
    %cst = arith.constant dense<0.000000e+00> : vector<16x64xf32>
    %6 = tpu.matmul %5, %4, %cst {dimension_numbers = #tpu.dot_dimension_numbers<[1], [0], [0], [1], [0, 0, 1, 1], [], []>} : vector<16x192xbf16>, vector<192x64xbf16>, vector<16x64xf32> -> vector<16x64xf32>
    %c0_8 = arith.constant 0 : index
    %c0_9 = arith.constant 0 : index
    %7 = vector.load %arg19[%c0_8, %c0_9] : memref<32x128xf32, #tpu.memory_space<vmem>>, vector<1x64xf32>
    %8 = vector.broadcast %7 : vector<1x64xf32> to vector<16x64xf32>
    %9 = arith.addf %6, %8 : vector<16x64xf32>
    %cst_10 = arith.constant 0.000000e+00 : f32
    %10 = vector.broadcast %cst_10 : f32 to vector<16x64xf32>
    %11 = arith.maximumf %9, %10 : vector<16x64xf32>
    %c0_11 = arith.constant 0 : index
    %c0_12 = arith.constant 0 : index
    %12 = vector.load %arg5[%c0_11, %c0_12] : memref<64x32xbf16, #tpu.memory_space<vmem>>, vector<64x32xbf16>
    %13 = arith.truncf %11 : vector<16x64xf32> to vector<16x64xbf16>
    %cst_13 = arith.constant dense<0.000000e+00> : vector<16x32xf32>
    %14 = tpu.matmul %13, %12, %cst_13 {dimension_numbers = #tpu.dot_dimension_numbers<[1], [0], [0], [1], [0, 0, 1, 1], [], []>} : vector<16x64xbf16>, vector<64x32xbf16>, vector<16x32xf32> -> vector<16x32xf32>
    %c1 = arith.constant 1 : index
    %c0_14 = arith.constant 0 : index
    %15 = vector.load %arg19[%c1, %c0_14] : memref<32x128xf32, #tpu.memory_space<vmem>>, vector<1x32xf32>
    %16 = vector.broadcast %15 : vector<1x32xf32> to vector<16x32xf32>
    %17 = arith.addf %14, %16 : vector<16x32xf32>
    %18 = arith.addf %17, %2 : vector<16x32xf32>
    %19 = arith.truncf %18 : vector<16x32xf32> to vector<16x32xbf16>
    %20 = arith.truncf %18 : vector<16x32xf32> to vector<16x32xbf16>
    %21 = arith.truncf %17 : vector<16x32xf32> to vector<16x32xbf16>
    %cst_15 = arith.constant 0.000000e+00 : f32
    %22 = vector.broadcast %cst_15 : f32 to vector<16x32xf32>
    %c0_16 = arith.constant 0 : index
    %c0_17 = arith.constant 0 : index
    %c0_18 = arith.constant 0 : index
    %23 = vector.load %arg6[%c0_16, %c0_17, %c0_18] : memref<12x32x8xbf16, #tpu.memory_space<vmem>>, vector<1x32x8xbf16>
    %24 = vector.shape_cast %23 : vector<1x32x8xbf16> to vector<32x8xbf16>
    %cst_19 = arith.constant dense<0.000000e+00> : vector<16x8xf32>
    %25 = tpu.matmul %19, %24, %cst_19 {dimension_numbers = #tpu.dot_dimension_numbers<[1], [0], [0], [1], [0, 0, 1, 1], [], []>} : vector<16x32xbf16>, vector<32x8xbf16>, vector<16x8xf32> -> vector<16x8xf32>
    %c0_20 = arith.constant 0 : index
    %c0_21 = arith.constant 0 : index
    %c0_22 = arith.constant 0 : index
    %26 = vector.load %arg10[%c0_20, %c0_21, %c0_22] : memref<12x1x8xf32, #tpu.memory_space<vmem>>, vector<1x1x8xf32>
    %27 = vector.shape_cast %26 : vector<1x1x8xf32> to vector<1x8xf32>
    %28 = vector.broadcast %27 : vector<1x8xf32> to vector<16x8xf32>
    %29 = arith.addf %25, %28 : vector<16x8xf32>
    %c0_23 = arith.constant 0 : index
    %c0_24 = arith.constant 0 : index
    %c0_25 = arith.constant 0 : index
    %30 = vector.load %arg7[%c0_23, %c0_24, %c0_25] : memref<12x32x8xbf16, #tpu.memory_space<vmem>>, vector<1x32x8xbf16>
    %31 = vector.shape_cast %30 : vector<1x32x8xbf16> to vector<32x8xbf16>
    %cst_26 = arith.constant dense<0.000000e+00> : vector<16x8xf32>
    %32 = tpu.matmul %20, %31, %cst_26 {dimension_numbers = #tpu.dot_dimension_numbers<[1], [0], [0], [1], [0, 0, 1, 1], [], []>} : vector<16x32xbf16>, vector<32x8xbf16>, vector<16x8xf32> -> vector<16x8xf32>
    %c0_27 = arith.constant 0 : index
    %c0_28 = arith.constant 0 : index
    %c0_29 = arith.constant 0 : index
    %33 = vector.load %arg11[%c0_27, %c0_28, %c0_29] : memref<12x1x8xf32, #tpu.memory_space<vmem>>, vector<1x1x8xf32>
    %34 = vector.shape_cast %33 : vector<1x1x8xf32> to vector<1x8xf32>
    %35 = vector.broadcast %34 : vector<1x8xf32> to vector<16x8xf32>
    %36 = arith.addf %32, %35 : vector<16x8xf32>
    %c0_30 = arith.constant 0 : index
    %c0_31 = arith.constant 0 : index
    %c0_32 = arith.constant 0 : index
    %37 = vector.load %arg8[%c0_30, %c0_31, %c0_32] : memref<12x32x8xbf16, #tpu.memory_space<vmem>>, vector<1x32x8xbf16>
    %38 = vector.shape_cast %37 : vector<1x32x8xbf16> to vector<32x8xbf16>
    %cst_33 = arith.constant dense<0.000000e+00> : vector<16x8xf32>
    %39 = tpu.matmul %21, %38, %cst_33 {dimension_numbers = #tpu.dot_dimension_numbers<[1], [0], [0], [1], [0, 0, 1, 1], [], []>} : vector<16x32xbf16>, vector<32x8xbf16>, vector<16x8xf32> -> vector<16x8xf32>
    %c0_34 = arith.constant 0 : index
    %c0_35 = arith.constant 0 : index
    %c0_36 = arith.constant 0 : index
    %40 = vector.load %arg12[%c0_34, %c0_35, %c0_36] : memref<12x1x8xf32, #tpu.memory_space<vmem>>, vector<1x1x8xf32>
    %41 = vector.shape_cast %40 : vector<1x1x8xf32> to vector<1x8xf32>
    %42 = vector.broadcast %41 : vector<1x8xf32> to vector<16x8xf32>
    %43 = arith.addf %39, %42 : vector<16x8xf32>
    %44 = arith.truncf %29 : vector<16x8xf32> to vector<16x8xbf16>
    %45 = arith.truncf %36 : vector<16x8xf32> to vector<16x8xbf16>
    %cst_37 = arith.constant dense<0.000000e+00> : vector<16x16xf32>
    %46 = tpu.matmul %44, %45, %cst_37 {dimension_numbers = #tpu.dot_dimension_numbers<[1], [1], [0], [0], [0, 0, 1, 0], [], []>} : vector<16x8xbf16>, vector<16x8xbf16>, vector<16x16xf32> -> vector<16x16xf32>
    %cst_38 = arith.constant 0.353553385 : f32
    %47 = vector.broadcast %cst_38 : f32 to vector<16x16xf32>
    %48 = arith.mulf %46, %47 : vector<16x16xf32>
    %cst_39 = arith.constant dense<0xFF800000> : vector<16xf32>
    %49 = vector.multi_reduction <maximumf>, %48, %cst_39 [1] : vector<16x16xf32> to vector<16xf32>
    %50 = vector.shape_cast %49 : vector<16xf32> to vector<16x1xf32>
    %51 = vector.broadcast %50 : vector<16x1xf32> to vector<16x16xf32>
    %52 = arith.subf %48, %51 : vector<16x16xf32>
    %53 = math.exp %52 : vector<16x16xf32>
    %cst_40 = arith.constant dense<0.000000e+00> : vector<16xf32>
    %54 = vector.multi_reduction <add>, %53, %cst_40 [1] : vector<16x16xf32> to vector<16xf32>
    %55 = vector.shape_cast %54 : vector<16xf32> to vector<16x1xf32>
    %56 = tpu.reciprocal %55 {approx = true} : vector<16x1xf32> -> vector<16x1xf32>
    %57 = vector.broadcast %56 : vector<16x1xf32> to vector<16x16xf32>
    %58 = arith.mulf %53, %57 : vector<16x16xf32>
    %59 = arith.truncf %58 : vector<16x16xf32> to vector<16x16xbf16>
    %60 = arith.truncf %43 : vector<16x8xf32> to vector<16x8xbf16>
    %cst_41 = arith.constant dense<0.000000e+00> : vector<16x8xf32>
    %61 = tpu.matmul %59, %60, %cst_41 {dimension_numbers = #tpu.dot_dimension_numbers<[1], [0], [0], [1], [0, 0, 1, 1], [], []>} : vector<16x16xbf16>, vector<16x8xbf16>, vector<16x8xf32> -> vector<16x8xf32>
    %62 = arith.truncf %61 : vector<16x8xf32> to vector<16x8xbf16>
    %c0_42 = arith.constant 0 : index
    %c0_43 = arith.constant 0 : index
    %c0_44 = arith.constant 0 : index
    %63 = vector.load %arg9[%c0_42, %c0_43, %c0_44] : memref<12x8x32xbf16, #tpu.memory_space<vmem>>, vector<1x8x32xbf16>
    %64 = vector.shape_cast %63 : vector<1x8x32xbf16> to vector<8x32xbf16>
    %cst_45 = arith.constant dense<0.000000e+00> : vector<16x32xf32>
    %65 = tpu.matmul %62, %64, %cst_45 {dimension_numbers = #tpu.dot_dimension_numbers<[1], [0], [0], [1], [0, 0, 1, 1], [], []>} : vector<16x8xbf16>, vector<8x32xbf16>, vector<16x32xf32> -> vector<16x32xf32>
    %66 = arith.addf %22, %65 : vector<16x32xf32>
    %c1_46 = arith.constant 1 : index
    %c0_47 = arith.constant 0 : index
    %c0_48 = arith.constant 0 : index
    %67 = vector.load %arg6[%c1_46, %c0_47, %c0_48] : memref<12x32x8xbf16, #tpu.memory_space<vmem>>, vector<1x32x8xbf16>
    %68 = vector.shape_cast %67 : vector<1x32x8xbf16> to vector<32x8xbf16>
    %cst_49 = arith.constant dense<0.000000e+00> : vector<16x8xf32>
    %69 = tpu.matmul %19, %68, %cst_49 {dimension_numbers = #tpu.dot_dimension_numbers<[1], [0], [0], [1], [0, 0, 1, 1], [], []>} : vector<16x32xbf16>, vector<32x8xbf16>, vector<16x8xf32> -> vector<16x8xf32>
    %c1_50 = arith.constant 1 : index
    %c0_51 = arith.constant 0 : index
    %c0_52 = arith.constant 0 : index
    %70 = vector.load %arg10[%c1_50, %c0_51, %c0_52] : memref<12x1x8xf32, #tpu.memory_space<vmem>>, vector<1x1x8xf32>
    %71 = vector.shape_cast %70 : vector<1x1x8xf32> to vector<1x8xf32>
    %72 = vector.broadcast %71 : vector<1x8xf32> to vector<16x8xf32>
    %73 = arith.addf %69, %72 : vector<16x8xf32>
    %c1_53 = arith.constant 1 : index
    %c0_54 = arith.constant 0 : index
    %c0_55 = arith.constant 0 : index
    %74 = vector.load %arg7[%c1_53, %c0_54, %c0_55] : memref<12x32x8xbf16, #tpu.memory_space<vmem>>, vector<1x32x8xbf16>
    %75 = vector.shape_cast %74 : vector<1x32x8xbf16> to vector<32x8xbf16>
    %cst_56 = arith.constant dense<0.000000e+00> : vector<16x8xf32>
    %76 = tpu.matmul %20, %75, %cst_56 {dimension_numbers = #tpu.dot_dimension_numbers<[1], [0], [0], [1], [0, 0, 1, 1], [], []>} : vector<16x32xbf16>, vector<32x8xbf16>, vector<16x8xf32> -> vector<16x8xf32>
    %c1_57 = arith.constant 1 : index
    %c0_58 = arith.constant 0 : index
    %c0_59 = arith.constant 0 : index
    %77 = vector.load %arg11[%c1_57, %c0_58, %c0_59] : memref<12x1x8xf32, #tpu.memory_space<vmem>>, vector<1x1x8xf32>
    %78 = vector.shape_cast %77 : vector<1x1x8xf32> to vector<1x8xf32>
    %79 = vector.broadcast %78 : vector<1x8xf32> to vector<16x8xf32>
    %80 = arith.addf %76, %79 : vector<16x8xf32>
    %c1_60 = arith.constant 1 : index
    %c0_61 = arith.constant 0 : index
    %c0_62 = arith.constant 0 : index
    %81 = vector.load %arg8[%c1_60, %c0_61, %c0_62] : memref<12x32x8xbf16, #tpu.memory_space<vmem>>, vector<1x32x8xbf16>
    %82 = vector.shape_cast %81 : vector<1x32x8xbf16> to vector<32x8xbf16>
    %cst_63 = arith.constant dense<0.000000e+00> : vector<16x8xf32>
    %83 = tpu.matmul %21, %82, %cst_63 {dimension_numbers = #tpu.dot_dimension_numbers<[1], [0], [0], [1], [0, 0, 1, 1], [], []>} : vector<16x32xbf16>, vector<32x8xbf16>, vector<16x8xf32> -> vector<16x8xf32>
    %c1_64 = arith.constant 1 : index
    %c0_65 = arith.constant 0 : index
    %c0_66 = arith.constant 0 : index
    %84 = vector.load %arg12[%c1_64, %c0_65, %c0_66] : memref<12x1x8xf32, #tpu.memory_space<vmem>>, vector<1x1x8xf32>
    %85 = vector.shape_cast %84 : vector<1x1x8xf32> to vector<1x8xf32>
    %86 = vector.broadcast %85 : vector<1x8xf32> to vector<16x8xf32>
    %87 = arith.addf %83, %86 : vector<16x8xf32>
    %88 = arith.truncf %73 : vector<16x8xf32> to vector<16x8xbf16>
    %89 = arith.truncf %80 : vector<16x8xf32> to vector<16x8xbf16>
    %cst_67 = arith.constant dense<0.000000e+00> : vector<16x16xf32>
    %90 = tpu.matmul %88, %89, %cst_67 {dimension_numbers = #tpu.dot_dimension_numbers<[1], [1], [0], [0], [0, 0, 1, 0], [], []>} : vector<16x8xbf16>, vector<16x8xbf16>, vector<16x16xf32> -> vector<16x16xf32>
    %cst_68 = arith.constant 0.353553385 : f32
    %91 = vector.broadcast %cst_68 : f32 to vector<16x16xf32>
    %92 = arith.mulf %90, %91 : vector<16x16xf32>
    %cst_69 = arith.constant dense<0xFF800000> : vector<16xf32>
    %93 = vector.multi_reduction <maximumf>, %92, %cst_69 [1] : vector<16x16xf32> to vector<16xf32>
    %94 = vector.shape_cast %93 : vector<16xf32> to vector<16x1xf32>
    %95 = vector.broadcast %94 : vector<16x1xf32> to vector<16x16xf32>
    %96 = arith.subf %92, %95 : vector<16x16xf32>
    %97 = math.exp %96 : vector<16x16xf32>
    %cst_70 = arith.constant dense<0.000000e+00> : vector<16xf32>
    %98 = vector.multi_reduction <add>, %97, %cst_70 [1] : vector<16x16xf32> to vector<16xf32>
    %99 = vector.shape_cast %98 : vector<16xf32> to vector<16x1xf32>
    %100 = tpu.reciprocal %99 {approx = true} : vector<16x1xf32> -> vector<16x1xf32>
    %101 = vector.broadcast %100 : vector<16x1xf32> to vector<16x16xf32>
    %102 = arith.mulf %97, %101 : vector<16x16xf32>
    %103 = arith.truncf %102 : vector<16x16xf32> to vector<16x16xbf16>
    %104 = arith.truncf %87 : vector<16x8xf32> to vector<16x8xbf16>
    %cst_71 = arith.constant dense<0.000000e+00> : vector<16x8xf32>
    %105 = tpu.matmul %103, %104, %cst_71 {dimension_numbers = #tpu.dot_dimension_numbers<[1], [0], [0], [1], [0, 0, 1, 1], [], []>} : vector<16x16xbf16>, vector<16x8xbf16>, vector<16x8xf32> -> vector<16x8xf32>
    %106 = arith.truncf %105 : vector<16x8xf32> to vector<16x8xbf16>
    %c1_72 = arith.constant 1 : index
    %c0_73 = arith.constant 0 : index
    %c0_74 = arith.constant 0 : index
    %107 = vector.load %arg9[%c1_72, %c0_73, %c0_74] : memref<12x8x32xbf16, #tpu.memory_space<vmem>>, vector<1x8x32xbf16>
    %108 = vector.shape_cast %107 : vector<1x8x32xbf16> to vector<8x32xbf16>
    %cst_75 = arith.constant dense<0.000000e+00> : vector<16x32xf32>
    %109 = tpu.matmul %106, %108, %cst_75 {dimension_numbers = #tpu.dot_dimension_numbers<[1], [0], [0], [1], [0, 0, 1, 1], [], []>} : vector<16x8xbf16>, vector<8x32xbf16>, vector<16x32xf32> -> vector<16x32xf32>
    %110 = arith.addf %66, %109 : vector<16x32xf32>
    %c2 = arith.constant 2 : index
    %c0_76 = arith.constant 0 : index
    %c0_77 = arith.constant 0 : index
    %111 = vector.load %arg6[%c2, %c0_76, %c0_77] : memref<12x32x8xbf16, #tpu.memory_space<vmem>>, vector<1x32x8xbf16>
    %112 = vector.shape_cast %111 : vector<1x32x8xbf16> to vector<32x8xbf16>
    %cst_78 = arith.constant dense<0.000000e+00> : vector<16x8xf32>
    %113 = tpu.matmul %19, %112, %cst_78 {dimension_numbers = #tpu.dot_dimension_numbers<[1], [0], [0], [1], [0, 0, 1, 1], [], []>} : vector<16x32xbf16>, vector<32x8xbf16>, vector<16x8xf32> -> vector<16x8xf32>
    %c2_79 = arith.constant 2 : index
    %c0_80 = arith.constant 0 : index
    %c0_81 = arith.constant 0 : index
    %114 = vector.load %arg10[%c2_79, %c0_80, %c0_81] : memref<12x1x8xf32, #tpu.memory_space<vmem>>, vector<1x1x8xf32>
    %115 = vector.shape_cast %114 : vector<1x1x8xf32> to vector<1x8xf32>
    %116 = vector.broadcast %115 : vector<1x8xf32> to vector<16x8xf32>
    %117 = arith.addf %113, %116 : vector<16x8xf32>
    %c2_82 = arith.constant 2 : index
    %c0_83 = arith.constant 0 : index
    %c0_84 = arith.constant 0 : index
    %118 = vector.load %arg7[%c2_82, %c0_83, %c0_84] : memref<12x32x8xbf16, #tpu.memory_space<vmem>>, vector<1x32x8xbf16>
    %119 = vector.shape_cast %118 : vector<1x32x8xbf16> to vector<32x8xbf16>
    %cst_85 = arith.constant dense<0.000000e+00> : vector<16x8xf32>
    %120 = tpu.matmul %20, %119, %cst_85 {dimension_numbers = #tpu.dot_dimension_numbers<[1], [0], [0], [1], [0, 0, 1, 1], [], []>} : vector<16x32xbf16>, vector<32x8xbf16>, vector<16x8xf32> -> vector<16x8xf32>
    %c2_86 = arith.constant 2 : index
    %c0_87 = arith.constant 0 : index
    %c0_88 = arith.constant 0 : index
    %121 = vector.load %arg11[%c2_86, %c0_87, %c0_88] : memref<12x1x8xf32, #tpu.memory_space<vmem>>, vector<1x1x8xf32>
    %122 = vector.shape_cast %121 : vector<1x1x8xf32> to vector<1x8xf32>
    %123 = vector.broadcast %122 : vector<1x8xf32> to vector<16x8xf32>
    %124 = arith.addf %120, %123 : vector<16x8xf32>
    %c2_89 = arith.constant 2 : index
    %c0_90 = arith.constant 0 : index
    %c0_91 = arith.constant 0 : index
    %125 = vector.load %arg8[%c2_89, %c0_90, %c0_91] : memref<12x32x8xbf16, #tpu.memory_space<vmem>>, vector<1x32x8xbf16>
    %126 = vector.shape_cast %125 : vector<1x32x8xbf16> to vector<32x8xbf16>
    %cst_92 = arith.constant dense<0.000000e+00> : vector<16x8xf32>
    %127 = tpu.matmul %21, %126, %cst_92 {dimension_numbers = #tpu.dot_dimension_numbers<[1], [0], [0], [1], [0, 0, 1, 1], [], []>} : vector<16x32xbf16>, vector<32x8xbf16>, vector<16x8xf32> -> vector<16x8xf32>
    %c2_93 = arith.constant 2 : index
    %c0_94 = arith.constant 0 : index
    %c0_95 = arith.constant 0 : index
    %128 = vector.load %arg12[%c2_93, %c0_94, %c0_95] : memref<12x1x8xf32, #tpu.memory_space<vmem>>, vector<1x1x8xf32>
    %129 = vector.shape_cast %128 : vector<1x1x8xf32> to vector<1x8xf32>
    %130 = vector.broadcast %129 : vector<1x8xf32> to vector<16x8xf32>
    %131 = arith.addf %127, %130 : vector<16x8xf32>
    %132 = arith.truncf %117 : vector<16x8xf32> to vector<16x8xbf16>
    %133 = arith.truncf %124 : vector<16x8xf32> to vector<16x8xbf16>
    %cst_96 = arith.constant dense<0.000000e+00> : vector<16x16xf32>
    %134 = tpu.matmul %132, %133, %cst_96 {dimension_numbers = #tpu.dot_dimension_numbers<[1], [1], [0], [0], [0, 0, 1, 0], [], []>} : vector<16x8xbf16>, vector<16x8xbf16>, vector<16x16xf32> -> vector<16x16xf32>
    %cst_97 = arith.constant 0.353553385 : f32
    %135 = vector.broadcast %cst_97 : f32 to vector<16x16xf32>
    %136 = arith.mulf %134, %135 : vector<16x16xf32>
    %cst_98 = arith.constant dense<0xFF800000> : vector<16xf32>
    %137 = vector.multi_reduction <maximumf>, %136, %cst_98 [1] : vector<16x16xf32> to vector<16xf32>
    %138 = vector.shape_cast %137 : vector<16xf32> to vector<16x1xf32>
    %139 = vector.broadcast %138 : vector<16x1xf32> to vector<16x16xf32>
    %140 = arith.subf %136, %139 : vector<16x16xf32>
    %141 = math.exp %140 : vector<16x16xf32>
    %cst_99 = arith.constant dense<0.000000e+00> : vector<16xf32>
    %142 = vector.multi_reduction <add>, %141, %cst_99 [1] : vector<16x16xf32> to vector<16xf32>
    %143 = vector.shape_cast %142 : vector<16xf32> to vector<16x1xf32>
    %144 = tpu.reciprocal %143 {approx = true} : vector<16x1xf32> -> vector<16x1xf32>
    %145 = vector.broadcast %144 : vector<16x1xf32> to vector<16x16xf32>
    %146 = arith.mulf %141, %145 : vector<16x16xf32>
    %147 = arith.truncf %146 : vector<16x16xf32> to vector<16x16xbf16>
    %148 = arith.truncf %131 : vector<16x8xf32> to vector<16x8xbf16>
    %cst_100 = arith.constant dense<0.000000e+00> : vector<16x8xf32>
    %149 = tpu.matmul %147, %148, %cst_100 {dimension_numbers = #tpu.dot_dimension_numbers<[1], [0], [0], [1], [0, 0, 1, 1], [], []>} : vector<16x16xbf16>, vector<16x8xbf16>, vector<16x8xf32> -> vector<16x8xf32>
    %150 = arith.truncf %149 : vector<16x8xf32> to vector<16x8xbf16>
    %c2_101 = arith.constant 2 : index
    %c0_102 = arith.constant 0 : index
    %c0_103 = arith.constant 0 : index
    %151 = vector.load %arg9[%c2_101, %c0_102, %c0_103] : memref<12x8x32xbf16, #tpu.memory_space<vmem>>, vector<1x8x32xbf16>
    %152 = vector.shape_cast %151 : vector<1x8x32xbf16> to vector<8x32xbf16>
    %cst_104 = arith.constant dense<0.000000e+00> : vector<16x32xf32>
    %153 = tpu.matmul %150, %152, %cst_104 {dimension_numbers = #tpu.dot_dimension_numbers<[1], [0], [0], [1], [0, 0, 1, 1], [], []>} : vector<16x8xbf16>, vector<8x32xbf16>, vector<16x32xf32> -> vector<16x32xf32>
    %154 = arith.addf %110, %153 : vector<16x32xf32>
    %c3 = arith.constant 3 : index
    %c0_105 = arith.constant 0 : index
    %c0_106 = arith.constant 0 : index
    %155 = vector.load %arg6[%c3, %c0_105, %c0_106] : memref<12x32x8xbf16, #tpu.memory_space<vmem>>, vector<1x32x8xbf16>
    %156 = vector.shape_cast %155 : vector<1x32x8xbf16> to vector<32x8xbf16>
    %cst_107 = arith.constant dense<0.000000e+00> : vector<16x8xf32>
    %157 = tpu.matmul %19, %156, %cst_107 {dimension_numbers = #tpu.dot_dimension_numbers<[1], [0], [0], [1], [0, 0, 1, 1], [], []>} : vector<16x32xbf16>, vector<32x8xbf16>, vector<16x8xf32> -> vector<16x8xf32>
    %c3_108 = arith.constant 3 : index
    %c0_109 = arith.constant 0 : index
    %c0_110 = arith.constant 0 : index
    %158 = vector.load %arg10[%c3_108, %c0_109, %c0_110] : memref<12x1x8xf32, #tpu.memory_space<vmem>>, vector<1x1x8xf32>
    %159 = vector.shape_cast %158 : vector<1x1x8xf32> to vector<1x8xf32>
    %160 = vector.broadcast %159 : vector<1x8xf32> to vector<16x8xf32>
    %161 = arith.addf %157, %160 : vector<16x8xf32>
    %c3_111 = arith.constant 3 : index
    %c0_112 = arith.constant 0 : index
    %c0_113 = arith.constant 0 : index
    %162 = vector.load %arg7[%c3_111, %c0_112, %c0_113] : memref<12x32x8xbf16, #tpu.memory_space<vmem>>, vector<1x32x8xbf16>
    %163 = vector.shape_cast %162 : vector<1x32x8xbf16> to vector<32x8xbf16>
    %cst_114 = arith.constant dense<0.000000e+00> : vector<16x8xf32>
    %164 = tpu.matmul %20, %163, %cst_114 {dimension_numbers = #tpu.dot_dimension_numbers<[1], [0], [0], [1], [0, 0, 1, 1], [], []>} : vector<16x32xbf16>, vector<32x8xbf16>, vector<16x8xf32> -> vector<16x8xf32>
    %c3_115 = arith.constant 3 : index
    %c0_116 = arith.constant 0 : index
    %c0_117 = arith.constant 0 : index
    %165 = vector.load %arg11[%c3_115, %c0_116, %c0_117] : memref<12x1x8xf32, #tpu.memory_space<vmem>>, vector<1x1x8xf32>
    %166 = vector.shape_cast %165 : vector<1x1x8xf32> to vector<1x8xf32>
    %167 = vector.broadcast %166 : vector<1x8xf32> to vector<16x8xf32>
    %168 = arith.addf %164, %167 : vector<16x8xf32>
    %c3_118 = arith.constant 3 : index
    %c0_119 = arith.constant 0 : index
    %c0_120 = arith.constant 0 : index
    %169 = vector.load %arg8[%c3_118, %c0_119, %c0_120] : memref<12x32x8xbf16, #tpu.memory_space<vmem>>, vector<1x32x8xbf16>
    %170 = vector.shape_cast %169 : vector<1x32x8xbf16> to vector<32x8xbf16>
    %cst_121 = arith.constant dense<0.000000e+00> : vector<16x8xf32>
    %171 = tpu.matmul %21, %170, %cst_121 {dimension_numbers = #tpu.dot_dimension_numbers<[1], [0], [0], [1], [0, 0, 1, 1], [], []>} : vector<16x32xbf16>, vector<32x8xbf16>, vector<16x8xf32> -> vector<16x8xf32>
    %c3_122 = arith.constant 3 : index
    %c0_123 = arith.constant 0 : index
    %c0_124 = arith.constant 0 : index
    %172 = vector.load %arg12[%c3_122, %c0_123, %c0_124] : memref<12x1x8xf32, #tpu.memory_space<vmem>>, vector<1x1x8xf32>
    %173 = vector.shape_cast %172 : vector<1x1x8xf32> to vector<1x8xf32>
    %174 = vector.broadcast %173 : vector<1x8xf32> to vector<16x8xf32>
    %175 = arith.addf %171, %174 : vector<16x8xf32>
    %176 = arith.truncf %161 : vector<16x8xf32> to vector<16x8xbf16>
    %177 = arith.truncf %168 : vector<16x8xf32> to vector<16x8xbf16>
    %cst_125 = arith.constant dense<0.000000e+00> : vector<16x16xf32>
    %178 = tpu.matmul %176, %177, %cst_125 {dimension_numbers = #tpu.dot_dimension_numbers<[1], [1], [0], [0], [0, 0, 1, 0], [], []>} : vector<16x8xbf16>, vector<16x8xbf16>, vector<16x16xf32> -> vector<16x16xf32>
    %cst_126 = arith.constant 0.353553385 : f32
    %179 = vector.broadcast %cst_126 : f32 to vector<16x16xf32>
    %180 = arith.mulf %178, %179 : vector<16x16xf32>
    %cst_127 = arith.constant dense<0xFF800000> : vector<16xf32>
    %181 = vector.multi_reduction <maximumf>, %180, %cst_127 [1] : vector<16x16xf32> to vector<16xf32>
    %182 = vector.shape_cast %181 : vector<16xf32> to vector<16x1xf32>
    %183 = vector.broadcast %182 : vector<16x1xf32> to vector<16x16xf32>
    %184 = arith.subf %180, %183 : vector<16x16xf32>
    %185 = math.exp %184 : vector<16x16xf32>
    %cst_128 = arith.constant dense<0.000000e+00> : vector<16xf32>
    %186 = vector.multi_reduction <add>, %185, %cst_128 [1] : vector<16x16xf32> to vector<16xf32>
    %187 = vector.shape_cast %186 : vector<16xf32> to vector<16x1xf32>
    %188 = tpu.reciprocal %187 {approx = true} : vector<16x1xf32> -> vector<16x1xf32>
    %189 = vector.broadcast %188 : vector<16x1xf32> to vector<16x16xf32>
    %190 = arith.mulf %185, %189 : vector<16x16xf32>
    %191 = arith.truncf %190 : vector<16x16xf32> to vector<16x16xbf16>
    %192 = arith.truncf %175 : vector<16x8xf32> to vector<16x8xbf16>
    %cst_129 = arith.constant dense<0.000000e+00> : vector<16x8xf32>
    %193 = tpu.matmul %191, %192, %cst_129 {dimension_numbers = #tpu.dot_dimension_numbers<[1], [0], [0], [1], [0, 0, 1, 1], [], []>} : vector<16x16xbf16>, vector<16x8xbf16>, vector<16x8xf32> -> vector<16x8xf32>
    %194 = arith.truncf %193 : vector<16x8xf32> to vector<16x8xbf16>
    %c3_130 = arith.constant 3 : index
    %c0_131 = arith.constant 0 : index
    %c0_132 = arith.constant 0 : index
    %195 = vector.load %arg9[%c3_130, %c0_131, %c0_132] : memref<12x8x32xbf16, #tpu.memory_space<vmem>>, vector<1x8x32xbf16>
    %196 = vector.shape_cast %195 : vector<1x8x32xbf16> to vector<8x32xbf16>
    %cst_133 = arith.constant dense<0.000000e+00> : vector<16x32xf32>
    %197 = tpu.matmul %194, %196, %cst_133 {dimension_numbers = #tpu.dot_dimension_numbers<[1], [0], [0], [1], [0, 0, 1, 1], [], []>} : vector<16x8xbf16>, vector<8x32xbf16>, vector<16x32xf32> -> vector<16x32xf32>
    %198 = arith.addf %154, %197 : vector<16x32xf32>
    %c2_134 = arith.constant 2 : index
    %c0_135 = arith.constant 0 : index
    %199 = vector.load %arg19[%c2_134, %c0_135] : memref<32x128xf32, #tpu.memory_space<vmem>>, vector<1x32xf32>
    %200 = vector.broadcast %199 : vector<1x32xf32> to vector<16x32xf32>
    %201 = arith.addf %198, %200 : vector<16x32xf32>
    %202 = arith.addf %17, %201 : vector<16x32xf32>
    %c13 = arith.constant 13 : index
    %c0_136 = arith.constant 0 : index
    %203 = vector.load %arg19[%c13, %c0_136] : memref<32x128xf32, #tpu.memory_space<vmem>>, vector<1x32xf32>
    %c14 = arith.constant 14 : index
    %c0_137 = arith.constant 0 : index
    %204 = vector.load %arg19[%c14, %c0_137] : memref<32x128xf32, #tpu.memory_space<vmem>>, vector<1x32xf32>
    %cst_138 = arith.constant dense<0.000000e+00> : vector<16xf32>
    %205 = vector.multi_reduction <add>, %202, %cst_138 [1] : vector<16x32xf32> to vector<16xf32>
    %206 = vector.shape_cast %205 : vector<16xf32> to vector<16x1xf32>
    %cst_139 = arith.constant 3.200000e+01 : f32
    %207 = vector.broadcast %cst_139 : f32 to vector<16x1xf32>
    %208 = arith.divf %206, %207 : vector<16x1xf32>
    %209 = vector.broadcast %208 : vector<16x1xf32> to vector<16x32xf32>
    %210 = arith.subf %202, %209 : vector<16x32xf32>
    %211 = arith.mulf %210, %210 : vector<16x32xf32>
    %cst_140 = arith.constant dense<0.000000e+00> : vector<16xf32>
    %212 = vector.multi_reduction <add>, %211, %cst_140 [1] : vector<16x32xf32> to vector<16xf32>
    %213 = vector.shape_cast %212 : vector<16xf32> to vector<16x1xf32>
    %cst_141 = arith.constant 3.200000e+01 : f32
    %214 = vector.broadcast %cst_141 : f32 to vector<16x1xf32>
    %215 = arith.divf %213, %214 : vector<16x1xf32>
    %cst_142 = arith.constant 9.99999974E-6 : f32
    %216 = vector.broadcast %cst_142 : f32 to vector<16x1xf32>
    %217 = arith.addf %215, %216 : vector<16x1xf32>
    %218 = math.rsqrt %217 : vector<16x1xf32>
    %219 = vector.broadcast %218 : vector<16x1xf32> to vector<16x32xf32>
    %220 = arith.mulf %210, %219 : vector<16x32xf32>
    %221 = vector.broadcast %203 : vector<1x32xf32> to vector<16x32xf32>
    %222 = arith.mulf %220, %221 : vector<16x32xf32>
    %223 = vector.broadcast %204 : vector<1x32xf32> to vector<16x32xf32>
    %224 = arith.addf %222, %223 : vector<16x32xf32>
    %c0_143 = arith.constant 0 : index
    %c0_144 = arith.constant 0 : index
    %c0_145 = arith.constant 0 : index
    %225 = vector.load %arg13[%c0_143, %c0_144, %c0_145] : memref<2x32x64xbf16, #tpu.memory_space<vmem>>, vector<1x32x64xbf16>
    %226 = vector.shape_cast %225 : vector<1x32x64xbf16> to vector<32x64xbf16>
    %227 = arith.truncf %224 : vector<16x32xf32> to vector<16x32xbf16>
    %cst_146 = arith.constant dense<0.000000e+00> : vector<16x64xf32>
    %228 = tpu.matmul %227, %226, %cst_146 {dimension_numbers = #tpu.dot_dimension_numbers<[1], [0], [0], [1], [0, 0, 1, 1], [], []>} : vector<16x32xbf16>, vector<32x64xbf16>, vector<16x64xf32> -> vector<16x64xf32>
    %c3_147 = arith.constant 3 : index
    %c0_148 = arith.constant 0 : index
    %229 = vector.load %arg19[%c3_147, %c0_148] : memref<32x128xf32, #tpu.memory_space<vmem>>, vector<1x64xf32>
    %230 = vector.broadcast %229 : vector<1x64xf32> to vector<16x64xf32>
    %231 = arith.addf %228, %230 : vector<16x64xf32>
    %cst_149 = arith.constant 0.000000e+00 : f32
    %232 = vector.broadcast %cst_149 : f32 to vector<16x64xf32>
    %233 = arith.maximumf %231, %232 : vector<16x64xf32>
    %c0_150 = arith.constant 0 : index
    %c0_151 = arith.constant 0 : index
    %c0_152 = arith.constant 0 : index
    %234 = vector.load %arg14[%c0_150, %c0_151, %c0_152] : memref<2x64x32xbf16, #tpu.memory_space<vmem>>, vector<1x64x32xbf16>
    %235 = vector.shape_cast %234 : vector<1x64x32xbf16> to vector<64x32xbf16>
    %236 = arith.truncf %233 : vector<16x64xf32> to vector<16x64xbf16>
    %cst_153 = arith.constant dense<0.000000e+00> : vector<16x32xf32>
    %237 = tpu.matmul %236, %235, %cst_153 {dimension_numbers = #tpu.dot_dimension_numbers<[1], [0], [0], [1], [0, 0, 1, 1], [], []>} : vector<16x64xbf16>, vector<64x32xbf16>, vector<16x32xf32> -> vector<16x32xf32>
    %c4 = arith.constant 4 : index
    %c0_154 = arith.constant 0 : index
    %238 = vector.load %arg19[%c4, %c0_154] : memref<32x128xf32, #tpu.memory_space<vmem>>, vector<1x32xf32>
    %239 = vector.broadcast %238 : vector<1x32xf32> to vector<16x32xf32>
    %240 = arith.addf %237, %239 : vector<16x32xf32>
    %241 = arith.addf %224, %240 : vector<16x32xf32>
    %c15 = arith.constant 15 : index
    %c0_155 = arith.constant 0 : index
    %242 = vector.load %arg19[%c15, %c0_155] : memref<32x128xf32, #tpu.memory_space<vmem>>, vector<1x32xf32>
    %c16 = arith.constant 16 : index
    %c0_156 = arith.constant 0 : index
    %243 = vector.load %arg19[%c16, %c0_156] : memref<32x128xf32, #tpu.memory_space<vmem>>, vector<1x32xf32>
    %cst_157 = arith.constant dense<0.000000e+00> : vector<16xf32>
    %244 = vector.multi_reduction <add>, %241, %cst_157 [1] : vector<16x32xf32> to vector<16xf32>
    %245 = vector.shape_cast %244 : vector<16xf32> to vector<16x1xf32>
    %cst_158 = arith.constant 3.200000e+01 : f32
    %246 = vector.broadcast %cst_158 : f32 to vector<16x1xf32>
    %247 = arith.divf %245, %246 : vector<16x1xf32>
    %248 = vector.broadcast %247 : vector<16x1xf32> to vector<16x32xf32>
    %249 = arith.subf %241, %248 : vector<16x32xf32>
    %250 = arith.mulf %249, %249 : vector<16x32xf32>
    %cst_159 = arith.constant dense<0.000000e+00> : vector<16xf32>
    %251 = vector.multi_reduction <add>, %250, %cst_159 [1] : vector<16x32xf32> to vector<16xf32>
    %252 = vector.shape_cast %251 : vector<16xf32> to vector<16x1xf32>
    %cst_160 = arith.constant 3.200000e+01 : f32
    %253 = vector.broadcast %cst_160 : f32 to vector<16x1xf32>
    %254 = arith.divf %252, %253 : vector<16x1xf32>
    %cst_161 = arith.constant 9.99999974E-6 : f32
    %255 = vector.broadcast %cst_161 : f32 to vector<16x1xf32>
    %256 = arith.addf %254, %255 : vector<16x1xf32>
    %257 = math.rsqrt %256 : vector<16x1xf32>
    %258 = vector.broadcast %257 : vector<16x1xf32> to vector<16x32xf32>
    %259 = arith.mulf %249, %258 : vector<16x32xf32>
    %260 = vector.broadcast %242 : vector<1x32xf32> to vector<16x32xf32>
    %261 = arith.mulf %259, %260 : vector<16x32xf32>
    %262 = vector.broadcast %243 : vector<1x32xf32> to vector<16x32xf32>
    %263 = arith.addf %261, %262 : vector<16x32xf32>
    %cst_162 = arith.constant 0.000000e+00 : f32
    %264 = vector.broadcast %cst_162 : f32 to vector<8x32xf32>
    %265 = arith.addf %264, %3 : vector<8x32xf32>
    %266 = arith.truncf %265 : vector<8x32xf32> to vector<8x32xbf16>
    %267 = arith.truncf %265 : vector<8x32xf32> to vector<8x32xbf16>
    %268 = arith.truncf %264 : vector<8x32xf32> to vector<8x32xbf16>
    %cst_163 = arith.constant 0.000000e+00 : f32
    %269 = vector.broadcast %cst_163 : f32 to vector<8x32xf32>
    %c4_164 = arith.constant 4 : index
    %c0_165 = arith.constant 0 : index
    %c0_166 = arith.constant 0 : index
    %270 = vector.load %arg6[%c4_164, %c0_165, %c0_166] : memref<12x32x8xbf16, #tpu.memory_space<vmem>>, vector<1x32x8xbf16>
    %271 = vector.shape_cast %270 : vector<1x32x8xbf16> to vector<32x8xbf16>
    %cst_167 = arith.constant dense<0.000000e+00> : vector<8x8xf32>
    %272 = tpu.matmul %266, %271, %cst_167 {dimension_numbers = #tpu.dot_dimension_numbers<[1], [0], [0], [1], [0, 0, 1, 1], [], []>} : vector<8x32xbf16>, vector<32x8xbf16>, vector<8x8xf32> -> vector<8x8xf32>
    %c4_168 = arith.constant 4 : index
    %c0_169 = arith.constant 0 : index
    %c0_170 = arith.constant 0 : index
    %273 = vector.load %arg10[%c4_168, %c0_169, %c0_170] : memref<12x1x8xf32, #tpu.memory_space<vmem>>, vector<1x1x8xf32>
    %274 = vector.shape_cast %273 : vector<1x1x8xf32> to vector<1x8xf32>
    %275 = vector.broadcast %274 : vector<1x8xf32> to vector<8x8xf32>
    %276 = arith.addf %272, %275 : vector<8x8xf32>
    %c4_171 = arith.constant 4 : index
    %c0_172 = arith.constant 0 : index
    %c0_173 = arith.constant 0 : index
    %277 = vector.load %arg7[%c4_171, %c0_172, %c0_173] : memref<12x32x8xbf16, #tpu.memory_space<vmem>>, vector<1x32x8xbf16>
    %278 = vector.shape_cast %277 : vector<1x32x8xbf16> to vector<32x8xbf16>
    %cst_174 = arith.constant dense<0.000000e+00> : vector<8x8xf32>
    %279 = tpu.matmul %267, %278, %cst_174 {dimension_numbers = #tpu.dot_dimension_numbers<[1], [0], [0], [1], [0, 0, 1, 1], [], []>} : vector<8x32xbf16>, vector<32x8xbf16>, vector<8x8xf32> -> vector<8x8xf32>
    %c4_175 = arith.constant 4 : index
    %c0_176 = arith.constant 0 : index
    %c0_177 = arith.constant 0 : index
    %280 = vector.load %arg11[%c4_175, %c0_176, %c0_177] : memref<12x1x8xf32, #tpu.memory_space<vmem>>, vector<1x1x8xf32>
    %281 = vector.shape_cast %280 : vector<1x1x8xf32> to vector<1x8xf32>
    %282 = vector.broadcast %281 : vector<1x8xf32> to vector<8x8xf32>
    %283 = arith.addf %279, %282 : vector<8x8xf32>
    %c4_178 = arith.constant 4 : index
    %c0_179 = arith.constant 0 : index
    %c0_180 = arith.constant 0 : index
    %284 = vector.load %arg8[%c4_178, %c0_179, %c0_180] : memref<12x32x8xbf16, #tpu.memory_space<vmem>>, vector<1x32x8xbf16>
    %285 = vector.shape_cast %284 : vector<1x32x8xbf16> to vector<32x8xbf16>
    %cst_181 = arith.constant dense<0.000000e+00> : vector<8x8xf32>
    %286 = tpu.matmul %268, %285, %cst_181 {dimension_numbers = #tpu.dot_dimension_numbers<[1], [0], [0], [1], [0, 0, 1, 1], [], []>} : vector<8x32xbf16>, vector<32x8xbf16>, vector<8x8xf32> -> vector<8x8xf32>
    %c4_182 = arith.constant 4 : index
    %c0_183 = arith.constant 0 : index
    %c0_184 = arith.constant 0 : index
    %287 = vector.load %arg12[%c4_182, %c0_183, %c0_184] : memref<12x1x8xf32, #tpu.memory_space<vmem>>, vector<1x1x8xf32>
    %288 = vector.shape_cast %287 : vector<1x1x8xf32> to vector<1x8xf32>
    %289 = vector.broadcast %288 : vector<1x8xf32> to vector<8x8xf32>
    %290 = arith.addf %286, %289 : vector<8x8xf32>
    %291 = arith.truncf %276 : vector<8x8xf32> to vector<8x8xbf16>
    %292 = arith.truncf %283 : vector<8x8xf32> to vector<8x8xbf16>
    %cst_185 = arith.constant dense<0.000000e+00> : vector<8x8xf32>
    %293 = tpu.matmul %291, %292, %cst_185 {dimension_numbers = #tpu.dot_dimension_numbers<[1], [1], [0], [0], [0, 0, 1, 0], [], []>} : vector<8x8xbf16>, vector<8x8xbf16>, vector<8x8xf32> -> vector<8x8xf32>
    %cst_186 = arith.constant 0.353553385 : f32
    %294 = vector.broadcast %cst_186 : f32 to vector<8x8xf32>
    %295 = arith.mulf %293, %294 : vector<8x8xf32>
    %cst_187 = arith.constant dense<0xFF800000> : vector<8xf32>
    %296 = vector.multi_reduction <maximumf>, %295, %cst_187 [1] : vector<8x8xf32> to vector<8xf32>
    %297 = vector.shape_cast %296 : vector<8xf32> to vector<8x1xf32>
    %298 = vector.broadcast %297 : vector<8x1xf32> to vector<8x8xf32>
    %299 = arith.subf %295, %298 : vector<8x8xf32>
    %300 = math.exp %299 : vector<8x8xf32>
    %cst_188 = arith.constant dense<0.000000e+00> : vector<8xf32>
    %301 = vector.multi_reduction <add>, %300, %cst_188 [1] : vector<8x8xf32> to vector<8xf32>
    %302 = vector.shape_cast %301 : vector<8xf32> to vector<8x1xf32>
    %303 = tpu.reciprocal %302 {approx = true} : vector<8x1xf32> -> vector<8x1xf32>
    %304 = vector.broadcast %303 : vector<8x1xf32> to vector<8x8xf32>
    %305 = arith.mulf %300, %304 : vector<8x8xf32>
    %306 = arith.truncf %305 : vector<8x8xf32> to vector<8x8xbf16>
    %307 = arith.truncf %290 : vector<8x8xf32> to vector<8x8xbf16>
    %cst_189 = arith.constant dense<0.000000e+00> : vector<8x8xf32>
    %308 = tpu.matmul %306, %307, %cst_189 {dimension_numbers = #tpu.dot_dimension_numbers<[1], [0], [0], [1], [0, 0, 1, 1], [], []>} : vector<8x8xbf16>, vector<8x8xbf16>, vector<8x8xf32> -> vector<8x8xf32>
    %309 = arith.truncf %308 : vector<8x8xf32> to vector<8x8xbf16>
    %c4_190 = arith.constant 4 : index
    %c0_191 = arith.constant 0 : index
    %c0_192 = arith.constant 0 : index
    %310 = vector.load %arg9[%c4_190, %c0_191, %c0_192] : memref<12x8x32xbf16, #tpu.memory_space<vmem>>, vector<1x8x32xbf16>
    %311 = vector.shape_cast %310 : vector<1x8x32xbf16> to vector<8x32xbf16>
    %cst_193 = arith.constant dense<0.000000e+00> : vector<8x32xf32>
    %312 = tpu.matmul %309, %311, %cst_193 {dimension_numbers = #tpu.dot_dimension_numbers<[1], [0], [0], [1], [0, 0, 1, 1], [], []>} : vector<8x8xbf16>, vector<8x32xbf16>, vector<8x32xf32> -> vector<8x32xf32>
    %313 = arith.addf %269, %312 : vector<8x32xf32>
    %c5 = arith.constant 5 : index
    %c0_194 = arith.constant 0 : index
    %c0_195 = arith.constant 0 : index
    %314 = vector.load %arg6[%c5, %c0_194, %c0_195] : memref<12x32x8xbf16, #tpu.memory_space<vmem>>, vector<1x32x8xbf16>
    %315 = vector.shape_cast %314 : vector<1x32x8xbf16> to vector<32x8xbf16>
    %cst_196 = arith.constant dense<0.000000e+00> : vector<8x8xf32>
    %316 = tpu.matmul %266, %315, %cst_196 {dimension_numbers = #tpu.dot_dimension_numbers<[1], [0], [0], [1], [0, 0, 1, 1], [], []>} : vector<8x32xbf16>, vector<32x8xbf16>, vector<8x8xf32> -> vector<8x8xf32>
    %c5_197 = arith.constant 5 : index
    %c0_198 = arith.constant 0 : index
    %c0_199 = arith.constant 0 : index
    %317 = vector.load %arg10[%c5_197, %c0_198, %c0_199] : memref<12x1x8xf32, #tpu.memory_space<vmem>>, vector<1x1x8xf32>
    %318 = vector.shape_cast %317 : vector<1x1x8xf32> to vector<1x8xf32>
    %319 = vector.broadcast %318 : vector<1x8xf32> to vector<8x8xf32>
    %320 = arith.addf %316, %319 : vector<8x8xf32>
    %c5_200 = arith.constant 5 : index
    %c0_201 = arith.constant 0 : index
    %c0_202 = arith.constant 0 : index
    %321 = vector.load %arg7[%c5_200, %c0_201, %c0_202] : memref<12x32x8xbf16, #tpu.memory_space<vmem>>, vector<1x32x8xbf16>
    %322 = vector.shape_cast %321 : vector<1x32x8xbf16> to vector<32x8xbf16>
    %cst_203 = arith.constant dense<0.000000e+00> : vector<8x8xf32>
    %323 = tpu.matmul %267, %322, %cst_203 {dimension_numbers = #tpu.dot_dimension_numbers<[1], [0], [0], [1], [0, 0, 1, 1], [], []>} : vector<8x32xbf16>, vector<32x8xbf16>, vector<8x8xf32> -> vector<8x8xf32>
    %c5_204 = arith.constant 5 : index
    %c0_205 = arith.constant 0 : index
    %c0_206 = arith.constant 0 : index
    %324 = vector.load %arg11[%c5_204, %c0_205, %c0_206] : memref<12x1x8xf32, #tpu.memory_space<vmem>>, vector<1x1x8xf32>
    %325 = vector.shape_cast %324 : vector<1x1x8xf32> to vector<1x8xf32>
    %326 = vector.broadcast %325 : vector<1x8xf32> to vector<8x8xf32>
    %327 = arith.addf %323, %326 : vector<8x8xf32>
    %c5_207 = arith.constant 5 : index
    %c0_208 = arith.constant 0 : index
    %c0_209 = arith.constant 0 : index
    %328 = vector.load %arg8[%c5_207, %c0_208, %c0_209] : memref<12x32x8xbf16, #tpu.memory_space<vmem>>, vector<1x32x8xbf16>
    %329 = vector.shape_cast %328 : vector<1x32x8xbf16> to vector<32x8xbf16>
    %cst_210 = arith.constant dense<0.000000e+00> : vector<8x8xf32>
    %330 = tpu.matmul %268, %329, %cst_210 {dimension_numbers = #tpu.dot_dimension_numbers<[1], [0], [0], [1], [0, 0, 1, 1], [], []>} : vector<8x32xbf16>, vector<32x8xbf16>, vector<8x8xf32> -> vector<8x8xf32>
    %c5_211 = arith.constant 5 : index
    %c0_212 = arith.constant 0 : index
    %c0_213 = arith.constant 0 : index
    %331 = vector.load %arg12[%c5_211, %c0_212, %c0_213] : memref<12x1x8xf32, #tpu.memory_space<vmem>>, vector<1x1x8xf32>
    %332 = vector.shape_cast %331 : vector<1x1x8xf32> to vector<1x8xf32>
    %333 = vector.broadcast %332 : vector<1x8xf32> to vector<8x8xf32>
    %334 = arith.addf %330, %333 : vector<8x8xf32>
    %335 = arith.truncf %320 : vector<8x8xf32> to vector<8x8xbf16>
    %336 = arith.truncf %327 : vector<8x8xf32> to vector<8x8xbf16>
    %cst_214 = arith.constant dense<0.000000e+00> : vector<8x8xf32>
    %337 = tpu.matmul %335, %336, %cst_214 {dimension_numbers = #tpu.dot_dimension_numbers<[1], [1], [0], [0], [0, 0, 1, 0], [], []>} : vector<8x8xbf16>, vector<8x8xbf16>, vector<8x8xf32> -> vector<8x8xf32>
    %cst_215 = arith.constant 0.353553385 : f32
    %338 = vector.broadcast %cst_215 : f32 to vector<8x8xf32>
    %339 = arith.mulf %337, %338 : vector<8x8xf32>
    %cst_216 = arith.constant dense<0xFF800000> : vector<8xf32>
    %340 = vector.multi_reduction <maximumf>, %339, %cst_216 [1] : vector<8x8xf32> to vector<8xf32>
    %341 = vector.shape_cast %340 : vector<8xf32> to vector<8x1xf32>
    %342 = vector.broadcast %341 : vector<8x1xf32> to vector<8x8xf32>
    %343 = arith.subf %339, %342 : vector<8x8xf32>
    %344 = math.exp %343 : vector<8x8xf32>
    %cst_217 = arith.constant dense<0.000000e+00> : vector<8xf32>
    %345 = vector.multi_reduction <add>, %344, %cst_217 [1] : vector<8x8xf32> to vector<8xf32>
    %346 = vector.shape_cast %345 : vector<8xf32> to vector<8x1xf32>
    %347 = tpu.reciprocal %346 {approx = true} : vector<8x1xf32> -> vector<8x1xf32>
    %348 = vector.broadcast %347 : vector<8x1xf32> to vector<8x8xf32>
    %349 = arith.mulf %344, %348 : vector<8x8xf32>
    %350 = arith.truncf %349 : vector<8x8xf32> to vector<8x8xbf16>
    %351 = arith.truncf %334 : vector<8x8xf32> to vector<8x8xbf16>
    %cst_218 = arith.constant dense<0.000000e+00> : vector<8x8xf32>
    %352 = tpu.matmul %350, %351, %cst_218 {dimension_numbers = #tpu.dot_dimension_numbers<[1], [0], [0], [1], [0, 0, 1, 1], [], []>} : vector<8x8xbf16>, vector<8x8xbf16>, vector<8x8xf32> -> vector<8x8xf32>
    %353 = arith.truncf %352 : vector<8x8xf32> to vector<8x8xbf16>
    %c5_219 = arith.constant 5 : index
    %c0_220 = arith.constant 0 : index
    %c0_221 = arith.constant 0 : index
    %354 = vector.load %arg9[%c5_219, %c0_220, %c0_221] : memref<12x8x32xbf16, #tpu.memory_space<vmem>>, vector<1x8x32xbf16>
    %355 = vector.shape_cast %354 : vector<1x8x32xbf16> to vector<8x32xbf16>
    %cst_222 = arith.constant dense<0.000000e+00> : vector<8x32xf32>
    %356 = tpu.matmul %353, %355, %cst_222 {dimension_numbers = #tpu.dot_dimension_numbers<[1], [0], [0], [1], [0, 0, 1, 1], [], []>} : vector<8x8xbf16>, vector<8x32xbf16>, vector<8x32xf32> -> vector<8x32xf32>
    %357 = arith.addf %313, %356 : vector<8x32xf32>
    %c6 = arith.constant 6 : index
    %c0_223 = arith.constant 0 : index
    %c0_224 = arith.constant 0 : index
    %358 = vector.load %arg6[%c6, %c0_223, %c0_224] : memref<12x32x8xbf16, #tpu.memory_space<vmem>>, vector<1x32x8xbf16>
    %359 = vector.shape_cast %358 : vector<1x32x8xbf16> to vector<32x8xbf16>
    %cst_225 = arith.constant dense<0.000000e+00> : vector<8x8xf32>
    %360 = tpu.matmul %266, %359, %cst_225 {dimension_numbers = #tpu.dot_dimension_numbers<[1], [0], [0], [1], [0, 0, 1, 1], [], []>} : vector<8x32xbf16>, vector<32x8xbf16>, vector<8x8xf32> -> vector<8x8xf32>
    %c6_226 = arith.constant 6 : index
    %c0_227 = arith.constant 0 : index
    %c0_228 = arith.constant 0 : index
    %361 = vector.load %arg10[%c6_226, %c0_227, %c0_228] : memref<12x1x8xf32, #tpu.memory_space<vmem>>, vector<1x1x8xf32>
    %362 = vector.shape_cast %361 : vector<1x1x8xf32> to vector<1x8xf32>
    %363 = vector.broadcast %362 : vector<1x8xf32> to vector<8x8xf32>
    %364 = arith.addf %360, %363 : vector<8x8xf32>
    %c6_229 = arith.constant 6 : index
    %c0_230 = arith.constant 0 : index
    %c0_231 = arith.constant 0 : index
    %365 = vector.load %arg7[%c6_229, %c0_230, %c0_231] : memref<12x32x8xbf16, #tpu.memory_space<vmem>>, vector<1x32x8xbf16>
    %366 = vector.shape_cast %365 : vector<1x32x8xbf16> to vector<32x8xbf16>
    %cst_232 = arith.constant dense<0.000000e+00> : vector<8x8xf32>
    %367 = tpu.matmul %267, %366, %cst_232 {dimension_numbers = #tpu.dot_dimension_numbers<[1], [0], [0], [1], [0, 0, 1, 1], [], []>} : vector<8x32xbf16>, vector<32x8xbf16>, vector<8x8xf32> -> vector<8x8xf32>
    %c6_233 = arith.constant 6 : index
    %c0_234 = arith.constant 0 : index
    %c0_235 = arith.constant 0 : index
    %368 = vector.load %arg11[%c6_233, %c0_234, %c0_235] : memref<12x1x8xf32, #tpu.memory_space<vmem>>, vector<1x1x8xf32>
    %369 = vector.shape_cast %368 : vector<1x1x8xf32> to vector<1x8xf32>
    %370 = vector.broadcast %369 : vector<1x8xf32> to vector<8x8xf32>
    %371 = arith.addf %367, %370 : vector<8x8xf32>
    %c6_236 = arith.constant 6 : index
    %c0_237 = arith.constant 0 : index
    %c0_238 = arith.constant 0 : index
    %372 = vector.load %arg8[%c6_236, %c0_237, %c0_238] : memref<12x32x8xbf16, #tpu.memory_space<vmem>>, vector<1x32x8xbf16>
    %373 = vector.shape_cast %372 : vector<1x32x8xbf16> to vector<32x8xbf16>
    %cst_239 = arith.constant dense<0.000000e+00> : vector<8x8xf32>
    %374 = tpu.matmul %268, %373, %cst_239 {dimension_numbers = #tpu.dot_dimension_numbers<[1], [0], [0], [1], [0, 0, 1, 1], [], []>} : vector<8x32xbf16>, vector<32x8xbf16>, vector<8x8xf32> -> vector<8x8xf32>
    %c6_240 = arith.constant 6 : index
    %c0_241 = arith.constant 0 : index
    %c0_242 = arith.constant 0 : index
    %375 = vector.load %arg12[%c6_240, %c0_241, %c0_242] : memref<12x1x8xf32, #tpu.memory_space<vmem>>, vector<1x1x8xf32>
    %376 = vector.shape_cast %375 : vector<1x1x8xf32> to vector<1x8xf32>
    %377 = vector.broadcast %376 : vector<1x8xf32> to vector<8x8xf32>
    %378 = arith.addf %374, %377 : vector<8x8xf32>
    %379 = arith.truncf %364 : vector<8x8xf32> to vector<8x8xbf16>
    %380 = arith.truncf %371 : vector<8x8xf32> to vector<8x8xbf16>
    %cst_243 = arith.constant dense<0.000000e+00> : vector<8x8xf32>
    %381 = tpu.matmul %379, %380, %cst_243 {dimension_numbers = #tpu.dot_dimension_numbers<[1], [1], [0], [0], [0, 0, 1, 0], [], []>} : vector<8x8xbf16>, vector<8x8xbf16>, vector<8x8xf32> -> vector<8x8xf32>
    %cst_244 = arith.constant 0.353553385 : f32
    %382 = vector.broadcast %cst_244 : f32 to vector<8x8xf32>
    %383 = arith.mulf %381, %382 : vector<8x8xf32>
    %cst_245 = arith.constant dense<0xFF800000> : vector<8xf32>
    %384 = vector.multi_reduction <maximumf>, %383, %cst_245 [1] : vector<8x8xf32> to vector<8xf32>
    %385 = vector.shape_cast %384 : vector<8xf32> to vector<8x1xf32>
    %386 = vector.broadcast %385 : vector<8x1xf32> to vector<8x8xf32>
    %387 = arith.subf %383, %386 : vector<8x8xf32>
    %388 = math.exp %387 : vector<8x8xf32>
    %cst_246 = arith.constant dense<0.000000e+00> : vector<8xf32>
    %389 = vector.multi_reduction <add>, %388, %cst_246 [1] : vector<8x8xf32> to vector<8xf32>
    %390 = vector.shape_cast %389 : vector<8xf32> to vector<8x1xf32>
    %391 = tpu.reciprocal %390 {approx = true} : vector<8x1xf32> -> vector<8x1xf32>
    %392 = vector.broadcast %391 : vector<8x1xf32> to vector<8x8xf32>
    %393 = arith.mulf %388, %392 : vector<8x8xf32>
    %394 = arith.truncf %393 : vector<8x8xf32> to vector<8x8xbf16>
    %395 = arith.truncf %378 : vector<8x8xf32> to vector<8x8xbf16>
    %cst_247 = arith.constant dense<0.000000e+00> : vector<8x8xf32>
    %396 = tpu.matmul %394, %395, %cst_247 {dimension_numbers = #tpu.dot_dimension_numbers<[1], [0], [0], [1], [0, 0, 1, 1], [], []>} : vector<8x8xbf16>, vector<8x8xbf16>, vector<8x8xf32> -> vector<8x8xf32>
    %397 = arith.truncf %396 : vector<8x8xf32> to vector<8x8xbf16>
    %c6_248 = arith.constant 6 : index
    %c0_249 = arith.constant 0 : index
    %c0_250 = arith.constant 0 : index
    %398 = vector.load %arg9[%c6_248, %c0_249, %c0_250] : memref<12x8x32xbf16, #tpu.memory_space<vmem>>, vector<1x8x32xbf16>
    %399 = vector.shape_cast %398 : vector<1x8x32xbf16> to vector<8x32xbf16>
    %cst_251 = arith.constant dense<0.000000e+00> : vector<8x32xf32>
    %400 = tpu.matmul %397, %399, %cst_251 {dimension_numbers = #tpu.dot_dimension_numbers<[1], [0], [0], [1], [0, 0, 1, 1], [], []>} : vector<8x8xbf16>, vector<8x32xbf16>, vector<8x32xf32> -> vector<8x32xf32>
    %401 = arith.addf %357, %400 : vector<8x32xf32>
    %c7 = arith.constant 7 : index
    %c0_252 = arith.constant 0 : index
    %c0_253 = arith.constant 0 : index
    %402 = vector.load %arg6[%c7, %c0_252, %c0_253] : memref<12x32x8xbf16, #tpu.memory_space<vmem>>, vector<1x32x8xbf16>
    %403 = vector.shape_cast %402 : vector<1x32x8xbf16> to vector<32x8xbf16>
    %cst_254 = arith.constant dense<0.000000e+00> : vector<8x8xf32>
    %404 = tpu.matmul %266, %403, %cst_254 {dimension_numbers = #tpu.dot_dimension_numbers<[1], [0], [0], [1], [0, 0, 1, 1], [], []>} : vector<8x32xbf16>, vector<32x8xbf16>, vector<8x8xf32> -> vector<8x8xf32>
    %c7_255 = arith.constant 7 : index
    %c0_256 = arith.constant 0 : index
    %c0_257 = arith.constant 0 : index
    %405 = vector.load %arg10[%c7_255, %c0_256, %c0_257] : memref<12x1x8xf32, #tpu.memory_space<vmem>>, vector<1x1x8xf32>
    %406 = vector.shape_cast %405 : vector<1x1x8xf32> to vector<1x8xf32>
    %407 = vector.broadcast %406 : vector<1x8xf32> to vector<8x8xf32>
    %408 = arith.addf %404, %407 : vector<8x8xf32>
    %c7_258 = arith.constant 7 : index
    %c0_259 = arith.constant 0 : index
    %c0_260 = arith.constant 0 : index
    %409 = vector.load %arg7[%c7_258, %c0_259, %c0_260] : memref<12x32x8xbf16, #tpu.memory_space<vmem>>, vector<1x32x8xbf16>
    %410 = vector.shape_cast %409 : vector<1x32x8xbf16> to vector<32x8xbf16>
    %cst_261 = arith.constant dense<0.000000e+00> : vector<8x8xf32>
    %411 = tpu.matmul %267, %410, %cst_261 {dimension_numbers = #tpu.dot_dimension_numbers<[1], [0], [0], [1], [0, 0, 1, 1], [], []>} : vector<8x32xbf16>, vector<32x8xbf16>, vector<8x8xf32> -> vector<8x8xf32>
    %c7_262 = arith.constant 7 : index
    %c0_263 = arith.constant 0 : index
    %c0_264 = arith.constant 0 : index
    %412 = vector.load %arg11[%c7_262, %c0_263, %c0_264] : memref<12x1x8xf32, #tpu.memory_space<vmem>>, vector<1x1x8xf32>
    %413 = vector.shape_cast %412 : vector<1x1x8xf32> to vector<1x8xf32>
    %414 = vector.broadcast %413 : vector<1x8xf32> to vector<8x8xf32>
    %415 = arith.addf %411, %414 : vector<8x8xf32>
    %c7_265 = arith.constant 7 : index
    %c0_266 = arith.constant 0 : index
    %c0_267 = arith.constant 0 : index
    %416 = vector.load %arg8[%c7_265, %c0_266, %c0_267] : memref<12x32x8xbf16, #tpu.memory_space<vmem>>, vector<1x32x8xbf16>
    %417 = vector.shape_cast %416 : vector<1x32x8xbf16> to vector<32x8xbf16>
    %cst_268 = arith.constant dense<0.000000e+00> : vector<8x8xf32>
    %418 = tpu.matmul %268, %417, %cst_268 {dimension_numbers = #tpu.dot_dimension_numbers<[1], [0], [0], [1], [0, 0, 1, 1], [], []>} : vector<8x32xbf16>, vector<32x8xbf16>, vector<8x8xf32> -> vector<8x8xf32>
    %c7_269 = arith.constant 7 : index
    %c0_270 = arith.constant 0 : index
    %c0_271 = arith.constant 0 : index
    %419 = vector.load %arg12[%c7_269, %c0_270, %c0_271] : memref<12x1x8xf32, #tpu.memory_space<vmem>>, vector<1x1x8xf32>
    %420 = vector.shape_cast %419 : vector<1x1x8xf32> to vector<1x8xf32>
    %421 = vector.broadcast %420 : vector<1x8xf32> to vector<8x8xf32>
    %422 = arith.addf %418, %421 : vector<8x8xf32>
    %423 = arith.truncf %408 : vector<8x8xf32> to vector<8x8xbf16>
    %424 = arith.truncf %415 : vector<8x8xf32> to vector<8x8xbf16>
    %cst_272 = arith.constant dense<0.000000e+00> : vector<8x8xf32>
    %425 = tpu.matmul %423, %424, %cst_272 {dimension_numbers = #tpu.dot_dimension_numbers<[1], [1], [0], [0], [0, 0, 1, 0], [], []>} : vector<8x8xbf16>, vector<8x8xbf16>, vector<8x8xf32> -> vector<8x8xf32>
    %cst_273 = arith.constant 0.353553385 : f32
    %426 = vector.broadcast %cst_273 : f32 to vector<8x8xf32>
    %427 = arith.mulf %425, %426 : vector<8x8xf32>
    %cst_274 = arith.constant dense<0xFF800000> : vector<8xf32>
    %428 = vector.multi_reduction <maximumf>, %427, %cst_274 [1] : vector<8x8xf32> to vector<8xf32>
    %429 = vector.shape_cast %428 : vector<8xf32> to vector<8x1xf32>
    %430 = vector.broadcast %429 : vector<8x1xf32> to vector<8x8xf32>
    %431 = arith.subf %427, %430 : vector<8x8xf32>
    %432 = math.exp %431 : vector<8x8xf32>
    %cst_275 = arith.constant dense<0.000000e+00> : vector<8xf32>
    %433 = vector.multi_reduction <add>, %432, %cst_275 [1] : vector<8x8xf32> to vector<8xf32>
    %434 = vector.shape_cast %433 : vector<8xf32> to vector<8x1xf32>
    %435 = tpu.reciprocal %434 {approx = true} : vector<8x1xf32> -> vector<8x1xf32>
    %436 = vector.broadcast %435 : vector<8x1xf32> to vector<8x8xf32>
    %437 = arith.mulf %432, %436 : vector<8x8xf32>
    %438 = arith.truncf %437 : vector<8x8xf32> to vector<8x8xbf16>
    %439 = arith.truncf %422 : vector<8x8xf32> to vector<8x8xbf16>
    %cst_276 = arith.constant dense<0.000000e+00> : vector<8x8xf32>
    %440 = tpu.matmul %438, %439, %cst_276 {dimension_numbers = #tpu.dot_dimension_numbers<[1], [0], [0], [1], [0, 0, 1, 1], [], []>} : vector<8x8xbf16>, vector<8x8xbf16>, vector<8x8xf32> -> vector<8x8xf32>
    %441 = arith.truncf %440 : vector<8x8xf32> to vector<8x8xbf16>
    %c7_277 = arith.constant 7 : index
    %c0_278 = arith.constant 0 : index
    %c0_279 = arith.constant 0 : index
    %442 = vector.load %arg9[%c7_277, %c0_278, %c0_279] : memref<12x8x32xbf16, #tpu.memory_space<vmem>>, vector<1x8x32xbf16>
    %443 = vector.shape_cast %442 : vector<1x8x32xbf16> to vector<8x32xbf16>
    %cst_280 = arith.constant dense<0.000000e+00> : vector<8x32xf32>
    %444 = tpu.matmul %441, %443, %cst_280 {dimension_numbers = #tpu.dot_dimension_numbers<[1], [0], [0], [1], [0, 0, 1, 1], [], []>} : vector<8x8xbf16>, vector<8x32xbf16>, vector<8x32xf32> -> vector<8x32xf32>
    %445 = arith.addf %401, %444 : vector<8x32xf32>
    %c5_281 = arith.constant 5 : index
    %c0_282 = arith.constant 0 : index
    %446 = vector.load %arg19[%c5_281, %c0_282] : memref<32x128xf32, #tpu.memory_space<vmem>>, vector<1x32xf32>
    %447 = vector.broadcast %446 : vector<1x32xf32> to vector<8x32xf32>
    %448 = arith.addf %445, %447 : vector<8x32xf32>
    %449 = arith.addf %264, %448 : vector<8x32xf32>
    %c17 = arith.constant 17 : index
    %c0_283 = arith.constant 0 : index
    %450 = vector.load %arg19[%c17, %c0_283] : memref<32x128xf32, #tpu.memory_space<vmem>>, vector<1x32xf32>
    %c18 = arith.constant 18 : index
    %c0_284 = arith.constant 0 : index
    %451 = vector.load %arg19[%c18, %c0_284] : memref<32x128xf32, #tpu.memory_space<vmem>>, vector<1x32xf32>
    %cst_285 = arith.constant dense<0.000000e+00> : vector<8xf32>
    %452 = vector.multi_reduction <add>, %449, %cst_285 [1] : vector<8x32xf32> to vector<8xf32>
    %453 = vector.shape_cast %452 : vector<8xf32> to vector<8x1xf32>
    %cst_286 = arith.constant 3.200000e+01 : f32
    %454 = vector.broadcast %cst_286 : f32 to vector<8x1xf32>
    %455 = arith.divf %453, %454 : vector<8x1xf32>
    %456 = vector.broadcast %455 : vector<8x1xf32> to vector<8x32xf32>
    %457 = arith.subf %449, %456 : vector<8x32xf32>
    %458 = arith.mulf %457, %457 : vector<8x32xf32>
    %cst_287 = arith.constant dense<0.000000e+00> : vector<8xf32>
    %459 = vector.multi_reduction <add>, %458, %cst_287 [1] : vector<8x32xf32> to vector<8xf32>
    %460 = vector.shape_cast %459 : vector<8xf32> to vector<8x1xf32>
    %cst_288 = arith.constant 3.200000e+01 : f32
    %461 = vector.broadcast %cst_288 : f32 to vector<8x1xf32>
    %462 = arith.divf %460, %461 : vector<8x1xf32>
    %cst_289 = arith.constant 9.99999974E-6 : f32
    %463 = vector.broadcast %cst_289 : f32 to vector<8x1xf32>
    %464 = arith.addf %462, %463 : vector<8x1xf32>
    %465 = math.rsqrt %464 : vector<8x1xf32>
    %466 = vector.broadcast %465 : vector<8x1xf32> to vector<8x32xf32>
    %467 = arith.mulf %457, %466 : vector<8x32xf32>
    %468 = vector.broadcast %450 : vector<1x32xf32> to vector<8x32xf32>
    %469 = arith.mulf %467, %468 : vector<8x32xf32>
    %470 = vector.broadcast %451 : vector<1x32xf32> to vector<8x32xf32>
    %471 = arith.addf %469, %470 : vector<8x32xf32>
    %472 = arith.addf %471, %3 : vector<8x32xf32>
    %473 = arith.addf %263, %2 : vector<16x32xf32>
    %474 = arith.truncf %472 : vector<8x32xf32> to vector<8x32xbf16>
    %475 = arith.truncf %473 : vector<16x32xf32> to vector<16x32xbf16>
    %476 = arith.truncf %263 : vector<16x32xf32> to vector<16x32xbf16>
    %cst_290 = arith.constant 0.000000e+00 : f32
    %477 = vector.broadcast %cst_290 : f32 to vector<8x32xf32>
    %c8 = arith.constant 8 : index
    %c0_291 = arith.constant 0 : index
    %c0_292 = arith.constant 0 : index
    %478 = vector.load %arg6[%c8, %c0_291, %c0_292] : memref<12x32x8xbf16, #tpu.memory_space<vmem>>, vector<1x32x8xbf16>
    %479 = vector.shape_cast %478 : vector<1x32x8xbf16> to vector<32x8xbf16>
    %cst_293 = arith.constant dense<0.000000e+00> : vector<8x8xf32>
    %480 = tpu.matmul %474, %479, %cst_293 {dimension_numbers = #tpu.dot_dimension_numbers<[1], [0], [0], [1], [0, 0, 1, 1], [], []>} : vector<8x32xbf16>, vector<32x8xbf16>, vector<8x8xf32> -> vector<8x8xf32>
    %c8_294 = arith.constant 8 : index
    %c0_295 = arith.constant 0 : index
    %c0_296 = arith.constant 0 : index
    %481 = vector.load %arg10[%c8_294, %c0_295, %c0_296] : memref<12x1x8xf32, #tpu.memory_space<vmem>>, vector<1x1x8xf32>
    %482 = vector.shape_cast %481 : vector<1x1x8xf32> to vector<1x8xf32>
    %483 = vector.broadcast %482 : vector<1x8xf32> to vector<8x8xf32>
    %484 = arith.addf %480, %483 : vector<8x8xf32>
    %c8_297 = arith.constant 8 : index
    %c0_298 = arith.constant 0 : index
    %c0_299 = arith.constant 0 : index
    %485 = vector.load %arg7[%c8_297, %c0_298, %c0_299] : memref<12x32x8xbf16, #tpu.memory_space<vmem>>, vector<1x32x8xbf16>
    %486 = vector.shape_cast %485 : vector<1x32x8xbf16> to vector<32x8xbf16>
    %cst_300 = arith.constant dense<0.000000e+00> : vector<16x8xf32>
    %487 = tpu.matmul %475, %486, %cst_300 {dimension_numbers = #tpu.dot_dimension_numbers<[1], [0], [0], [1], [0, 0, 1, 1], [], []>} : vector<16x32xbf16>, vector<32x8xbf16>, vector<16x8xf32> -> vector<16x8xf32>
    %c8_301 = arith.constant 8 : index
    %c0_302 = arith.constant 0 : index
    %c0_303 = arith.constant 0 : index
    %488 = vector.load %arg11[%c8_301, %c0_302, %c0_303] : memref<12x1x8xf32, #tpu.memory_space<vmem>>, vector<1x1x8xf32>
    %489 = vector.shape_cast %488 : vector<1x1x8xf32> to vector<1x8xf32>
    %490 = vector.broadcast %489 : vector<1x8xf32> to vector<16x8xf32>
    %491 = arith.addf %487, %490 : vector<16x8xf32>
    %c8_304 = arith.constant 8 : index
    %c0_305 = arith.constant 0 : index
    %c0_306 = arith.constant 0 : index
    %492 = vector.load %arg8[%c8_304, %c0_305, %c0_306] : memref<12x32x8xbf16, #tpu.memory_space<vmem>>, vector<1x32x8xbf16>
    %493 = vector.shape_cast %492 : vector<1x32x8xbf16> to vector<32x8xbf16>
    %cst_307 = arith.constant dense<0.000000e+00> : vector<16x8xf32>
    %494 = tpu.matmul %476, %493, %cst_307 {dimension_numbers = #tpu.dot_dimension_numbers<[1], [0], [0], [1], [0, 0, 1, 1], [], []>} : vector<16x32xbf16>, vector<32x8xbf16>, vector<16x8xf32> -> vector<16x8xf32>
    %c8_308 = arith.constant 8 : index
    %c0_309 = arith.constant 0 : index
    %c0_310 = arith.constant 0 : index
    %495 = vector.load %arg12[%c8_308, %c0_309, %c0_310] : memref<12x1x8xf32, #tpu.memory_space<vmem>>, vector<1x1x8xf32>
    %496 = vector.shape_cast %495 : vector<1x1x8xf32> to vector<1x8xf32>
    %497 = vector.broadcast %496 : vector<1x8xf32> to vector<16x8xf32>
    %498 = arith.addf %494, %497 : vector<16x8xf32>
    %499 = arith.truncf %484 : vector<8x8xf32> to vector<8x8xbf16>
    %500 = arith.truncf %491 : vector<16x8xf32> to vector<16x8xbf16>
    %cst_311 = arith.constant dense<0.000000e+00> : vector<8x16xf32>
    %501 = tpu.matmul %499, %500, %cst_311 {dimension_numbers = #tpu.dot_dimension_numbers<[1], [1], [0], [0], [0, 0, 1, 0], [], []>} : vector<8x8xbf16>, vector<16x8xbf16>, vector<8x16xf32> -> vector<8x16xf32>
    %cst_312 = arith.constant 0.353553385 : f32
    %502 = vector.broadcast %cst_312 : f32 to vector<8x16xf32>
    %503 = arith.mulf %501, %502 : vector<8x16xf32>
    %cst_313 = arith.constant dense<0xFF800000> : vector<8xf32>
    %504 = vector.multi_reduction <maximumf>, %503, %cst_313 [1] : vector<8x16xf32> to vector<8xf32>
    %505 = vector.shape_cast %504 : vector<8xf32> to vector<8x1xf32>
    %506 = vector.broadcast %505 : vector<8x1xf32> to vector<8x16xf32>
    %507 = arith.subf %503, %506 : vector<8x16xf32>
    %508 = math.exp %507 : vector<8x16xf32>
    %cst_314 = arith.constant dense<0.000000e+00> : vector<8xf32>
    %509 = vector.multi_reduction <add>, %508, %cst_314 [1] : vector<8x16xf32> to vector<8xf32>
    %510 = vector.shape_cast %509 : vector<8xf32> to vector<8x1xf32>
    %511 = tpu.reciprocal %510 {approx = true} : vector<8x1xf32> -> vector<8x1xf32>
    %512 = vector.broadcast %511 : vector<8x1xf32> to vector<8x16xf32>
    %513 = arith.mulf %508, %512 : vector<8x16xf32>
    %514 = arith.truncf %513 : vector<8x16xf32> to vector<8x16xbf16>
    %515 = arith.truncf %498 : vector<16x8xf32> to vector<16x8xbf16>
    %cst_315 = arith.constant dense<0.000000e+00> : vector<8x8xf32>
    %516 = tpu.matmul %514, %515, %cst_315 {dimension_numbers = #tpu.dot_dimension_numbers<[1], [0], [0], [1], [0, 0, 1, 1], [], []>} : vector<8x16xbf16>, vector<16x8xbf16>, vector<8x8xf32> -> vector<8x8xf32>
    %517 = arith.truncf %516 : vector<8x8xf32> to vector<8x8xbf16>
    %c8_316 = arith.constant 8 : index
    %c0_317 = arith.constant 0 : index
    %c0_318 = arith.constant 0 : index
    %518 = vector.load %arg9[%c8_316, %c0_317, %c0_318] : memref<12x8x32xbf16, #tpu.memory_space<vmem>>, vector<1x8x32xbf16>
    %519 = vector.shape_cast %518 : vector<1x8x32xbf16> to vector<8x32xbf16>
    %cst_319 = arith.constant dense<0.000000e+00> : vector<8x32xf32>
    %520 = tpu.matmul %517, %519, %cst_319 {dimension_numbers = #tpu.dot_dimension_numbers<[1], [0], [0], [1], [0, 0, 1, 1], [], []>} : vector<8x8xbf16>, vector<8x32xbf16>, vector<8x32xf32> -> vector<8x32xf32>
    %521 = arith.addf %477, %520 : vector<8x32xf32>
    %c9 = arith.constant 9 : index
    %c0_320 = arith.constant 0 : index
    %c0_321 = arith.constant 0 : index
    %522 = vector.load %arg6[%c9, %c0_320, %c0_321] : memref<12x32x8xbf16, #tpu.memory_space<vmem>>, vector<1x32x8xbf16>
    %523 = vector.shape_cast %522 : vector<1x32x8xbf16> to vector<32x8xbf16>
    %cst_322 = arith.constant dense<0.000000e+00> : vector<8x8xf32>
    %524 = tpu.matmul %474, %523, %cst_322 {dimension_numbers = #tpu.dot_dimension_numbers<[1], [0], [0], [1], [0, 0, 1, 1], [], []>} : vector<8x32xbf16>, vector<32x8xbf16>, vector<8x8xf32> -> vector<8x8xf32>
    %c9_323 = arith.constant 9 : index
    %c0_324 = arith.constant 0 : index
    %c0_325 = arith.constant 0 : index
    %525 = vector.load %arg10[%c9_323, %c0_324, %c0_325] : memref<12x1x8xf32, #tpu.memory_space<vmem>>, vector<1x1x8xf32>
    %526 = vector.shape_cast %525 : vector<1x1x8xf32> to vector<1x8xf32>
    %527 = vector.broadcast %526 : vector<1x8xf32> to vector<8x8xf32>
    %528 = arith.addf %524, %527 : vector<8x8xf32>
    %c9_326 = arith.constant 9 : index
    %c0_327 = arith.constant 0 : index
    %c0_328 = arith.constant 0 : index
    %529 = vector.load %arg7[%c9_326, %c0_327, %c0_328] : memref<12x32x8xbf16, #tpu.memory_space<vmem>>, vector<1x32x8xbf16>
    %530 = vector.shape_cast %529 : vector<1x32x8xbf16> to vector<32x8xbf16>
    %cst_329 = arith.constant dense<0.000000e+00> : vector<16x8xf32>
    %531 = tpu.matmul %475, %530, %cst_329 {dimension_numbers = #tpu.dot_dimension_numbers<[1], [0], [0], [1], [0, 0, 1, 1], [], []>} : vector<16x32xbf16>, vector<32x8xbf16>, vector<16x8xf32> -> vector<16x8xf32>
    %c9_330 = arith.constant 9 : index
    %c0_331 = arith.constant 0 : index
    %c0_332 = arith.constant 0 : index
    %532 = vector.load %arg11[%c9_330, %c0_331, %c0_332] : memref<12x1x8xf32, #tpu.memory_space<vmem>>, vector<1x1x8xf32>
    %533 = vector.shape_cast %532 : vector<1x1x8xf32> to vector<1x8xf32>
    %534 = vector.broadcast %533 : vector<1x8xf32> to vector<16x8xf32>
    %535 = arith.addf %531, %534 : vector<16x8xf32>
    %c9_333 = arith.constant 9 : index
    %c0_334 = arith.constant 0 : index
    %c0_335 = arith.constant 0 : index
    %536 = vector.load %arg8[%c9_333, %c0_334, %c0_335] : memref<12x32x8xbf16, #tpu.memory_space<vmem>>, vector<1x32x8xbf16>
    %537 = vector.shape_cast %536 : vector<1x32x8xbf16> to vector<32x8xbf16>
    %cst_336 = arith.constant dense<0.000000e+00> : vector<16x8xf32>
    %538 = tpu.matmul %476, %537, %cst_336 {dimension_numbers = #tpu.dot_dimension_numbers<[1], [0], [0], [1], [0, 0, 1, 1], [], []>} : vector<16x32xbf16>, vector<32x8xbf16>, vector<16x8xf32> -> vector<16x8xf32>
    %c9_337 = arith.constant 9 : index
    %c0_338 = arith.constant 0 : index
    %c0_339 = arith.constant 0 : index
    %539 = vector.load %arg12[%c9_337, %c0_338, %c0_339] : memref<12x1x8xf32, #tpu.memory_space<vmem>>, vector<1x1x8xf32>
    %540 = vector.shape_cast %539 : vector<1x1x8xf32> to vector<1x8xf32>
    %541 = vector.broadcast %540 : vector<1x8xf32> to vector<16x8xf32>
    %542 = arith.addf %538, %541 : vector<16x8xf32>
    %543 = arith.truncf %528 : vector<8x8xf32> to vector<8x8xbf16>
    %544 = arith.truncf %535 : vector<16x8xf32> to vector<16x8xbf16>
    %cst_340 = arith.constant dense<0.000000e+00> : vector<8x16xf32>
    %545 = tpu.matmul %543, %544, %cst_340 {dimension_numbers = #tpu.dot_dimension_numbers<[1], [1], [0], [0], [0, 0, 1, 0], [], []>} : vector<8x8xbf16>, vector<16x8xbf16>, vector<8x16xf32> -> vector<8x16xf32>
    %cst_341 = arith.constant 0.353553385 : f32
    %546 = vector.broadcast %cst_341 : f32 to vector<8x16xf32>
    %547 = arith.mulf %545, %546 : vector<8x16xf32>
    %cst_342 = arith.constant dense<0xFF800000> : vector<8xf32>
    %548 = vector.multi_reduction <maximumf>, %547, %cst_342 [1] : vector<8x16xf32> to vector<8xf32>
    %549 = vector.shape_cast %548 : vector<8xf32> to vector<8x1xf32>
    %550 = vector.broadcast %549 : vector<8x1xf32> to vector<8x16xf32>
    %551 = arith.subf %547, %550 : vector<8x16xf32>
    %552 = math.exp %551 : vector<8x16xf32>
    %cst_343 = arith.constant dense<0.000000e+00> : vector<8xf32>
    %553 = vector.multi_reduction <add>, %552, %cst_343 [1] : vector<8x16xf32> to vector<8xf32>
    %554 = vector.shape_cast %553 : vector<8xf32> to vector<8x1xf32>
    %555 = tpu.reciprocal %554 {approx = true} : vector<8x1xf32> -> vector<8x1xf32>
    %556 = vector.broadcast %555 : vector<8x1xf32> to vector<8x16xf32>
    %557 = arith.mulf %552, %556 : vector<8x16xf32>
    %558 = arith.truncf %557 : vector<8x16xf32> to vector<8x16xbf16>
    %559 = arith.truncf %542 : vector<16x8xf32> to vector<16x8xbf16>
    %cst_344 = arith.constant dense<0.000000e+00> : vector<8x8xf32>
    %560 = tpu.matmul %558, %559, %cst_344 {dimension_numbers = #tpu.dot_dimension_numbers<[1], [0], [0], [1], [0, 0, 1, 1], [], []>} : vector<8x16xbf16>, vector<16x8xbf16>, vector<8x8xf32> -> vector<8x8xf32>
    %561 = arith.truncf %560 : vector<8x8xf32> to vector<8x8xbf16>
    %c9_345 = arith.constant 9 : index
    %c0_346 = arith.constant 0 : index
    %c0_347 = arith.constant 0 : index
    %562 = vector.load %arg9[%c9_345, %c0_346, %c0_347] : memref<12x8x32xbf16, #tpu.memory_space<vmem>>, vector<1x8x32xbf16>
    %563 = vector.shape_cast %562 : vector<1x8x32xbf16> to vector<8x32xbf16>
    %cst_348 = arith.constant dense<0.000000e+00> : vector<8x32xf32>
    %564 = tpu.matmul %561, %563, %cst_348 {dimension_numbers = #tpu.dot_dimension_numbers<[1], [0], [0], [1], [0, 0, 1, 1], [], []>} : vector<8x8xbf16>, vector<8x32xbf16>, vector<8x32xf32> -> vector<8x32xf32>
    %565 = arith.addf %521, %564 : vector<8x32xf32>
    %c10 = arith.constant 10 : index
    %c0_349 = arith.constant 0 : index
    %c0_350 = arith.constant 0 : index
    %566 = vector.load %arg6[%c10, %c0_349, %c0_350] : memref<12x32x8xbf16, #tpu.memory_space<vmem>>, vector<1x32x8xbf16>
    %567 = vector.shape_cast %566 : vector<1x32x8xbf16> to vector<32x8xbf16>
    %cst_351 = arith.constant dense<0.000000e+00> : vector<8x8xf32>
    %568 = tpu.matmul %474, %567, %cst_351 {dimension_numbers = #tpu.dot_dimension_numbers<[1], [0], [0], [1], [0, 0, 1, 1], [], []>} : vector<8x32xbf16>, vector<32x8xbf16>, vector<8x8xf32> -> vector<8x8xf32>
    %c10_352 = arith.constant 10 : index
    %c0_353 = arith.constant 0 : index
    %c0_354 = arith.constant 0 : index
    %569 = vector.load %arg10[%c10_352, %c0_353, %c0_354] : memref<12x1x8xf32, #tpu.memory_space<vmem>>, vector<1x1x8xf32>
    %570 = vector.shape_cast %569 : vector<1x1x8xf32> to vector<1x8xf32>
    %571 = vector.broadcast %570 : vector<1x8xf32> to vector<8x8xf32>
    %572 = arith.addf %568, %571 : vector<8x8xf32>
    %c10_355 = arith.constant 10 : index
    %c0_356 = arith.constant 0 : index
    %c0_357 = arith.constant 0 : index
    %573 = vector.load %arg7[%c10_355, %c0_356, %c0_357] : memref<12x32x8xbf16, #tpu.memory_space<vmem>>, vector<1x32x8xbf16>
    %574 = vector.shape_cast %573 : vector<1x32x8xbf16> to vector<32x8xbf16>
    %cst_358 = arith.constant dense<0.000000e+00> : vector<16x8xf32>
    %575 = tpu.matmul %475, %574, %cst_358 {dimension_numbers = #tpu.dot_dimension_numbers<[1], [0], [0], [1], [0, 0, 1, 1], [], []>} : vector<16x32xbf16>, vector<32x8xbf16>, vector<16x8xf32> -> vector<16x8xf32>
    %c10_359 = arith.constant 10 : index
    %c0_360 = arith.constant 0 : index
    %c0_361 = arith.constant 0 : index
    %576 = vector.load %arg11[%c10_359, %c0_360, %c0_361] : memref<12x1x8xf32, #tpu.memory_space<vmem>>, vector<1x1x8xf32>
    %577 = vector.shape_cast %576 : vector<1x1x8xf32> to vector<1x8xf32>
    %578 = vector.broadcast %577 : vector<1x8xf32> to vector<16x8xf32>
    %579 = arith.addf %575, %578 : vector<16x8xf32>
    %c10_362 = arith.constant 10 : index
    %c0_363 = arith.constant 0 : index
    %c0_364 = arith.constant 0 : index
    %580 = vector.load %arg8[%c10_362, %c0_363, %c0_364] : memref<12x32x8xbf16, #tpu.memory_space<vmem>>, vector<1x32x8xbf16>
    %581 = vector.shape_cast %580 : vector<1x32x8xbf16> to vector<32x8xbf16>
    %cst_365 = arith.constant dense<0.000000e+00> : vector<16x8xf32>
    %582 = tpu.matmul %476, %581, %cst_365 {dimension_numbers = #tpu.dot_dimension_numbers<[1], [0], [0], [1], [0, 0, 1, 1], [], []>} : vector<16x32xbf16>, vector<32x8xbf16>, vector<16x8xf32> -> vector<16x8xf32>
    %c10_366 = arith.constant 10 : index
    %c0_367 = arith.constant 0 : index
    %c0_368 = arith.constant 0 : index
    %583 = vector.load %arg12[%c10_366, %c0_367, %c0_368] : memref<12x1x8xf32, #tpu.memory_space<vmem>>, vector<1x1x8xf32>
    %584 = vector.shape_cast %583 : vector<1x1x8xf32> to vector<1x8xf32>
    %585 = vector.broadcast %584 : vector<1x8xf32> to vector<16x8xf32>
    %586 = arith.addf %582, %585 : vector<16x8xf32>
    %587 = arith.truncf %572 : vector<8x8xf32> to vector<8x8xbf16>
    %588 = arith.truncf %579 : vector<16x8xf32> to vector<16x8xbf16>
    %cst_369 = arith.constant dense<0.000000e+00> : vector<8x16xf32>
    %589 = tpu.matmul %587, %588, %cst_369 {dimension_numbers = #tpu.dot_dimension_numbers<[1], [1], [0], [0], [0, 0, 1, 0], [], []>} : vector<8x8xbf16>, vector<16x8xbf16>, vector<8x16xf32> -> vector<8x16xf32>
    %cst_370 = arith.constant 0.353553385 : f32
    %590 = vector.broadcast %cst_370 : f32 to vector<8x16xf32>
    %591 = arith.mulf %589, %590 : vector<8x16xf32>
    %cst_371 = arith.constant dense<0xFF800000> : vector<8xf32>
    %592 = vector.multi_reduction <maximumf>, %591, %cst_371 [1] : vector<8x16xf32> to vector<8xf32>
    %593 = vector.shape_cast %592 : vector<8xf32> to vector<8x1xf32>
    %594 = vector.broadcast %593 : vector<8x1xf32> to vector<8x16xf32>
    %595 = arith.subf %591, %594 : vector<8x16xf32>
    %596 = math.exp %595 : vector<8x16xf32>
    %cst_372 = arith.constant dense<0.000000e+00> : vector<8xf32>
    %597 = vector.multi_reduction <add>, %596, %cst_372 [1] : vector<8x16xf32> to vector<8xf32>
    %598 = vector.shape_cast %597 : vector<8xf32> to vector<8x1xf32>
    %599 = tpu.reciprocal %598 {approx = true} : vector<8x1xf32> -> vector<8x1xf32>
    %600 = vector.broadcast %599 : vector<8x1xf32> to vector<8x16xf32>
    %601 = arith.mulf %596, %600 : vector<8x16xf32>
    %602 = arith.truncf %601 : vector<8x16xf32> to vector<8x16xbf16>
    %603 = arith.truncf %586 : vector<16x8xf32> to vector<16x8xbf16>
    %cst_373 = arith.constant dense<0.000000e+00> : vector<8x8xf32>
    %604 = tpu.matmul %602, %603, %cst_373 {dimension_numbers = #tpu.dot_dimension_numbers<[1], [0], [0], [1], [0, 0, 1, 1], [], []>} : vector<8x16xbf16>, vector<16x8xbf16>, vector<8x8xf32> -> vector<8x8xf32>
    %605 = arith.truncf %604 : vector<8x8xf32> to vector<8x8xbf16>
    %c10_374 = arith.constant 10 : index
    %c0_375 = arith.constant 0 : index
    %c0_376 = arith.constant 0 : index
    %606 = vector.load %arg9[%c10_374, %c0_375, %c0_376] : memref<12x8x32xbf16, #tpu.memory_space<vmem>>, vector<1x8x32xbf16>
    %607 = vector.shape_cast %606 : vector<1x8x32xbf16> to vector<8x32xbf16>
    %cst_377 = arith.constant dense<0.000000e+00> : vector<8x32xf32>
    %608 = tpu.matmul %605, %607, %cst_377 {dimension_numbers = #tpu.dot_dimension_numbers<[1], [0], [0], [1], [0, 0, 1, 1], [], []>} : vector<8x8xbf16>, vector<8x32xbf16>, vector<8x32xf32> -> vector<8x32xf32>
    %609 = arith.addf %565, %608 : vector<8x32xf32>
    %c11 = arith.constant 11 : index
    %c0_378 = arith.constant 0 : index
    %c0_379 = arith.constant 0 : index
    %610 = vector.load %arg6[%c11, %c0_378, %c0_379] : memref<12x32x8xbf16, #tpu.memory_space<vmem>>, vector<1x32x8xbf16>
    %611 = vector.shape_cast %610 : vector<1x32x8xbf16> to vector<32x8xbf16>
    %cst_380 = arith.constant dense<0.000000e+00> : vector<8x8xf32>
    %612 = tpu.matmul %474, %611, %cst_380 {dimension_numbers = #tpu.dot_dimension_numbers<[1], [0], [0], [1], [0, 0, 1, 1], [], []>} : vector<8x32xbf16>, vector<32x8xbf16>, vector<8x8xf32> -> vector<8x8xf32>
    %c11_381 = arith.constant 11 : index
    %c0_382 = arith.constant 0 : index
    %c0_383 = arith.constant 0 : index
    %613 = vector.load %arg10[%c11_381, %c0_382, %c0_383] : memref<12x1x8xf32, #tpu.memory_space<vmem>>, vector<1x1x8xf32>
    %614 = vector.shape_cast %613 : vector<1x1x8xf32> to vector<1x8xf32>
    %615 = vector.broadcast %614 : vector<1x8xf32> to vector<8x8xf32>
    %616 = arith.addf %612, %615 : vector<8x8xf32>
    %c11_384 = arith.constant 11 : index
    %c0_385 = arith.constant 0 : index
    %c0_386 = arith.constant 0 : index
    %617 = vector.load %arg7[%c11_384, %c0_385, %c0_386] : memref<12x32x8xbf16, #tpu.memory_space<vmem>>, vector<1x32x8xbf16>
    %618 = vector.shape_cast %617 : vector<1x32x8xbf16> to vector<32x8xbf16>
    %cst_387 = arith.constant dense<0.000000e+00> : vector<16x8xf32>
    %619 = tpu.matmul %475, %618, %cst_387 {dimension_numbers = #tpu.dot_dimension_numbers<[1], [0], [0], [1], [0, 0, 1, 1], [], []>} : vector<16x32xbf16>, vector<32x8xbf16>, vector<16x8xf32> -> vector<16x8xf32>
    %c11_388 = arith.constant 11 : index
    %c0_389 = arith.constant 0 : index
    %c0_390 = arith.constant 0 : index
    %620 = vector.load %arg11[%c11_388, %c0_389, %c0_390] : memref<12x1x8xf32, #tpu.memory_space<vmem>>, vector<1x1x8xf32>
    %621 = vector.shape_cast %620 : vector<1x1x8xf32> to vector<1x8xf32>
    %622 = vector.broadcast %621 : vector<1x8xf32> to vector<16x8xf32>
    %623 = arith.addf %619, %622 : vector<16x8xf32>
    %c11_391 = arith.constant 11 : index
    %c0_392 = arith.constant 0 : index
    %c0_393 = arith.constant 0 : index
    %624 = vector.load %arg8[%c11_391, %c0_392, %c0_393] : memref<12x32x8xbf16, #tpu.memory_space<vmem>>, vector<1x32x8xbf16>
    %625 = vector.shape_cast %624 : vector<1x32x8xbf16> to vector<32x8xbf16>
    %cst_394 = arith.constant dense<0.000000e+00> : vector<16x8xf32>
    %626 = tpu.matmul %476, %625, %cst_394 {dimension_numbers = #tpu.dot_dimension_numbers<[1], [0], [0], [1], [0, 0, 1, 1], [], []>} : vector<16x32xbf16>, vector<32x8xbf16>, vector<16x8xf32> -> vector<16x8xf32>
    %c11_395 = arith.constant 11 : index
    %c0_396 = arith.constant 0 : index
    %c0_397 = arith.constant 0 : index
    %627 = vector.load %arg12[%c11_395, %c0_396, %c0_397] : memref<12x1x8xf32, #tpu.memory_space<vmem>>, vector<1x1x8xf32>
    %628 = vector.shape_cast %627 : vector<1x1x8xf32> to vector<1x8xf32>
    %629 = vector.broadcast %628 : vector<1x8xf32> to vector<16x8xf32>
    %630 = arith.addf %626, %629 : vector<16x8xf32>
    %631 = arith.truncf %616 : vector<8x8xf32> to vector<8x8xbf16>
    %632 = arith.truncf %623 : vector<16x8xf32> to vector<16x8xbf16>
    %cst_398 = arith.constant dense<0.000000e+00> : vector<8x16xf32>
    %633 = tpu.matmul %631, %632, %cst_398 {dimension_numbers = #tpu.dot_dimension_numbers<[1], [1], [0], [0], [0, 0, 1, 0], [], []>} : vector<8x8xbf16>, vector<16x8xbf16>, vector<8x16xf32> -> vector<8x16xf32>
    %cst_399 = arith.constant 0.353553385 : f32
    %634 = vector.broadcast %cst_399 : f32 to vector<8x16xf32>
    %635 = arith.mulf %633, %634 : vector<8x16xf32>
    %cst_400 = arith.constant dense<0xFF800000> : vector<8xf32>
    %636 = vector.multi_reduction <maximumf>, %635, %cst_400 [1] : vector<8x16xf32> to vector<8xf32>
    %637 = vector.shape_cast %636 : vector<8xf32> to vector<8x1xf32>
    %638 = vector.broadcast %637 : vector<8x1xf32> to vector<8x16xf32>
    %639 = arith.subf %635, %638 : vector<8x16xf32>
    %640 = math.exp %639 : vector<8x16xf32>
    %cst_401 = arith.constant dense<0.000000e+00> : vector<8xf32>
    %641 = vector.multi_reduction <add>, %640, %cst_401 [1] : vector<8x16xf32> to vector<8xf32>
    %642 = vector.shape_cast %641 : vector<8xf32> to vector<8x1xf32>
    %643 = tpu.reciprocal %642 {approx = true} : vector<8x1xf32> -> vector<8x1xf32>
    %644 = vector.broadcast %643 : vector<8x1xf32> to vector<8x16xf32>
    %645 = arith.mulf %640, %644 : vector<8x16xf32>
    %646 = arith.truncf %645 : vector<8x16xf32> to vector<8x16xbf16>
    %647 = arith.truncf %630 : vector<16x8xf32> to vector<16x8xbf16>
    %cst_402 = arith.constant dense<0.000000e+00> : vector<8x8xf32>
    %648 = tpu.matmul %646, %647, %cst_402 {dimension_numbers = #tpu.dot_dimension_numbers<[1], [0], [0], [1], [0, 0, 1, 1], [], []>} : vector<8x16xbf16>, vector<16x8xbf16>, vector<8x8xf32> -> vector<8x8xf32>
    %649 = arith.truncf %648 : vector<8x8xf32> to vector<8x8xbf16>
    %c11_403 = arith.constant 11 : index
    %c0_404 = arith.constant 0 : index
    %c0_405 = arith.constant 0 : index
    %650 = vector.load %arg9[%c11_403, %c0_404, %c0_405] : memref<12x8x32xbf16, #tpu.memory_space<vmem>>, vector<1x8x32xbf16>
    %651 = vector.shape_cast %650 : vector<1x8x32xbf16> to vector<8x32xbf16>
    %cst_406 = arith.constant dense<0.000000e+00> : vector<8x32xf32>
    %652 = tpu.matmul %649, %651, %cst_406 {dimension_numbers = #tpu.dot_dimension_numbers<[1], [0], [0], [1], [0, 0, 1, 1], [], []>} : vector<8x8xbf16>, vector<8x32xbf16>, vector<8x32xf32> -> vector<8x32xf32>
    %653 = arith.addf %609, %652 : vector<8x32xf32>
    %c6_407 = arith.constant 6 : index
    %c0_408 = arith.constant 0 : index
    %654 = vector.load %arg19[%c6_407, %c0_408] : memref<32x128xf32, #tpu.memory_space<vmem>>, vector<1x32xf32>
    %655 = vector.broadcast %654 : vector<1x32xf32> to vector<8x32xf32>
    %656 = arith.addf %653, %655 : vector<8x32xf32>
    %657 = arith.addf %471, %656 : vector<8x32xf32>
    %c19 = arith.constant 19 : index
    %c0_409 = arith.constant 0 : index
    %658 = vector.load %arg19[%c19, %c0_409] : memref<32x128xf32, #tpu.memory_space<vmem>>, vector<1x32xf32>
    %c20 = arith.constant 20 : index
    %c0_410 = arith.constant 0 : index
    %659 = vector.load %arg19[%c20, %c0_410] : memref<32x128xf32, #tpu.memory_space<vmem>>, vector<1x32xf32>
    %cst_411 = arith.constant dense<0.000000e+00> : vector<8xf32>
    %660 = vector.multi_reduction <add>, %657, %cst_411 [1] : vector<8x32xf32> to vector<8xf32>
    %661 = vector.shape_cast %660 : vector<8xf32> to vector<8x1xf32>
    %cst_412 = arith.constant 3.200000e+01 : f32
    %662 = vector.broadcast %cst_412 : f32 to vector<8x1xf32>
    %663 = arith.divf %661, %662 : vector<8x1xf32>
    %664 = vector.broadcast %663 : vector<8x1xf32> to vector<8x32xf32>
    %665 = arith.subf %657, %664 : vector<8x32xf32>
    %666 = arith.mulf %665, %665 : vector<8x32xf32>
    %cst_413 = arith.constant dense<0.000000e+00> : vector<8xf32>
    %667 = vector.multi_reduction <add>, %666, %cst_413 [1] : vector<8x32xf32> to vector<8xf32>
    %668 = vector.shape_cast %667 : vector<8xf32> to vector<8x1xf32>
    %cst_414 = arith.constant 3.200000e+01 : f32
    %669 = vector.broadcast %cst_414 : f32 to vector<8x1xf32>
    %670 = arith.divf %668, %669 : vector<8x1xf32>
    %cst_415 = arith.constant 9.99999974E-6 : f32
    %671 = vector.broadcast %cst_415 : f32 to vector<8x1xf32>
    %672 = arith.addf %670, %671 : vector<8x1xf32>
    %673 = math.rsqrt %672 : vector<8x1xf32>
    %674 = vector.broadcast %673 : vector<8x1xf32> to vector<8x32xf32>
    %675 = arith.mulf %665, %674 : vector<8x32xf32>
    %676 = vector.broadcast %658 : vector<1x32xf32> to vector<8x32xf32>
    %677 = arith.mulf %675, %676 : vector<8x32xf32>
    %678 = vector.broadcast %659 : vector<1x32xf32> to vector<8x32xf32>
    %679 = arith.addf %677, %678 : vector<8x32xf32>
    %c1_416 = arith.constant 1 : index
    %c0_417 = arith.constant 0 : index
    %c0_418 = arith.constant 0 : index
    %680 = vector.load %arg13[%c1_416, %c0_417, %c0_418] : memref<2x32x64xbf16, #tpu.memory_space<vmem>>, vector<1x32x64xbf16>
    %681 = vector.shape_cast %680 : vector<1x32x64xbf16> to vector<32x64xbf16>
    %682 = arith.truncf %679 : vector<8x32xf32> to vector<8x32xbf16>
    %cst_419 = arith.constant dense<0.000000e+00> : vector<8x64xf32>
    %683 = tpu.matmul %682, %681, %cst_419 {dimension_numbers = #tpu.dot_dimension_numbers<[1], [0], [0], [1], [0, 0, 1, 1], [], []>} : vector<8x32xbf16>, vector<32x64xbf16>, vector<8x64xf32> -> vector<8x64xf32>
    %c7_420 = arith.constant 7 : index
    %c0_421 = arith.constant 0 : index
    %684 = vector.load %arg19[%c7_420, %c0_421] : memref<32x128xf32, #tpu.memory_space<vmem>>, vector<1x64xf32>
    %685 = vector.broadcast %684 : vector<1x64xf32> to vector<8x64xf32>
    %686 = arith.addf %683, %685 : vector<8x64xf32>
    %cst_422 = arith.constant 0.000000e+00 : f32
    %687 = vector.broadcast %cst_422 : f32 to vector<8x64xf32>
    %688 = arith.maximumf %686, %687 : vector<8x64xf32>
    %c1_423 = arith.constant 1 : index
    %c0_424 = arith.constant 0 : index
    %c0_425 = arith.constant 0 : index
    %689 = vector.load %arg14[%c1_423, %c0_424, %c0_425] : memref<2x64x32xbf16, #tpu.memory_space<vmem>>, vector<1x64x32xbf16>
    %690 = vector.shape_cast %689 : vector<1x64x32xbf16> to vector<64x32xbf16>
    %691 = arith.truncf %688 : vector<8x64xf32> to vector<8x64xbf16>
    %cst_426 = arith.constant dense<0.000000e+00> : vector<8x32xf32>
    %692 = tpu.matmul %691, %690, %cst_426 {dimension_numbers = #tpu.dot_dimension_numbers<[1], [0], [0], [1], [0, 0, 1, 1], [], []>} : vector<8x64xbf16>, vector<64x32xbf16>, vector<8x32xf32> -> vector<8x32xf32>
    %c8_427 = arith.constant 8 : index
    %c0_428 = arith.constant 0 : index
    %693 = vector.load %arg19[%c8_427, %c0_428] : memref<32x128xf32, #tpu.memory_space<vmem>>, vector<1x32xf32>
    %694 = vector.broadcast %693 : vector<1x32xf32> to vector<8x32xf32>
    %695 = arith.addf %692, %694 : vector<8x32xf32>
    %696 = arith.addf %679, %695 : vector<8x32xf32>
    %c21 = arith.constant 21 : index
    %c0_429 = arith.constant 0 : index
    %697 = vector.load %arg19[%c21, %c0_429] : memref<32x128xf32, #tpu.memory_space<vmem>>, vector<1x32xf32>
    %c22 = arith.constant 22 : index
    %c0_430 = arith.constant 0 : index
    %698 = vector.load %arg19[%c22, %c0_430] : memref<32x128xf32, #tpu.memory_space<vmem>>, vector<1x32xf32>
    %cst_431 = arith.constant dense<0.000000e+00> : vector<8xf32>
    %699 = vector.multi_reduction <add>, %696, %cst_431 [1] : vector<8x32xf32> to vector<8xf32>
    %700 = vector.shape_cast %699 : vector<8xf32> to vector<8x1xf32>
    %cst_432 = arith.constant 3.200000e+01 : f32
    %701 = vector.broadcast %cst_432 : f32 to vector<8x1xf32>
    %702 = arith.divf %700, %701 : vector<8x1xf32>
    %703 = vector.broadcast %702 : vector<8x1xf32> to vector<8x32xf32>
    %704 = arith.subf %696, %703 : vector<8x32xf32>
    %705 = arith.mulf %704, %704 : vector<8x32xf32>
    %cst_433 = arith.constant dense<0.000000e+00> : vector<8xf32>
    %706 = vector.multi_reduction <add>, %705, %cst_433 [1] : vector<8x32xf32> to vector<8xf32>
    %707 = vector.shape_cast %706 : vector<8xf32> to vector<8x1xf32>
    %cst_434 = arith.constant 3.200000e+01 : f32
    %708 = vector.broadcast %cst_434 : f32 to vector<8x1xf32>
    %709 = arith.divf %707, %708 : vector<8x1xf32>
    %cst_435 = arith.constant 9.99999974E-6 : f32
    %710 = vector.broadcast %cst_435 : f32 to vector<8x1xf32>
    %711 = arith.addf %709, %710 : vector<8x1xf32>
    %712 = math.rsqrt %711 : vector<8x1xf32>
    %713 = vector.broadcast %712 : vector<8x1xf32> to vector<8x32xf32>
    %714 = arith.mulf %704, %713 : vector<8x32xf32>
    %715 = vector.broadcast %697 : vector<1x32xf32> to vector<8x32xf32>
    %716 = arith.mulf %714, %715 : vector<8x32xf32>
    %717 = vector.broadcast %698 : vector<1x32xf32> to vector<8x32xf32>
    %718 = arith.addf %716, %717 : vector<8x32xf32>
    %c23 = arith.constant 23 : index
    %c0_436 = arith.constant 0 : index
    %719 = vector.load %arg19[%c23, %c0_436] : memref<32x128xf32, #tpu.memory_space<vmem>>, vector<1x32xf32>
    %c24 = arith.constant 24 : index
    %c0_437 = arith.constant 0 : index
    %720 = vector.load %arg19[%c24, %c0_437] : memref<32x128xf32, #tpu.memory_space<vmem>>, vector<1x32xf32>
    %cst_438 = arith.constant dense<0.000000e+00> : vector<8xf32>
    %721 = vector.multi_reduction <add>, %718, %cst_438 [1] : vector<8x32xf32> to vector<8xf32>
    %722 = vector.shape_cast %721 : vector<8xf32> to vector<8x1xf32>
    %cst_439 = arith.constant 3.200000e+01 : f32
    %723 = vector.broadcast %cst_439 : f32 to vector<8x1xf32>
    %724 = arith.divf %722, %723 : vector<8x1xf32>
    %725 = vector.broadcast %724 : vector<8x1xf32> to vector<8x32xf32>
    %726 = arith.subf %718, %725 : vector<8x32xf32>
    %727 = arith.mulf %726, %726 : vector<8x32xf32>
    %cst_440 = arith.constant dense<0.000000e+00> : vector<8xf32>
    %728 = vector.multi_reduction <add>, %727, %cst_440 [1] : vector<8x32xf32> to vector<8xf32>
    %729 = vector.shape_cast %728 : vector<8xf32> to vector<8x1xf32>
    %cst_441 = arith.constant 3.200000e+01 : f32
    %730 = vector.broadcast %cst_441 : f32 to vector<8x1xf32>
    %731 = arith.divf %729, %730 : vector<8x1xf32>
    %cst_442 = arith.constant 9.99999974E-6 : f32
    %732 = vector.broadcast %cst_442 : f32 to vector<8x1xf32>
    %733 = arith.addf %731, %732 : vector<8x1xf32>
    %734 = math.rsqrt %733 : vector<8x1xf32>
    %735 = vector.broadcast %734 : vector<8x1xf32> to vector<8x32xf32>
    %736 = arith.mulf %726, %735 : vector<8x32xf32>
    %737 = vector.broadcast %719 : vector<1x32xf32> to vector<8x32xf32>
    %738 = arith.mulf %736, %737 : vector<8x32xf32>
    %739 = vector.broadcast %720 : vector<1x32xf32> to vector<8x32xf32>
    %740 = arith.addf %738, %739 : vector<8x32xf32>
    %c0_443 = arith.constant 0 : index
    %c0_444 = arith.constant 0 : index
    %741 = vector.load %arg15[%c0_443, %c0_444] : memref<32x15xbf16, #tpu.memory_space<vmem>>, vector<32x15xbf16>
    %742 = arith.truncf %740 : vector<8x32xf32> to vector<8x32xbf16>
    %cst_445 = arith.constant dense<0.000000e+00> : vector<8x15xf32>
    %743 = tpu.matmul %742, %741, %cst_445 {dimension_numbers = #tpu.dot_dimension_numbers<[1], [0], [0], [1], [0, 0, 1, 1], [], []>} : vector<8x32xbf16>, vector<32x15xbf16>, vector<8x15xf32> -> vector<8x15xf32>
    %c9_446 = arith.constant 9 : index
    %c0_447 = arith.constant 0 : index
    %744 = vector.load %arg19[%c9_446, %c0_447] : memref<32x128xf32, #tpu.memory_space<vmem>>, vector<1x15xf32>
    %745 = vector.broadcast %744 : vector<1x15xf32> to vector<8x15xf32>
    %746 = arith.addf %743, %745 : vector<8x15xf32>
    %c0_448 = arith.constant 0 : index
    %c0_449 = arith.constant 0 : index
    %747 = vector.load %arg16[%c0_448, %c0_449] : memref<32x32xbf16, #tpu.memory_space<vmem>>, vector<32x32xbf16>
    %748 = arith.truncf %740 : vector<8x32xf32> to vector<8x32xbf16>
    %cst_450 = arith.constant dense<0.000000e+00> : vector<8x32xf32>
    %749 = tpu.matmul %748, %747, %cst_450 {dimension_numbers = #tpu.dot_dimension_numbers<[1], [0], [0], [1], [0, 0, 1, 1], [], []>} : vector<8x32xbf16>, vector<32x32xbf16>, vector<8x32xf32> -> vector<8x32xf32>
    %c10_451 = arith.constant 10 : index
    %c0_452 = arith.constant 0 : index
    %750 = vector.load %arg19[%c10_451, %c0_452] : memref<32x128xf32, #tpu.memory_space<vmem>>, vector<1x32xf32>
    %751 = vector.broadcast %750 : vector<1x32xf32> to vector<8x32xf32>
    %752 = arith.addf %749, %751 : vector<8x32xf32>
    %cst_453 = arith.constant 0.000000e+00 : f32
    %753 = vector.broadcast %cst_453 : f32 to vector<8x32xf32>
    %754 = arith.maximumf %752, %753 : vector<8x32xf32>
    %c0_454 = arith.constant 0 : index
    %c0_455 = arith.constant 0 : index
    %755 = vector.load %arg17[%c0_454, %c0_455] : memref<32x32xbf16, #tpu.memory_space<vmem>>, vector<32x32xbf16>
    %756 = arith.truncf %754 : vector<8x32xf32> to vector<8x32xbf16>
    %cst_456 = arith.constant dense<0.000000e+00> : vector<8x32xf32>
    %757 = tpu.matmul %756, %755, %cst_456 {dimension_numbers = #tpu.dot_dimension_numbers<[1], [0], [0], [1], [0, 0, 1, 1], [], []>} : vector<8x32xbf16>, vector<32x32xbf16>, vector<8x32xf32> -> vector<8x32xf32>
    %c11_457 = arith.constant 11 : index
    %c0_458 = arith.constant 0 : index
    %758 = vector.load %arg19[%c11_457, %c0_458] : memref<32x128xf32, #tpu.memory_space<vmem>>, vector<1x32xf32>
    %759 = vector.broadcast %758 : vector<1x32xf32> to vector<8x32xf32>
    %760 = arith.addf %757, %759 : vector<8x32xf32>
    %cst_459 = arith.constant 0.000000e+00 : f32
    %761 = vector.broadcast %cst_459 : f32 to vector<8x32xf32>
    %762 = arith.maximumf %760, %761 : vector<8x32xf32>
    %c0_460 = arith.constant 0 : index
    %c0_461 = arith.constant 0 : index
    %763 = vector.load %arg18[%c0_460, %c0_461] : memref<32x4xbf16, #tpu.memory_space<vmem>>, vector<32x4xbf16>
    %764 = arith.truncf %762 : vector<8x32xf32> to vector<8x32xbf16>
    %cst_462 = arith.constant dense<0.000000e+00> : vector<8x4xf32>
    %765 = tpu.matmul %764, %763, %cst_462 {dimension_numbers = #tpu.dot_dimension_numbers<[1], [0], [0], [1], [0, 0, 1, 1], [], []>} : vector<8x32xbf16>, vector<32x4xbf16>, vector<8x4xf32> -> vector<8x4xf32>
    %c12 = arith.constant 12 : index
    %c0_463 = arith.constant 0 : index
    %766 = vector.load %arg19[%c12, %c0_463] : memref<32x128xf32, #tpu.memory_space<vmem>>, vector<1x4xf32>
    %767 = vector.broadcast %766 : vector<1x4xf32> to vector<8x4xf32>
    %768 = arith.addf %765, %767 : vector<8x4xf32>
    %cst_464 = arith.constant 0.000000e+00 : f32
    %769 = vector.broadcast %cst_464 : f32 to vector<8x4xf32>
    %770 = arith.subf %769, %768 : vector<8x4xf32>
    %771 = math.exp %770 : vector<8x4xf32>
    %cst_465 = arith.constant 1.000000e+00 : f32
    %772 = vector.broadcast %cst_465 : f32 to vector<8x4xf32>
    %773 = arith.addf %772, %771 : vector<8x4xf32>
    %cst_466 = arith.constant 1.000000e+00 : f32
    %774 = vector.broadcast %cst_466 : f32 to vector<8x4xf32>
    %775 = arith.divf %774, %773 : vector<8x4xf32>
    %cst_467 = arith.constant 0.000000e+00 : f32
    %776 = vector.broadcast %cst_467 : f32 to vector<8x109xf32>
    %777 = tpu.concatenate %746, %775, %776 in 1 : vector<8x15xf32>, vector<8x4xf32>, vector<8x109xf32> -> vector<8x128xf32>
    %c0_468 = arith.constant 0 : index
    %c0_469 = arith.constant 0 : index
    %c0_470 = arith.constant 0 : index
    %778 = vector.load %arg20[%c0_468, %c0_469, %c0_470] : memref<1x8x128xf32, #tpu.memory_space<vmem>>, vector<1x8x128xf32>
    %779 = vector.shape_cast %778 : vector<1x8x128xf32> to vector<8x128xf32>
    %780 = vector.shape_cast %777 : vector<8x128xf32> to vector<1x8x128xf32>
    tpu.vector_store %arg20[%c0_468, %c0_469, %c0_470], %780 {strides = array<i32>} : memref<1x8x128xf32, #tpu.memory_space<vmem>>, vector<1x8x128xf32>,
    return
  }
  func.func @transform_0(%arg0: i32) -> (i32, i32, i32) {
    %c0_i32 = arith.constant 0 : i32
    %c0_i32_0 = arith.constant 0 : i32
    %c0_i32_1 = arith.constant 0 : i32
    return %arg0, %c0_i32, %c0_i32_0 : i32, i32, i32
  }
  func.func @transform_1(%arg0: i32) -> (i32, i32) {
    %c0_i32 = arith.constant 0 : i32
    %c0_i32_0 = arith.constant 0 : i32
    %c0_i32_1 = arith.constant 0 : i32
    return %c0_i32, %c0_i32_0 : i32, i32
  }
  func.func @transform_2(%arg0: i32) -> (i32, i32) {
    %c0_i32 = arith.constant 0 : i32
    %c0_i32_0 = arith.constant 0 : i32
    %c0_i32_1 = arith.constant 0 : i32
    return %c0_i32, %c0_i32_0 : i32, i32
  }
  func.func @transform_3(%arg0: i32) -> (i32, i32) {
    %c0_i32 = arith.constant 0 : i32
    %c0_i32_0 = arith.constant 0 : i32
    %c0_i32_1 = arith.constant 0 : i32
    return %c0_i32, %c0_i32_0 : i32, i32
  }
  func.func @transform_4(%arg0: i32) -> (i32, i32) {
    %c0_i32 = arith.constant 0 : i32
    %c0_i32_0 = arith.constant 0 : i32
    %c0_i32_1 = arith.constant 0 : i32
    return %c0_i32, %c0_i32_0 : i32, i32
  }
  func.func @transform_5(%arg0: i32) -> (i32, i32, i32) {
    %c0_i32 = arith.constant 0 : i32
    %c0_i32_0 = arith.constant 0 : i32
    %c0_i32_1 = arith.constant 0 : i32
    %c0_i32_2 = arith.constant 0 : i32
    return %c0_i32, %c0_i32_0, %c0_i32_1 : i32, i32, i32
  }
  func.func @transform_6(%arg0: i32) -> (i32, i32, i32) {
    %c0_i32 = arith.constant 0 : i32
    %c0_i32_0 = arith.constant 0 : i32
    %c0_i32_1 = arith.constant 0 : i32
    %c0_i32_2 = arith.constant 0 : i32
    return %c0_i32, %c0_i32_0, %c0_i32_1 : i32, i32, i32
  }
  func.func @transform_7(%arg0: i32) -> (i32, i32, i32) {
    %c0_i32 = arith.constant 0 : i32
    %c0_i32_0 = arith.constant 0 : i32
    %c0_i32_1 = arith.constant 0 : i32
    %c0_i32_2 = arith.constant 0 : i32
    return %c0_i32, %c0_i32_0, %c0_i32_1 : i32, i32, i32
  }
  func.func @transform_8(%arg0: i32) -> (i32, i32, i32) {
    %c0_i32 = arith.constant 0 : i32
    %c0_i32_0 = arith.constant 0 : i32
    %c0_i32_1 = arith.constant 0 : i32
    %c0_i32_2 = arith.constant 0 : i32
    return %c0_i32, %c0_i32_0, %c0_i32_1 : i32, i32, i32
  }
  func.func @transform_9(%arg0: i32) -> (i32, i32, i32) {
    %c0_i32 = arith.constant 0 : i32
    %c0_i32_0 = arith.constant 0 : i32
    %c0_i32_1 = arith.constant 0 : i32
    %c0_i32_2 = arith.constant 0 : i32
    return %c0_i32, %c0_i32_0, %c0_i32_1 : i32, i32, i32
  }
  func.func @transform_10(%arg0: i32) -> (i32, i32, i32) {
    %c0_i32 = arith.constant 0 : i32
    %c0_i32_0 = arith.constant 0 : i32
    %c0_i32_1 = arith.constant 0 : i32
    %c0_i32_2 = arith.constant 0 : i32
    return %c0_i32, %c0_i32_0, %c0_i32_1 : i32, i32, i32
  }
  func.func @transform_11(%arg0: i32) -> (i32, i32, i32) {
    %c0_i32 = arith.constant 0 : i32
    %c0_i32_0 = arith.constant 0 : i32
    %c0_i32_1 = arith.constant 0 : i32
    %c0_i32_2 = arith.constant 0 : i32
    return %c0_i32, %c0_i32_0, %c0_i32_1 : i32, i32, i32
  }
  func.func @transform_12(%arg0: i32) -> (i32, i32, i32) {
    %c0_i32 = arith.constant 0 : i32
    %c0_i32_0 = arith.constant 0 : i32
    %c0_i32_1 = arith.constant 0 : i32
    %c0_i32_2 = arith.constant 0 : i32
    return %c0_i32, %c0_i32_0, %c0_i32_1 : i32, i32, i32
  }
  func.func @transform_13(%arg0: i32) -> (i32, i32, i32) {
    %c0_i32 = arith.constant 0 : i32
    %c0_i32_0 = arith.constant 0 : i32
    %c0_i32_1 = arith.constant 0 : i32
    %c0_i32_2 = arith.constant 0 : i32
    return %c0_i32, %c0_i32_0, %c0_i32_1 : i32, i32, i32
  }
  func.func @transform_14(%arg0: i32) -> (i32, i32) {
    %c0_i32 = arith.constant 0 : i32
    %c0_i32_0 = arith.constant 0 : i32
    %c0_i32_1 = arith.constant 0 : i32
    return %c0_i32, %c0_i32_0 : i32, i32
  }
  func.func @transform_15(%arg0: i32) -> (i32, i32) {
    %c0_i32 = arith.constant 0 : i32
    %c0_i32_0 = arith.constant 0 : i32
    %c0_i32_1 = arith.constant 0 : i32
    return %c0_i32, %c0_i32_0 : i32, i32
  }
  func.func @transform_16(%arg0: i32) -> (i32, i32) {
    %c0_i32 = arith.constant 0 : i32
    %c0_i32_0 = arith.constant 0 : i32
    %c0_i32_1 = arith.constant 0 : i32
    return %c0_i32, %c0_i32_0 : i32, i32
  }
  func.func @transform_17(%arg0: i32) -> (i32, i32) {
    %c0_i32 = arith.constant 0 : i32
    %c0_i32_0 = arith.constant 0 : i32
    %c0_i32_1 = arith.constant 0 : i32
    return %c0_i32, %c0_i32_0 : i32, i32
  }
  func.func @transform_18(%arg0: i32) -> (i32, i32) {
    %c0_i32 = arith.constant 0 : i32
    %c0_i32_0 = arith.constant 0 : i32
    %c0_i32_1 = arith.constant 0 : i32
    return %c0_i32, %c0_i32_0 : i32, i32
  }
  func.func @transform_19(%arg0: i32) -> (i32, i32, i32) {
    %c0_i32 = arith.constant 0 : i32
    %c0_i32_0 = arith.constant 0 : i32
    %c0_i32_1 = arith.constant 0 : i32
    return %arg0, %c0_i32, %c0_i32_0 : i32, i32, i32
  }
}

</mosaic_0001>

<bundles_post_ra>
// kernel: detr_forward.1
= control target key start
LH: loop header
LB: loop body
LE: loop exit
PB: predicated region body
PF: predicated region fallthrough
CT: control target
= control target key end

     0   :  { %s8725_s0 = inlined_call_operand.vmem [shape: f32[2,16,192], index: 0, kind: input, shape index: {}]   ;;  %s8726_s1 = inlined_call_operand.vmem [shape: f32[16,32], index: 1, kind: input, shape index: {}]   ;;  %s8727_s2 = inlined_call_operand.vmem [shape: f32[8,32], index: 2, kind: input, shape index: {}]   ;;  %s8728_s3 = inlined_call_operand.vmem [shape: bf16[192,64], index: 3, kind: input, shape index: {}]   ;;  %s8729_s4 = inlined_call_operand.vmem [shape: bf16[64,32], index: 4, kind: input, shape index: {}]   ;;  %s8730_s5 = inlined_call_operand.vmem [shape: bf16[12,32,8], index: 5, kind: input, shape index: {}]   ;;  %s8731_s6 = inlined_call_operand.vmem [shape: bf16[12,32,8], index: 6, kind: input, shape index: {}]   ;;  %s8732_s7 = inlined_call_operand.vmem [shape: bf16[12,32,8], index: 7, kind: input, shape index: {}]   ;;  %s8733_s8 = inlined_call_operand.vmem [shape: bf16[12,8,32], index: 8, kind: input, shape index: {}]   ;;  %s8734_s9 = inlined_call_operand.vmem [shape: f32[12,1,8], index: 9, kind: input, shape index: {}]   ;;  %s8735_s10 = inlined_call_operand.vmem [shape: f32[12,1,8], index: 10, kind: input, shape index: {}]   ;;  %s8736_s11 = inlined_call_operand.vmem [shape: f32[12,1,8], index: 11, kind: input, shape index: {}]   ;;  %s8737_s12 = inlined_call_operand.vmem [shape: bf16[2,32,64], index: 12, kind: input, shape index: {}]   ;;  %s8738_s13 = inlined_call_operand.vmem [shape: bf16[2,64,32], index: 13, kind: input, shape index: {}]   ;;  %s8739_s14 = inlined_call_operand.vmem [shape: bf16[32,15], index: 14, kind: input, shape index: {}]   ;;  %s8740_s15 = inlined_call_operand.vmem [shape: bf16[32,32], index: 15, kind: input, shape index: {}]   ;;  %s8741_s16 = inlined_call_operand.vmem [shape: bf16[32,32], index: 16, kind: input, shape index: {}]   ;;  %s8742_s17 = inlined_call_operand.vmem [shape: bf16[32,4], index: 17, kind: input, shape index: {}]   ;;  %s8743_s18 = inlined_call_operand.vmem [shape: f32[32,128], index: 18, kind: input, shape index: {}]   ;;  %s8744_s19 = inlined_call_operand.vmem [shape: f32[2,8,128], index: 19, kind: output, shape index: {}]  }
   0x1   :  { %8747 = sst [smem:[#allocation2_spill]] %s8725_s0  ;;  %s7556_s0 = smov 0  }
   0x2   :  { %8748 = sst [smem:[#allocation3_spill]] %s8726_s1 }
   0x3   :  { %8749 = sst [smem:[#allocation4_spill]] %s8727_s2 }
   0x4   :  { %8750 = sst [smem:[#allocation5_spill]] %s8728_s3 }
   0x5 LB: > { %s5991_s30 = sadd.s32 4294967295, %s7450_s0   ;;  %p5995_p0 = scmp.ge.s32.totalorder %s7450_s0, 1  ;;  %s7450_s0 = sphi %s7556_s0, %s29_s0  }
   0x6   : > { %p537_p1 = scmp.lt.s32.totalorder %s7450_s0, 3 }
   0x8   : > { %p538_p2 = pnand %p5995_p0, %p537_p1 }
   0x9   : > { %s8751_s1 = sld [smem:[#allocation5_spill]] (!%p538_p2)  ;;  %v7452_v1 = vmov (!%p538_p2), 0   ;;  %p592_p3 = scmp.lt.s32.totalorder (!%p538_p2), %s5991_s30, 1  ;;  %v7453_v3 = vmov (!%p538_p2), 0.0   ;;  %vm712_vm0 = vcmask (!%p538_p2), 523264   ;;  %v7262_v10 = vld [vmem:[%s8729_s4] sm:$0xff] (!%p538_p2)  }
   0xa   : > { %541 = sbr.rel (%p538_p2) target bundleno = 15036 (0x3abc), region = 96  ;;  %716 = vmatprep.subr.bf16.mxu0 (!%p538_p2), %v7452_v1  ;;  %6650 = vmatprep.subr.bf16.mxu1 (!%p538_p2), %v7453_v3  ;;  %s8752_s27 = sld [smem:[#allocation2_spill]] (!%p538_p2)  ;;  %v7263_v11 = vld [vmem:[%s8729_s4 + $0x8] sm:$0xff] (!%p538_p2)   ;;  %v7264_v22 = vld [vmem:[%s8729_s4 + $0x10] sm:$0xff] (!%p538_p2)   ;;  %v7265_v23 = vld [vmem:[%s8729_s4 + $0x18] sm:$0xff] (!%p538_p2)   ;;  %vm7454_vm1 = vmmov (!%p538_p2), 0  }
   0xb   : > { %6651 = vmatpush3.bf16.msra.mxu1 (!%p538_p2), %v7262_v10  ;;  %6658 = vmatprep.mubr.msk.bf16.mxu1 (!%p538_p2), %vm7454_vm1, %v7453_v3  ;;  %v5999_v24 = vld [vmem:[%s8743_s18] ss:$0 sm:$0xff] (!%p538_p2)  ;;  %v7267_v35 = vld [vmem:[%s8730_s5 + $0x8] sm:$0xff] (!%p538_p2)   ;;  %v6013_v36 = vld [vmem:[%s8743_s18 + $0x1] ss:$0 sm:$0xff] (!%p538_p2)  ;;  %s8753_s21 = sld [smem:[#allocation3_spill]] (!%p538_p2) }
   0xc   : > { %6652 = vmatprep.subr.bf16.mxu1 (!%p538_p2), %v7453_v3  ;;  %v7266_v34 = vld [vmem:[%s8730_s5] sm:$0xff] (!%p538_p2)   ;;  %vm868_vm2 = vcmask (!%p538_p2), 261120   ;;  %v7269_v49 = vld [vmem:[%s8731_s6 + $0x8] sm:$0xff] (!%p538_p2)   ;;  %vm1046_vm3 = vcmask (!%p538_p2), 64512   ;;  %vm1096_vm4 = vcmask (!%p538_p2), 130048   ;;  %vm1490_vm5 = vcmask (!%p538_p2), 1043456  }
   0xd   : > { %v7268_v47 = vld [vmem:[%s8731_s6] sm:$0xff] (!%p538_p2)   ;;  %v7271_v51 = vld [vmem:[%s8732_s7 + $0x8] sm:$0xff] (!%p538_p2)   ;;  %s8754_s20 = sld [smem:[#allocation4_spill]] (!%p538_p2)  ;;  %vm5933_vm6 = vcmask (!%p538_p2), 121856   ;;  %vm5935_vm7 = vcmask (!%p538_p2), 154624  }
   0xe   : > { %v7270_v50 = vld [vmem:[%s8732_s7] sm:$0xff] (!%p538_p2)  }
   0xf   : > { %v7250_v0 = vld [vmem:[%s8751_s1] sm:$0xff] (!%p538_p2)   ;;  %v7251_v2 = vld [vmem:[%s8751_s1 + $0x8] sm:$0xff] (!%p538_p2)   ;;  %v7252_v4 = vld [vmem:[%s8751_s1 + $0x10] sm:$0xff] (!%p538_p2)   ;;  %6653 = vmatpush3.bf16.msra.mxu1 (!%p538_p2), %v7263_v11 }
  0x10   : > { %717 = vmatpush1.bf16.msra.mxu0 (!%p538_p2), %v7250_v0  ;;  %v7253_v5 = vld [vmem:[%s8751_s1 + $0x18] sm:$0xff] (!%p538_p2)   ;;  %v7254_v8 = vld [vmem:[%s8751_s1 + $0x20] sm:$0xff] (!%p538_p2)   ;;  %v7255_v12 = vld [vmem:[%s8751_s1 + $0x28] sm:$0xff] (!%p538_p2)   ;;  %6654 = vmatprep.subr.bf16.mxu1 (!%p538_p2), %v7453_v3 }
  0x11   : > { %718 = vmatprep.subr.bf16.mxu0 %v7452_v1  ;;  %s8756_s30 = smov (!%p592_p3, %s5991_s30), 1  ;;  %v7256_v13 = vld [vmem:[%s8751_s1 + $0x30] sm:$0xff]   ;;  %v7257_v14 = vld [vmem:[%s8751_s1 + $0x38] sm:$0xff]   ;;  %v7258_v15 = vld [vmem:[%s8751_s1 + $0x40] sm:$0xff]  }
  0x12   : > { %s6436_s25 = sshll.u32 %s8756_s30, 5  ;;  %v7259_v16 = vld [vmem:[%s8751_s1 + $0x48] sm:$0xff]   ;;  %v7260_v17 = vld [vmem:[%s8751_s1 + $0x50] sm:$0xff]   ;;  %v7261_v18 = vld [vmem:[%s8751_s1 + $0x58] sm:$0xff]   ;;  %s5998_s2 = sshll.u32 %s8756_s30, 3 }
  0x13   : > { %s7583_s28 = scalar_lea.vmem %s8752_s27, %s6436_s25  ;;  %6655 = vmatpush3.bf16.msra.mxu1 %v7264_v22  ;;  %v606_v40 = vld [vmem:[%s8753_s21] sm:$0xff]  ;;  %v607_v41 = vld [vmem:[%s8753_s21 + $0x8] sm:$0xff]  ;;  %s600_s25 = scalar_lea.vmem %s8744_s19, %s5998_s2 }
  0x14   : > { %719 = vmatpush1.bf16.msra.mxu0 %v7251_v2  ;;  %v603_v6 = vld [vmem:[%s7583_s28 + $0x8] sm:$0xff]  ;;  %v605_v7 = vld [vmem:[%s7583_s28 + $0x18] sm:$0xff]  ;;  %v602_v19 = vld [vmem:[%s7583_s28] sm:$0xff]  ;;  %6656 = vmatprep.subr.bf16.mxu1 %v7453_v3 }
  0x15   : > { %720 = vmatprep.subr.bf16.mxu0 %v7452_v1  ;;  %v634_v9 = vpack.c.bf16 %v605_v7, %v603_v6  ;;  %v604_v20 = vld [vmem:[%s7583_s28 + $0x10] sm:$0xff]  ;;  %v6019_v53 = vld [vmem:[%s8734_s9] ss:$0 sm:$0xff] }
  0x16   : > { %v633_v21 = vpack.c.bf16 %v604_v20, %v602_v19  ;;  %v6023_v61 = vld [vmem:[%s8735_s10] ss:$0 sm:$0xff]  ;;  %v7275_v19 = vld [vmem:[%s8732_s7 + $0x18] sm:$0xff]  }
  0x17   : > { %6012 = vmatprep.mubr.msk.bf16.mxu0 %vm712_vm0, %v634_v9  ;;  %6657 = vmatpush3.bf16.msra.mxu1 %v7265_v23 }
  0x18   : > { %721 = vmatpush1.bf16.msra.mxu0 %v7252_v4  ;;  %6662 = vmatprep.subr.bf16.mxu1 %v7453_v3 }
  0x19   : > { %722 = vmatprep.subr.bf16.mxu0 %v7452_v1 }
  0x1c   : > { %723 = vmatpush1.bf16.msra.mxu0 %v7253_v5 }
  0x1d   : > { %724 = vmatprep.subr.bf16.mxu0 %v7452_v1 }
  0x20   : > { %725 = vmatpush1.bf16.msra.mxu0 %v7254_v8  ;;  %v6027_v8 = vld [vmem:[%s8736_s11] ss:$0 sm:$0xff] }
  0x21   : > { %726 = vmatprep.subr.bf16.mxu0 %v7452_v1 }
  0x24   : > { %727 = vmatpush1.bf16.msra.mxu0 %v7255_v12 }
  0x25   : > { %728 = vmatprep.subr.bf16.mxu0 %v7452_v1 }
  0x28   : > { %729 = vmatpush1.bf16.msra.mxu0 %v7256_v13 }
  0x29   : > { %730 = vmatprep.subr.bf16.mxu0 %v7452_v1 }
  0x2c   : > { %731 = vmatpush1.bf16.msra.mxu0 %v7257_v14 }
  0x2d   : > { %732 = vmatprep.subr.bf16.mxu0 %v7452_v1 }
  0x30   : > { %733 = vmatpush1.bf16.msra.mxu0 %v7258_v15  ;;  %v7272_v15 = vld [vmem:[%s8730_s5 + $0x10] sm:$0xff]  }
  0x31   : > { %734 = vmatprep.subr.bf16.mxu0 %v7452_v1 }
  0x34   : > { %735 = vmatpush1.bf16.msra.mxu0 %v7259_v16 }
  0x35   : > { %736 = vmatprep.subr.bf16.mxu0 %v7452_v1 }
  0x38   : > { %737 = vmatpush1.bf16.msra.mxu0 %v7260_v17  ;;  %v7273_v17 = vld [vmem:[%s8730_s5 + $0x18] sm:$0xff]  }
  0x39   : > { %738 = vmatprep.subr.bf16.mxu0 %v7452_v1 }
  0x3c   : > { %739 = vmatpush1.bf16.msra.mxu0 %v7261_v18  ;;  %v7274_v18 = vld [vmem:[%s8732_s7 + $0x10] sm:$0xff]  }
  0x3d   : > { %6692 = vmatprep.subr.bf16.mxu0 %v7453_v3 }
  0x3f   : > { %749 = vmatmul.mubr.bf16.vlgmr.msra.gmra.mrb[0].mxu0 %v633_v21 }
  0x40   : > { %6694 = vmatprep.mubr.msk.bf16.mxu0 %vm7454_vm1, %v7453_v3 }
 0x112   : > { %v750_v25 = vpop.f32.mrb[0].mxu0 }
 0x113   : > { %v751_v26 = vadd.f32 %v5999_v24, %v750_v25  ;;  %v752_v27 = vpop.f32.mrb[1].mxu0 }
 0x114   : > { %v753_v28 = vpop.f32.mrb[2].mxu0 }
 0x115   : > { %v754_v29 = vadd.f32 %v5999_v24, %v753_v28  ;;  %v755_v30 = vpop.f32.mrb[3].mxu0  ;;  %v757_v31 = vmax.f32 %v751_v26, 0.0  ;;  %v6038_v28 = vld [vmem:[%s8734_s9 + $0x1] ss:$0 sm:$0xff] }
 0x117   : > { %v758_v32 = vmax.f32 %v754_v29, 0.0 }
 0x119   : > { %v767_v33 = vpack.c.bf16 %v758_v32, %v757_v31 }
 0x11b   : > { %6659 = vmatmul.mubr.msk.bf16.vlgmr.msra.gmra.mrb[0].mxu1 %vm712_vm0, %v767_v33 }
 0x11c   : > { %6666 = vmatprep.mubr.msk.bf16.mxu1 %vm7454_vm1, %v7453_v3  ;;  %6663 = vmatpush3.bf16.msra.mxu1 %v7266_v34 }
 0x11d   : > { %6664 = vmatprep.subr.bf16.mxu1 %v7453_v3 }
 0x120   : > { %6665 = vmatpush3.bf16.msra.mxu1 %v7267_v35 }
 0x121   : > { %6670 = vmatprep.subr.bf16.mxu1 %v7453_v3 }
 0x1ee   : > { %v834_v37 = vpop.f32.mrb[0].mxu1 }
 0x1ef   : > { %v7664_v38 = vadd.f32 %v6013_v36, %v834_v37  ;;  %v6660_v39 = vpop.f32.mrb[1].mxu1 }
 0x1f0   : > { %v837_v42 = vpop.f32.mrb[2].mxu1 }
 0x1f1   : > { %v7672_v43 = vadd.f32 %v6013_v36, %v837_v42  ;;  %v6661_v44 = vpop.f32.mrb[3].mxu1  ;;  %v841_v45 = vadd.f32 %v7664_v38, %v606_v40  ;;  %v6056_v36 = vld [vmem:[%s8736_s11 + $0x1] ss:$0 sm:$0xff] }
 0x1f3   : > { %v842_v46 = vadd.f32 %v7672_v43, %v607_v41  ;;  %v7703_v52 = vpack.c.bf16 %v7672_v43, %v7664_v38 }
 0x1f5   : > { %v7679_v48 = vpack.c.bf16 %v842_v46, %v841_v45 }
 0x1f7   : > { %6667 = vmatmul.mubr.msk.bf16.vlgmr.msra.gmra.mrb[4].mxu1 %vm868_vm2, %v7679_v48 }
 0x1f8   : > { %6671 = vmatpush3.bf16.msra.mxu1 %v7268_v47  ;;  %6674 = vmatprep.mubr.msk.bf16.mxu1 %vm7454_vm1, %v7453_v3 }
 0x1f9   : > { %6672 = vmatprep.subr.bf16.mxu1 %v7453_v3 }
 0x1fc   : > { %6673 = vmatpush3.bf16.msra.mxu1 %v7269_v49 }
 0x1fd   : > { %6678 = vmatprep.subr.bf16.mxu1 %v7453_v3 }
 0x1ff   : > { %6675 = vmatmul.mubr.msk.bf16.vlgmr.msra.gmra.mrb[8].mxu1 %vm868_vm2, %v7679_v48 }
 0x200   : > { %6679 = vmatpush3.bf16.msra.mxu1 %v7270_v50  ;;  %6682 = vmatprep.mubr.msk.bf16.mxu1 %vm7454_vm1, %v7453_v3 }
 0x201   : > { %6680 = vmatprep.subr.bf16.mxu1 %v7453_v3 }
 0x204   : > { %6681 = vmatpush3.bf16.msra.mxu1 %v7271_v51 }
 0x205   : > { %6686 = vmatprep.subr.bf16.mxu1 %v7453_v3 }
 0x207   : > { %6683 = vmatmul.mubr.msk.bf16.vlgmr.msra.gmra.mrb[12].mxu1 %vm868_vm2, %v7703_v52 }
 0x208   : > { %6688 = vmatprep.mubr.msk.bf16.mxu1 %vm7454_vm1, %v7453_v3 }
 0x2ca   : > { %v906_v54 = vpop.f32.mrb[4].mxu1 }
 0x2cb   : > { %v6668_v55 = vpop.f32.mrb[5].mxu1  ;;  %v907_v57 = vadd.f32 %v6019_v53, %v906_v54 }
 0x2cc   : > { %v909_v56 = vpop.f32.mrb[6].mxu1 }
 0x2cd   : > { %v910_v58 = vadd.f32 %v6019_v53, %v909_v56  ;;  %v6669_v59 = vpop.f32.mrb[7].mxu1 }
 0x2cf   : > { %v1044_v60 = vpack.c.bf16 %v910_v58, %v907_v57 }
 0x2d2   : > { %v970_v62 = vpop.f32.mrb[8].mxu1 }
 0x2d3   : > { %v6676_v63 = vpop.f32.mrb[9].mxu1  ;;  %v971_v2 = vadd.f32 %v6023_v61, %v970_v62 }
 0x2d4   : > { %v973_v0 = vpop.f32.mrb[10].mxu1 }
 0x2d5   : > { %v974_v4 = vadd.f32 %v6023_v61, %v973_v0  ;;  %v6677_v5 = vpop.f32.mrb[11].mxu1  ;;  %v7276_v0 = vld [vmem:[%s8731_s6 + $0x10] sm:$0xff]  }
 0x2d7   : > { %v1045_v6 = vpack.c.bf16 %v974_v4, %v971_v2  ;;  %v7277_v4 = vld [vmem:[%s8731_s6 + $0x18] sm:$0xff]  }
 0x2d9   : > { %v1051_v7 = vsel %vm1046_vm3, %v1045_v6, 0 }
 0x2da   : > { %v1037_v9 = vpop.f32.mrb[12].mxu1  ;;  %6687 = vmatpush3.bf16.xpose.msra.mxu1 %v1051_v7 }
 0x2db   : > { %v6684_v10 = vpop.f32.mrb[13].mxu1  ;;  %6698 = vmatprep.subr.bf16.mxu1 %v7453_v3  ;;  %v1038_v12 = vadd.f32 %v6027_v8, %v1037_v9 }
 0x2dc   : > { %v1040_v11 = vpop.f32.mrb[14].mxu1  ;;  %v6047_v10 = vld [vmem:[%s8735_s10 + $0x1] ss:$0 sm:$0xff] }
 0x2dd   : > { %v1041_v13 = vadd.f32 %v6027_v8, %v1040_v11  ;;  %v6685_v14 = vpop.f32.mrb[15].mxu1 }
 0x2df   : > { %v1120_v16 = vpack.c.bf16 %v1041_v13, %v1038_v12 }
 0x2e1   : > { %6689 = vmatmul.mubr.msk.bf16.vlgmr.msra.gmra.mrb[16].mxu1 %vm1046_vm3, %v1044_v60  ;;  %6693 = vmatpush3.bf16.msra.mxu0 %v1120_v16 }
 0x2e2   : > { %6699 = vmatpush3.bf16.msra.mxu1 %v7272_v15  ;;  %6702 = vmatprep.mubr.msk.bf16.mxu1 %vm7454_vm1, %v7453_v3 }
 0x2e3   : > { %6700 = vmatprep.subr.bf16.mxu1 %v7453_v3  ;;  %6706 = vmatprep.subr.bf16.mxu0 %v7453_v3 }
 0x2e6   : > { %6701 = vmatpush3.bf16.msra.mxu1 %v7273_v17 }
 0x2e7   : > { %6714 = vmatprep.subr.bf16.mxu1 %v7453_v3 }
 0x2e9   : > { %6703 = vmatmul.mubr.msk.bf16.vlgmr.msra.gmra.mrb[20].mxu1 %vm868_vm2, %v7679_v48 }
 0x2ea   : > { %6715 = vmatpush3.bf16.msra.mxu1 %v7274_v18  ;;  %6718 = vmatprep.mubr.msk.bf16.mxu1 %vm7454_vm1, %v7453_v3 }
 0x2eb   : > { %6716 = vmatprep.subr.bf16.mxu1 %v7453_v3 }
 0x2ee   : > { %6717 = vmatpush3.bf16.msra.mxu1 %v7275_v19 }
 0x2ef   : > { %6728 = vmatprep.subr.bf16.mxu1 %v7453_v3 }
 0x2f1   : > { %6719 = vmatmul.mubr.msk.bf16.vlgmr.msra.gmra.mrb[24].mxu1 %vm868_vm2, %v7703_v52 }
 0x2f2   : > { %6730 = vmatprep.mubr.msk.bf16.mxu1 %vm7454_vm1, %v7453_v3 }
 0x3b4   : > { %v1087_v20 = vpop.f32.mrb[16].mxu1 }
 0x3b5   : > { %v1094_v21 = vmul.f32 0.35355338, %v1087_v20  ;;  %v6690_v22 = vpop.f32.mrb[17].mxu1 }
 0x3b6   : > { %v1090_v23 = vpop.f32.mrb[18].mxu1 }
 0x3b7   : > { %v1095_v24 = vmul.f32 0.35355338, %v1090_v23  ;;  %v6691_v25 = vpop.f32.mrb[19].mxu1  ;;  %v1097_v26 = vsel %vm1096_vm4, %v1094_v21, -inf }
 0x3b8   : > { %1098 = vmax.xlane.f32.xlu0 %v1097_v26 }
 0x3b9   : > { %v1100_v27 = vsel %vm1096_vm4, %v1095_v24, -inf }
 0x3bc   : > { %1101 = vmax.xlane.f32.xlu0 %v1100_v27  ;;  %v1226_v29 = vpop.f32.mrb[20].mxu1 }
 0x3bd   : > { %v6704_v30 = vpop.f32.mrb[21].mxu1  ;;  %v7754_v32 = vadd.f32 %v6038_v28, %v1226_v29 }
 0x3be   : > { %v1229_v31 = vpop.f32.mrb[22].mxu1 }
 0x3bf   : > { %v7756_v33 = vadd.f32 %v6038_v28, %v1229_v31  ;;  %v6705_v34 = vpop.f32.mrb[23].mxu1 }
 0x3c1   : > { %v1365_v35 = vpack.c.bf16 %v7756_v33, %v7754_v32 }
 0x3c4   : > { %v1358_v37 = vpop.f32.mrb[24].mxu1 }
 0x3c5   : > { %v6720_v39 = vpop.f32.mrb[25].mxu1  ;;  %v1359_v41 = vadd.f32 %v6056_v36, %v1358_v37  ;;  %v6062_v37 = vld [vmem:[%s8733_s8 + $0x4] sm:$0xf] }
 0x3c6   : > { %v1361_v40 = vpop.f32.mrb[26].mxu1  ;;  %v1492_v39 = vsel %vm1490_vm5, %v6062_v37, 0 }
 0x3c7   : > { %v1362_v42 = vadd.f32 %v6056_v36, %v1361_v40  ;;  %v6721_v44 = vpop.f32.mrb[27].mxu1 }
 0x3c9   : > { %v1439_v45 = vpack.c.bf16 %v1362_v42, %v1359_v41 }
 0x3cb   : > { %6729 = vmatpush3.bf16.msra.mxu1 %v1439_v45  ;;  %v1166_v45 = vld [vmem:[%s8733_s8] sm:$0xf] }
 0x3cc   : > { %6740 = vmatprep.subr.bf16.mxu1 %v7453_v3 }
 0x445   : > { %v1099_v46 = vpop.xlane.xlu0 %1098 }
 0x446   : > { %v1103_v47 = vsub.f32 %v1094_v21, %v1099_v46 }
 0x448   : > { %v1105_v49 = vmul.f32 1.442695, %v1103_v47 }
 0x449   : > { %v1102_v50 = vpop.xlane.xlu0 %1101 }
 0x44a   : > { %7358 = vpow2.f32 %v1105_v49  ;;  %v1104_v51 = vsub.f32 %v1095_v24, %v1102_v50  ;;  %v1539_v50 = vsel %vm1490_vm5, %v1166_v45, 0 }
 0x44c   : > { %v1107_v53 = vmul.f32 1.442695, %v1104_v51  ;;  %v7278_v51 = vld [vmem:[%s8731_s6 + $0x20] sm:$0xff]  }
 0x44e   : > { %7360 = vpow2.f32 %v1107_v53  ;;  %v7279_v53 = vld [vmem:[%s8731_s6 + $0x28] sm:$0xff]  }
 0x454   : > { %v7359_v54 = vpop.eup %7358 }
 0x455   : > { %v1109_v55 = vsel %vm1096_vm4, %v7359_v54, 0.0 }
 0x456   : > { %1110 = vadd.xlane.f32.xlu1 %v1109_v55 }
 0x458   : > { %v7361_v56 = vpop.eup %7360 }
 0x459   : > { %v1112_v57 = vsel %vm1096_vm4, %v7361_v56, 0.0 }
 0x45a   : > { %1113 = vadd.xlane.f32.xlu1 %v1112_v57  ;;  %v7280_v57 = vld [vmem:[%s8730_s5 + $0x20] sm:$0xff]  }
 0x4e3   : > { %v1111_v58 = vpop.xlane.xlu1 %1110 }
 0x4e4   : > { %7362 = vrcp.f32 %v1111_v58 }
 0x4e7   : > { %v1114_v59 = vpop.xlane.xlu1 %1113 }
 0x4e8   : > { %7364 = vrcp.f32 %v1114_v59 }
 0x4ee   : > { %v7363_v60 = vpop.eup %7362 }
 0x4ef   : > { %v1117_v62 = vmul.f32 %v7363_v60, %v7359_v54  ;;  %v7281_v60 = vld [vmem:[%s8730_s5 + $0x28] sm:$0xff]  }
 0x4f2   : > { %v7365_v61 = vpop.eup %7364 }
 0x4f3   : > { %v1118_v63 = vmul.f32 %v7365_v61, %v7361_v56 }
 0x4f5   : > { %v1119_v2 = vpack.c.bf16 %v1118_v63, %v1117_v62 }
 0x4f7   : > { %6695 = vmatmul.mubr.msk.bf16.vlgmr.msra.gmra.mrb[4].mxu0 %vm1096_vm4, %v1119_v2 }
 0x4f8   : > { %6707 = vmatpush3.bf16.msra.mxu0 %v7276_v0  ;;  %6710 = vmatprep.mubr.msk.bf16.mxu0 %vm7454_vm1, %v7453_v3  ;;  %v7282_v0 = vld [vmem:[%s8732_s7 + $0x20] sm:$0xff]  }
 0x4f9   : > { %6708 = vmatprep.subr.bf16.mxu0 %v7453_v3 }
 0x4fc   : > { %6709 = vmatpush3.bf16.msra.mxu0 %v7277_v4  ;;  %v7283_v4 = vld [vmem:[%s8732_s7 + $0x28] sm:$0xff]  }
 0x4fd   : > { %6722 = vmatprep.subr.bf16.mxu0 %v7453_v3 }
 0x4ff   : > { %6711 = vmatmul.mubr.msk.bf16.vlgmr.msra.gmra.mrb[8].mxu0 %vm868_vm2, %v7679_v48 }
 0x500   : > { %6724 = vmatprep.mubr.msk.bf16.mxu0 %vm7454_vm1, %v7453_v3 }
 0x5ca   : > { %v7781_v5 = vpop.f32.mrb[4].mxu0 }
 0x5cb   : > { %v6696_v6 = vpop.f32.mrb[5].mxu0 }
 0x5cc   : > { %v1161_v7 = vpop.f32.mrb[6].mxu0 }
 0x5cd   : > { %v1165_v8 = vpack.c.bf16 %v1161_v7, %v7781_v5  ;;  %v6697_v9 = vpop.f32.mrb[7].mxu0  ;;  %v6079_v5 = vld [vmem:[%s8735_s10 + $0x2] ss:$0 sm:$0xff] }
 0x5d2   : > { %v1292_v11 = vpop.f32.mrb[8].mxu0 }
 0x5d3   : > { %v6712_v12 = vpop.f32.mrb[9].mxu0  ;;  %v1293_v14 = vadd.f32 %v6047_v10, %v1292_v11 }
 0x5d4   : > { %v1295_v13 = vpop.f32.mrb[10].mxu0 }
 0x5d5   : > { %v1296_v15 = vadd.f32 %v6047_v10, %v1295_v13  ;;  %v6713_v16 = vpop.f32.mrb[11].mxu0 }
 0x5d7   : > { %v1366_v17 = vpack.c.bf16 %v1296_v15, %v1293_v14 }
 0x5d9   : > { %v1371_v18 = vsel %vm1046_vm3, %v1366_v17, 0 }
 0x5da   : > { %6723 = vmatpush3.bf16.xpose.msra.mxu0 %v1371_v18 }
 0x5db   : > { %6734 = vmatprep.subr.bf16.mxu0 %v7453_v3 }
 0x5e1   : > { %6725 = vmatmul.mubr.msk.bf16.vlgmr.msra.gmra.mrb[12].mxu0 %vm1046_vm3, %v1365_v35 }
 0x5e2   : > { %6736 = vmatprep.mubr.msk.bf16.mxu0 %vm7454_vm1, %v7453_v3  ;;  %6735 = vmatpush3.bf16.msra.mxu0 %v1492_v39 }
 0x5e3   : > { %6746 = vmatprep.subr.bf16.mxu0 %v7453_v3 }
 0x6b4   : > { %v1407_v19 = vpop.f32.mrb[12].mxu0 }
 0x6b5   : > { %v1414_v20 = vmul.f32 0.35355338, %v1407_v19  ;;  %v6726_v21 = vpop.f32.mrb[13].mxu0 }
 0x6b6   : > { %v1410_v22 = vpop.f32.mrb[14].mxu0 }
 0x6b7   : > { %v1415_v23 = vmul.f32 0.35355338, %v1410_v22  ;;  %v6727_v24 = vpop.f32.mrb[15].mxu0  ;;  %v1416_v25 = vsel %vm1096_vm4, %v1414_v20, -inf }
 0x6b8   : > { %1417 = vmax.xlane.f32.xlu0 %v1416_v25 }
 0x6b9   : > { %v1419_v26 = vsel %vm1096_vm4, %v1415_v23, -inf }
 0x6ba   : > { %1420 = vmax.xlane.f32.xlu1 %v1419_v26 }
 0x745   : > { %v1418_v27 = vpop.xlane.xlu0 %1417 }
 0x746   : > { %v1422_v28 = vsub.f32 %v1414_v20, %v1418_v27  ;;  %v6070_v20 = vld [vmem:[%s8734_s9 + $0x2] ss:$0 sm:$0xff] }
 0x747   : > { %v1421_v29 = vpop.xlane.xlu1 %1420 }
 0x748   : > { %v1424_v30 = vmul.f32 1.442695, %v1422_v28  ;;  %v1423_v31 = vsub.f32 %v1415_v23, %v1421_v29  ;;  %v6088_v28 = vld [vmem:[%s8736_s11 + $0x2] ss:$0 sm:$0xff] }
 0x74a   : > { %7366 = vpow2.f32 %v1424_v30  ;;  %v1426_v32 = vmul.f32 1.442695, %v1423_v31 }
 0x74c   : > { %7368 = vpow2.f32 %v1426_v32 }
 0x754   : > { %v7367_v33 = vpop.eup %7366 }
 0x755   : > { %v1428_v34 = vsel %vm1096_vm4, %v7367_v33, 0.0 }
 0x756   : > { %v7369_v35 = vpop.eup %7368  ;;  %1429 = vadd.xlane.f32.xlu0 %v1428_v34 }
 0x757   : > { %v1431_v36 = vsel %vm1096_vm4, %v7369_v35, 0.0 }
 0x758   : > { %1432 = vadd.xlane.f32.xlu1 %v1431_v36 }
 0x7e3   : > { %v1430_v40 = vpop.xlane.xlu0 %1429 }
 0x7e4   : > { %7370 = vrcp.f32 %v1430_v40 }
 0x7e5   : > { %v1433_v41 = vpop.xlane.xlu1 %1432 }
 0x7e6   : > { %7372 = vrcp.f32 %v1433_v41 }
 0x7ee   : > { %v7371_v42 = vpop.eup %7370 }
 0x7ef   : > { %v1436_v46 = vmul.f32 %v7371_v42, %v7367_v33 }
 0x7f0   : > { %v7373_v44 = vpop.eup %7372 }
 0x7f1   : > { %v1437_v47 = vmul.f32 %v7373_v44, %v7369_v35 }
 0x7f3   : > { %v1438_v49 = vpack.c.bf16 %v1437_v47, %v1436_v46 }
 0x7f5   : > { %6731 = vmatmul.mubr.msk.bf16.vlgmr.msra.gmra.mrb[28].mxu1 %vm1096_vm4, %v1438_v49 }
 0x7f6   : > { %6741 = vmatpush3.bf16.msra.mxu1 %v1539_v50  ;;  %6742 = vmatprep.mubr.msk.bf16.mxu1 %vm7454_vm1, %v7453_v3 }
 0x7f7   : > { %6754 = vmatprep.subr.bf16.mxu1 %v7453_v3 }
 0x7fd   : > { %6743 = vmatmul.mubr.msk.bf16.vlgmr.msra.gmra.mrb[32].mxu1 %vm1046_vm3, %v1165_v8 }
 0x7fe   : > { %6755 = vmatpush3.bf16.msra.mxu1 %v7278_v51  ;;  %6758 = vmatprep.mubr.msk.bf16.mxu1 %vm7454_vm1, %v7453_v3 }
 0x7ff   : > { %6756 = vmatprep.subr.bf16.mxu1 %v7453_v3 }
 0x802   : > { %6757 = vmatpush3.bf16.msra.mxu1 %v7279_v53 }
 0x803   : > { %6770 = vmatprep.subr.bf16.mxu1 %v7453_v3 }
 0x805   : > { %6759 = vmatmul.mubr.msk.bf16.vlgmr.msra.gmra.mrb[36].mxu1 %vm868_vm2, %v7679_v48 }
 0x806   : > { %6772 = vmatprep.mubr.msk.bf16.mxu1 %vm7454_vm1, %v7453_v3 }
 0x8c8   : > { %v1477_v54 = vpop.f32.mrb[28].mxu1 }
 0x8c9   : > { %v6732_v55 = vpop.f32.mrb[29].mxu1 }
 0x8ca   : > { %v1480_v56 = vpop.f32.mrb[30].mxu1 }
 0x8cb   : > { %v1484_v58 = vpack.c.bf16 %v1480_v56, %v1477_v54  ;;  %v6733_v59 = vpop.f32.mrb[31].mxu1 }
 0x8cd   : > { %6737 = vmatmul.mubr.msk.bf16.vlgmr.msra.gmra.mrb[16].mxu0 %vm1046_vm3, %v1484_v58  ;;  %v6094_v58 = vld [vmem:[%s8733_s8 + $0x8] sm:$0xf] }
 0x8ce   : > { %6747 = vmatpush3.bf16.msra.mxu0 %v7280_v57  ;;  %6750 = vmatprep.mubr.msk.bf16.mxu0 %vm7454_vm1, %v7453_v3  ;;  %v1906_v59 = vsel %vm1490_vm5, %v6094_v58, 0 }
 0x8cf   : > { %6748 = vmatprep.subr.bf16.mxu0 %v7453_v3 }
 0x8d0   : > { %v1575_v61 = vpop.f32.mrb[32].mxu1 }
 0x8d1   : > { %v6744_v62 = vpop.f32.mrb[33].mxu1 }
 0x8d2   : > { %v1578_v63 = vpop.f32.mrb[34].mxu1  ;;  %6749 = vmatpush3.bf16.msra.mxu0 %v7281_v60 }
 0x8d3   : > { %v6745_v2 = vpop.f32.mrb[35].mxu1  ;;  %6762 = vmatprep.subr.bf16.mxu0 %v7453_v3 }
 0x8d5   : > { %6751 = vmatmul.mubr.msk.bf16.vlgmr.msra.gmra.mrb[20].mxu0 %vm868_vm2, %v7679_v48 }
 0x8d6   : > { %6763 = vmatpush3.bf16.msra.mxu0 %v7282_v0  ;;  %6766 = vmatprep.mubr.msk.bf16.mxu0 %vm7454_vm1, %v7453_v3 }
 0x8d7   : > { %6764 = vmatprep.subr.bf16.mxu0 %v7453_v3 }
 0x8d8   : > { %v1707_v6 = vpop.f32.mrb[36].mxu1 }
 0x8d9   : > { %v6760_v7 = vpop.f32.mrb[37].mxu1  ;;  %v1708_v9 = vadd.f32 %v6079_v5, %v1707_v6  ;;  %v7285_v6 = vld [vmem:[%s8730_s5 + $0x38] sm:$0xff]  }
 0x8da   : > { %v1710_v8 = vpop.f32.mrb[38].mxu1  ;;  %6765 = vmatpush3.bf16.msra.mxu0 %v7283_v4  ;;  %v7284_v4 = vld [vmem:[%s8730_s5 + $0x30] sm:$0xff]  }
 0x8db   : > { %v1711_v10 = vadd.f32 %v6079_v5, %v1710_v8  ;;  %v6761_v11 = vpop.f32.mrb[39].mxu1  ;;  %6776 = vmatprep.subr.bf16.mxu0 %v7453_v3  ;;  %v7286_v7 = vld [vmem:[%s8732_s7 + $0x30] sm:$0xff]   ;;  %v7287_v8 = vld [vmem:[%s8732_s7 + $0x38] sm:$0xff]  }
 0x8dd   : > { %v1781_v12 = vpack.c.bf16 %v1711_v10, %v1708_v9  ;;  %6767 = vmatmul.mubr.msk.bf16.vlgmr.msra.gmra.mrb[24].mxu0 %vm868_vm2, %v7703_v52 }
 0x8de   : > { %6778 = vmatprep.mubr.msk.bf16.mxu0 %vm7454_vm1, %v7453_v3 }
 0x8df   : > { %v1786_v13 = vsel %vm1046_vm3, %v1781_v12, 0  ;;  %v7288_v12 = vld [vmem:[%s8731_s6 + $0x30] sm:$0xff]  }
 0x8e0   : > { %6771 = vmatpush3.bf16.xpose.msra.mxu1 %v1786_v13 }
 0x8e1   : > { %6782 = vmatprep.subr.bf16.mxu1 %v7453_v3 }
 0x9a0   : > { %v1528_v14 = vpop.f32.mrb[16].mxu0 }
 0x9a1   : > { %v7856_v15 = vadd.f32 %v1575_v61, %v1528_v14  ;;  %v6738_v16 = vpop.f32.mrb[17].mxu0 }
 0x9a2   : > { %v1531_v17 = vpop.f32.mrb[18].mxu0  ;;  %v7289_v16 = vld [vmem:[%s8731_s6 + $0x38] sm:$0xff]  }
 0x9a3   : > { %v7858_v18 = vadd.f32 %v1578_v63, %v1531_v17  ;;  %v6739_v19 = vpop.f32.mrb[19].mxu0 }
 0x9a8   : > { %v1641_v21 = vpop.f32.mrb[20].mxu0 }
 0x9a9   : > { %v6752_v22 = vpop.f32.mrb[21].mxu0  ;;  %v1642_v24 = vadd.f32 %v6070_v20, %v1641_v21 }
 0x9aa   : > { %v1644_v23 = vpop.f32.mrb[22].mxu0 }
 0x9ab   : > { %v1645_v25 = vadd.f32 %v6070_v20, %v1644_v23  ;;  %v6753_v26 = vpop.f32.mrb[23].mxu0 }
 0x9ad   : > { %v1780_v27 = vpack.c.bf16 %v1645_v25, %v1642_v24  ;;  %v6119_v25 = vld [vmem:[%s8736_s11 + $0x3] ss:$0 sm:$0xff] }
 0x9af   : > { %6773 = vmatmul.mubr.msk.bf16.vlgmr.msra.gmra.mrb[40].mxu1 %vm1046_vm3, %v1780_v27 }
 0x9b0   : > { %v1773_v29 = vpop.f32.mrb[24].mxu0  ;;  %6784 = vmatprep.mubr.msk.bf16.mxu1 %vm7454_vm1, %v7453_v3  ;;  %6783 = vmatpush3.bf16.msra.mxu1 %v1906_v59 }
 0x9b1   : > { %v6768_v30 = vpop.f32.mrb[25].mxu0  ;;  %v1774_v32 = vadd.f32 %v6088_v28, %v1773_v29  ;;  %6796 = vmatprep.subr.bf16.mxu1 %v7453_v3 }
 0x9b2   : > { %v1776_v31 = vpop.f32.mrb[26].mxu0 }
 0x9b3   : > { %v1777_v33 = vadd.f32 %v6088_v28, %v1776_v31  ;;  %v6769_v34 = vpop.f32.mrb[27].mxu0 }
 0x9b5   : > { %v1854_v35 = vpack.c.bf16 %v1777_v33, %v1774_v32 }
 0x9b7   : > { %6777 = vmatpush3.bf16.msra.mxu0 %v1854_v35 }
 0x9b8   : > { %6788 = vmatprep.subr.bf16.mxu0 %v7453_v3 }
 0xa82   : > { %v1822_v36 = vpop.f32.mrb[40].mxu1 }
 0xa83   : > { %v1829_v37 = vmul.f32 0.35355338, %v1822_v36  ;;  %v6774_v39 = vpop.f32.mrb[41].mxu1 }
 0xa84   : > { %v1825_v40 = vpop.f32.mrb[42].mxu1  ;;  %v6110_v39 = vld [vmem:[%s8735_s10 + $0x3] ss:$0 sm:$0xff] }
 0xa85   : > { %v1830_v41 = vmul.f32 0.35355338, %v1825_v40  ;;  %v6775_v42 = vpop.f32.mrb[43].mxu1  ;;  %v1831_v44 = vsel %vm1096_vm4, %v1829_v37, -inf }
 0xa86   : > { %1832 = vmax.xlane.f32.xlu0 %v1831_v44 }
 0xa87   : > { %v1834_v45 = vsel %vm1096_vm4, %v1830_v41, -inf }
 0xa88   : > { %1835 = vmax.xlane.f32.xlu1 %v1834_v45 }
 0xb13   : > { %v1833_v46 = vpop.xlane.xlu0 %1832 }
 0xb14   : > { %v1837_v47 = vsub.f32 %v1829_v37, %v1833_v46 }
 0xb15   : > { %v1836_v49 = vpop.xlane.xlu1 %1835 }
 0xb16   : > { %v1839_v50 = vmul.f32 1.442695, %v1837_v47  ;;  %v1838_v51 = vsub.f32 %v1830_v41, %v1836_v49 }
 0xb18   : > { %7374 = vpow2.f32 %v1839_v50  ;;  %v1841_v53 = vmul.f32 1.442695, %v1838_v51 }
 0xb1a   : > { %7376 = vpow2.f32 %v1841_v53 }
 0xb22   : > { %v7375_v54 = vpop.eup %7374 }
 0xb23   : > { %v1843_v55 = vsel %vm1096_vm4, %v7375_v54, 0.0 }
 0xb24   : > { %v7377_v56 = vpop.eup %7376  ;;  %1844 = vadd.xlane.f32.xlu0 %v1843_v55 }
 0xb25   : > { %v1846_v57 = vsel %vm1096_vm4, %v7377_v56, 0.0 }
 0xb26   : > { %1847 = vadd.xlane.f32.xlu1 %v1846_v57 }
 0xbb1   : > { %v1845_v60 = vpop.xlane.xlu0 %1844 }
 0xbb2   : > { %7378 = vrcp.f32 %v1845_v60 }
 0xbb3   : > { %v1848_v61 = vpop.xlane.xlu1 %1847 }
 0xbb4   : > { %7380 = vrcp.f32 %v1848_v61 }
 0xbbc   : > { %v7379_v62 = vpop.eup %7378 }
 0xbbd   : > { %v1851_v0 = vmul.f32 %v7379_v62, %v7375_v54 }
 0xbbe   : > { %v7381_v63 = vpop.eup %7380 }
 0xbbf   : > { %v1852_v2 = vmul.f32 %v7381_v63, %v7377_v56 }
 0xbc1   : > { %v1853_v5 = vpack.c.bf16 %v1852_v2, %v1851_v0 }
 0xbc3   : > { %6779 = vmatmul.mubr.msk.bf16.vlgmr.msra.gmra.mrb[28].mxu0 %vm1096_vm4, %v1853_v5  ;;  %v6125_v5 = vld [vmem:[%s8733_s8 + $0xc] sm:$0xf] }
 0xbc4   : > { %6789 = vmatpush3.bf16.msra.mxu0 %v7284_v4  ;;  %6792 = vmatprep.mubr.msk.bf16.mxu0 %vm7454_vm1, %v7453_v3 }
 0xbc5   : > { %6790 = vmatprep.subr.bf16.mxu0 %v7453_v3 }
 0xbc8   : > { %6791 = vmatpush3.bf16.msra.mxu0 %v7285_v6  ;;  %v2275_v6 = vsel %vm1490_vm5, %v6125_v5, 0  ;;  %v7294_v5 = vld [vmem:[%s8731_s6 + $0x40] sm:$0xff]  }
 0xbc9   : > { %6804 = vmatprep.subr.bf16.mxu0 %v7453_v3 }
 0xbcb   : > { %6793 = vmatmul.mubr.msk.bf16.vlgmr.msra.gmra.mrb[32].mxu0 %vm868_vm2, %v7679_v48 }
 0xbcc   : > { %6805 = vmatpush3.bf16.msra.mxu0 %v7286_v7  ;;  %6808 = vmatprep.mubr.msk.bf16.mxu0 %vm7454_vm1, %v7453_v3 }
 0xbcd   : > { %6806 = vmatprep.subr.bf16.mxu0 %v7453_v3 }
 0xbd0   : > { %6807 = vmatpush3.bf16.msra.mxu0 %v7287_v8 }
 0xbd1   : > { %6818 = vmatprep.subr.bf16.mxu0 %v7453_v3 }
 0xbd3   : > { %6809 = vmatmul.mubr.msk.bf16.vlgmr.msra.gmra.mrb[36].mxu0 %vm868_vm2, %v7703_v52  ;;  %v6101_v52 = vld [vmem:[%s8734_s9 + $0x3] ss:$0 sm:$0xff] }
 0xbd4   : > { %6820 = vmatprep.mubr.msk.bf16.mxu0 %vm7454_vm1, %v7453_v3 }
 0xc96   : > { %v1892_v9 = vpop.f32.mrb[28].mxu0 }
 0xc97   : > { %v6780_v10 = vpop.f32.mrb[29].mxu0 }
 0xc98   : > { %v1895_v11 = vpop.f32.mrb[30].mxu0 }
 0xc99   : > { %v1899_v13 = vpack.c.bf16 %v1895_v11, %v1892_v9  ;;  %v6781_v14 = vpop.f32.mrb[31].mxu0 }
 0xc9b   : > { %6785 = vmatmul.mubr.msk.bf16.vlgmr.msra.gmra.mrb[44].mxu1 %vm1046_vm3, %v1899_v13 }
 0xc9c   : > { %6797 = vmatpush3.bf16.msra.mxu1 %v7288_v12  ;;  %6800 = vmatprep.mubr.msk.bf16.mxu1 %vm7454_vm1, %v7453_v3 }
 0xc9d   : > { %6798 = vmatprep.subr.bf16.mxu1 %v7453_v3 }
 0xc9e   : > { %v2010_v17 = vpop.f32.mrb[32].mxu0 }
 0xc9f   : > { %v6794_v19 = vpop.f32.mrb[33].mxu0  ;;  %v2011_v21 = vadd.f32 %v6101_v52, %v2010_v17 }
 0xca0   : > { %v2013_v20 = vpop.f32.mrb[34].mxu0  ;;  %6799 = vmatpush3.bf16.msra.mxu1 %v7289_v16 }
 0xca1   : > { %v2014_v22 = vadd.f32 %v6101_v52, %v2013_v20  ;;  %v6795_v23 = vpop.f32.mrb[35].mxu0  ;;  %6812 = vmatprep.subr.bf16.mxu1 %v7453_v3 }
 0xca3   : > { %v2149_v24 = vpack.c.bf16 %v2014_v22, %v2011_v21  ;;  %6801 = vmatmul.mubr.msk.bf16.vlgmr.msra.gmra.mrb[48].mxu1 %vm868_vm2, %v7679_v48  ;;  %v6127_v21 = vld [vmem:[%s8743_s18 + $0x2] ss:$0 sm:$0xff] }
 0xca4   : > { %6814 = vmatprep.mubr.msk.bf16.mxu1 %vm7454_vm1, %v7453_v3 }
 0xca6   : > { %v2142_v26 = vpop.f32.mrb[36].mxu0 }
 0xca7   : > { %v6810_v27 = vpop.f32.mrb[37].mxu0  ;;  %v2143_v29 = vadd.f32 %v6119_v25, %v2142_v26 }
 0xca8   : > { %v2145_v28 = vpop.f32.mrb[38].mxu0 }
 0xca9   : > { %v2146_v30 = vadd.f32 %v6119_v25, %v2145_v28  ;;  %v6811_v31 = vpop.f32.mrb[39].mxu0 }
 0xcab   : > { %v2223_v32 = vpack.c.bf16 %v2146_v30, %v2143_v29 }
 0xcad   : > { %6819 = vmatpush3.bf16.msra.mxu0 %v2223_v32 }
 0xcae   : > { %6830 = vmatprep.subr.bf16.mxu0 %v7453_v3 }
 0xd6e   : > { %v1942_v33 = vpop.f32.mrb[44].mxu1 }
 0xd6f   : > { %v7929_v48 = vadd.f32 %v1942_v33, %v7856_v15  ;;  %v6786_v34 = vpop.f32.mrb[45].mxu1 }
 0xd70   : > { %v1945_v35 = vpop.f32.mrb[46].mxu1 }
 0xd71   : > { %v7932_v36 = vadd.f32 %v1945_v35, %v7858_v18  ;;  %v6787_v37 = vpop.f32.mrb[47].mxu1 }
 0xd76   : > { %v2076_v40 = vpop.f32.mrb[48].mxu1 }
 0xd77   : > { %v6802_v41 = vpop.f32.mrb[49].mxu1  ;;  %v2077_v44 = vadd.f32 %v6110_v39, %v2076_v40 }
 0xd78   : > { %v2079_v42 = vpop.f32.mrb[50].mxu1 }
 0xd79   : > { %v2080_v45 = vadd.f32 %v6110_v39, %v2079_v42  ;;  %v6803_v46 = vpop.f32.mrb[51].mxu1  ;;  %v7291_v42 = vld [vmem:[%s8737_s12 + $0x8] sm:$0xff]  }
 0xd7b   : > { %v2150_v47 = vpack.c.bf16 %v2080_v45, %v2077_v44  ;;  %v7296_v44 = vld [vmem:[%s8738_s13] sm:$0xff]   ;;  %v7297_v45 = vld [vmem:[%s8738_s13 + $0x8] sm:$0xff]  }
 0xd7d   : > { %v2155_v15 = vsel %vm1046_vm3, %v2150_v47, 0 }
 0xd7e   : > { %6813 = vmatpush3.bf16.xpose.msra.mxu1 %v2155_v15 }
 0xd7f   : > { %6824 = vmatprep.subr.bf16.mxu1 %v7453_v3 }
 0xd85   : > { %6815 = vmatmul.mubr.msk.bf16.vlgmr.msra.gmra.mrb[52].mxu1 %vm1046_vm3, %v2149_v24 }
 0xd86   : > { %6826 = vmatprep.mubr.msk.bf16.mxu1 %vm7454_vm1, %v7453_v3  ;;  %6825 = vmatpush3.bf16.msra.mxu1 %v2275_v6  ;;  %v7295_v6 = vld [vmem:[%s8731_s6 + $0x48] sm:$0xff]  }
 0xd87   : > { %6838 = vmatprep.subr.bf16.mxu1 %v7453_v3 }
 0xe58   : > { %v2191_v18 = vpop.f32.mrb[52].mxu1 }
 0xe59   : > { %v2198_v49 = vmul.f32 0.35355338, %v2191_v18  ;;  %v6816_v50 = vpop.f32.mrb[53].mxu1 }
 0xe5a   : > { %v2194_v51 = vpop.f32.mrb[54].mxu1 }
 0xe5b   : > { %v2199_v53 = vmul.f32 0.35355338, %v2194_v51  ;;  %v6817_v54 = vpop.f32.mrb[55].mxu1  ;;  %v2200_v55 = vsel %vm1096_vm4, %v2198_v49, -inf }
 0xe5c   : > { %2201 = vmax.xlane.f32.xlu0 %v2200_v55 }
 0xe5d   : > { %v2203_v56 = vsel %vm1096_vm4, %v2199_v53, -inf }
 0xe5e   : > { %2204 = vmax.xlane.f32.xlu1 %v2203_v56 }
 0xee9   : > { %v2202_v57 = vpop.xlane.xlu0 %2201 }
 0xeea   : > { %v2206_v58 = vsub.f32 %v2198_v49, %v2202_v57 }
 0xeeb   : > { %v2205_v59 = vpop.xlane.xlu1 %2204 }
 0xeec   : > { %v2208_v60 = vmul.f32 1.442695, %v2206_v58  ;;  %v2207_v61 = vsub.f32 %v2199_v53, %v2205_v59  ;;  %v6128_v53 = vld [vmem:[%s8743_s18 + $0xd] ss:$0 sm:$0xff]  ;;  %v6129_v58 = vld [vmem:[%s8743_s18 + $0xe] ss:$0 sm:$0xff] }
 0xeee   : > { %7382 = vpow2.f32 %v2208_v60  ;;  %v2210_v62 = vmul.f32 1.442695, %v2207_v61 }
 0xef0   : > { %7384 = vpow2.f32 %v2210_v62  ;;  %v7292_v62 = vld [vmem:[%s8730_s5 + $0x40] sm:$0xff]  }
 0xef8   : > { %v7383_v63 = vpop.eup %7382 }
 0xef9   : > { %v2212_v0 = vsel %vm1096_vm4, %v7383_v63, 0.0 }
 0xefa   : > { %v7385_v2 = vpop.eup %7384  ;;  %2213 = vadd.xlane.f32.xlu0 %v2212_v0  ;;  %v7293_v0 = vld [vmem:[%s8730_s5 + $0x48] sm:$0xff]  }
 0xefb   : > { %v2215_v4 = vsel %vm1096_vm4, %v7385_v2, 0.0 }
 0xefc   : > { %2216 = vadd.xlane.f32.xlu1 %v2215_v4 }
 0xf87   : > { %v2214_v7 = vpop.xlane.xlu0 %2213 }
 0xf88   : > { %7386 = vrcp.f32 %v2214_v7  ;;  %v7298_v7 = vld [vmem:[%s8738_s13 + $0x10] sm:$0xff]  }
 0xf89   : > { %v2217_v8 = vpop.xlane.xlu1 %2216 }
 0xf8a   : > { %7388 = vrcp.f32 %v2217_v8  ;;  %v7299_v8 = vld [vmem:[%s8738_s13 + $0x18] sm:$0xff]  }
 0xf92   : > { %v7387_v9 = vpop.eup %7386 }
 0xf93   : > { %v2220_v11 = vmul.f32 %v7387_v9, %v7383_v63  ;;  %v6130_v9 = vld [vmem:[%s8743_s18 + $0x3] ss:$0 sm:$0xff] }
 0xf94   : > { %v7389_v10 = vpop.eup %7388 }
 0xf95   : > { %v2221_v12 = vmul.f32 %v7389_v10, %v7385_v2  ;;  %v8008_v2 = vld [vmem:[%s8754_s20] sm:$0xff]  ;;  %s7455_s20 = smov 15  }
 0xf96   : > { %v8013_v4 = vpack.c.bf16 %v8008_v2, %v8008_v2 }
 0xf97   : > { %v2222_v13 = vpack.c.bf16 %v2221_v12, %v2220_v11 }
 0xf99   : > { %6821 = vmatmul.mubr.msk.bf16.vlgmr.msra.gmra.mrb[40].mxu0 %vm1096_vm4, %v2222_v13 }
 0xf9a   : > { %6834 = vmatprep.mubr.msk.bf16.mxu0 %vm7454_vm1, %v7453_v3 }
0x106c   : > { %v2261_v14 = vpop.f32.mrb[40].mxu0 }
0x106d   : > { %v6822_v16 = vpop.f32.mrb[41].mxu0 }
0x106e   : > { %v2264_v52 = vpop.f32.mrb[42].mxu0 }
0x106f   : > { %v2268_v17 = vpack.c.bf16 %v2264_v52, %v2261_v14  ;;  %v6823_v19 = vpop.f32.mrb[43].mxu0 }
0x1071   : > { %6827 = vmatmul.mubr.msk.bf16.vlgmr.msra.gmra.mrb[56].mxu1 %vm1046_vm3, %v2268_v17 }
0x1072   : > { %6846 = vmatprep.mubr.msk.bf16.mxu1 %vm7454_vm1, %v7453_v3  ;;  %6839 = vmatpush3.bf16.msra.mxu1 %v7296_v44 }
0x1073   : > { %6840 = vmatprep.subr.bf16.mxu1 %v7453_v3 }
0x1076   : > { %6841 = vmatpush3.bf16.msra.mxu1 %v7297_v45 }
0x1077   : > { %6842 = vmatprep.subr.bf16.mxu1 %v7453_v3 }
0x107a   : > { %6843 = vmatpush3.bf16.msra.mxu1 %v7298_v7 }
0x107b   : > { %6844 = vmatprep.subr.bf16.mxu1 %v7453_v3 }
0x107e   : > { %6845 = vmatpush3.bf16.msra.mxu1 %v7299_v8  ;;  %v7302_v8 = vld [vmem:[%s8731_s6 + $0x50] sm:$0xff]  }
0x107f   : > { %6866 = vmatprep.subr.bf16.mxu1 %v7453_v3 }
0x1144   : > { %v2311_v20 = vpop.f32.mrb[56].mxu1 }
0x1145   : > { %v2318_v22 = vadd.f32 %v2311_v20, %v7929_v48  ;;  %v6828_v23 = vpop.f32.mrb[57].mxu1 }
0x1146   : > { %v2314_v24 = vpop.f32.mrb[58].mxu1 }
0x1147   : > { %v2325_v25 = vadd.f32 %v6127_v21, %v2318_v22  ;;  %v2319_v26 = vadd.f32 %v2314_v24, %v7932_v36  ;;  %v6829_v27 = vpop.f32.mrb[59].mxu1  ;;  %v6156_v24 = vld [vmem:[%s8735_s10 + $0x4] ss:$0 sm:$0xff] }
0x1149   : > { %v2326_v28 = vadd.f32 %v6127_v21, %v2319_v26  ;;  %v2327_v29 = vadd.f32 %v2325_v25, %v7664_v38 }
0x114b   : > { %v2331_v30 = vsel %vm868_vm2, %v2327_v29, 0.0  ;;  %v2328_v31 = vadd.f32 %v2326_v28, %v7672_v43  ;;  %v7290_v43 = vld [vmem:[%s8737_s12] sm:$0xff]  }
0x114c   : > { %2332 = vadd.xlane.f32.xlu0 %v2331_v30  ;;  %6831 = vmatpush3.bf16.msra.mxu0 %v7290_v43 }
0x114d   : > { %v2334_v32 = vsel %vm868_vm2, %v2328_v31, 0.0  ;;  %6832 = vmatprep.subr.bf16.mxu0 %v7453_v3 }
0x114e   : > { %2335 = vadd.xlane.f32.xlu1 %v2334_v32 }
0x1150   : > { %6833 = vmatpush3.bf16.msra.mxu0 %v7291_v42 }
0x1151   : > { %6850 = vmatprep.subr.bf16.mxu0 %v7453_v3 }
0x11d9   : > { %v2333_v33 = vpop.xlane.xlu0 %2332 }
0x11da   : > { %v2338_v34 = vmul.f32 0.03125, %v2333_v33 }
0x11db   : > { %v2336_v48 = vpop.xlane.xlu1 %2335 }
0x11dc   : > { %v2340_v35 = vsub.f32 %v2327_v29, %v2338_v34  ;;  %v2339_v37 = vmul.f32 0.03125, %v2336_v48  ;;  %v7300_v48 = vld [vmem:[%s8732_s7 + $0x40] sm:$0xff]  }
0x11de   : > { %v2341_v39 = vsub.f32 %v2328_v31, %v2339_v37  ;;  %v2342_v40 = vmul.f32 %v2340_v35, %v2340_v35  ;;  %v6147_v31 = vld [vmem:[%s8734_s9 + $0x4] ss:$0 sm:$0xff] }
0x11e0   : > { %v2344_v36 = vsel %vm868_vm2, %v2342_v40, 0.0  ;;  %v2343_v41 = vmul.f32 %v2341_v39, %v2341_v39  ;;  %v8073_v40 = vld [vmem:[%s8743_s18 + $0x4] ss:$0 sm:$0xff] }
0x11e1   : > { %2345 = vadd.xlane.f32.xlu0 %v2344_v36 }
0x11e2   : > { %v2347_v38 = vsel %vm868_vm2, %v2343_v41, 0.0 }
0x11e3   : > { %2348 = vadd.xlane.f32.xlu1 %v2347_v38 }
0x126e   : > { %v2346_v46 = vpop.xlane.xlu0 %2345 }
0x126f   : > { %v2350_v47 = vmul.f32 0.03125, %v2346_v46 }
0x1270   : > { %v2349_v15 = vpop.xlane.xlu1 %2348 }
0x1271   : > { %v2352_v18 = vadd.f32 1e-05, %v2350_v47  ;;  %v2351_v49 = vmul.f32 0.03125, %v2349_v15 }
0x1273   : > { %7390 = vrsqrt.f32 %v2352_v18  ;;  %v2353_v50 = vadd.f32 1e-05, %v2351_v49 }
0x1275   : > { %7392 = vrsqrt.f32 %v2353_v50 }
0x127d   : > { %v7391_v51 = vpop.eup %7390 }
0x127e   : > { %v2356_v54 = vmul.f32 %v7391_v51, %v2340_v35  ;;  %v7301_v35 = vld [vmem:[%s8732_s7 + $0x48] sm:$0xff]  }
0x127f   : > { %v7393_v55 = vpop.eup %7392 }
0x1280   : > { %v2362_v56 = vmul.f32 %v6128_v53, %v2356_v54  ;;  %v2357_v57 = vmul.f32 %v7393_v55, %v2341_v39 }
0x1282   : > { %v2363_v59 = vmul.f32 %v6128_v53, %v2357_v57  ;;  %v7990_v60 = vadd.f32 %v6129_v58, %v2362_v56  ;;  %v6165_v56 = vld [vmem:[%s8736_s11 + $0x4] ss:$0 sm:$0xff] }
0x1284   : > { %v7992_v61 = vadd.f32 %v6129_v58, %v2363_v59 }
0x1286   : > { %v2374_v63 = vpack.c.bf16 %v7992_v61, %v7990_v60 }
0x1288   : > { %6835 = vmatmul.mubr.msk.bf16.vlgmr.msra.gmra.mrb[44].mxu0 %vm868_vm2, %v2374_v63  ;;  %v7304_v63 = vld [vmem:[%s8730_s5 + $0x50] sm:$0xff]  }
0x1289   : > { %6851 = vmatpush3.bf16.msra.mxu0 %v7292_v62  ;;  %6854 = vmatprep.mubr.msk.bf16.mxu0 %vm7454_vm1, %v7453_v3 }
0x128a   : > { %6852 = vmatprep.subr.bf16.mxu0 %v7453_v3 }
0x128d   : > { %6853 = vmatpush3.bf16.msra.mxu0 %v7293_v0  ;;  %v7305_v0 = vld [vmem:[%s8730_s5 + $0x58] sm:$0xff]  }
0x128e   : > { %6858 = vmatprep.subr.bf16.mxu0 %v7453_v3 }
0x1290   : > { %6855 = vmatmul.mubr.msk.bf16.vlgmr.msra.gmra.mrb[48].mxu0 %vm868_vm2, %v8013_v4 }
0x1291   : > { %6859 = vmatpush3.bf16.msra.mxu0 %v7294_v5  ;;  %6862 = vmatprep.mubr.msk.bf16.mxu0 %vm7454_vm1, %v7453_v3 }
0x1292   : > { %6860 = vmatprep.subr.bf16.mxu0 %v7453_v3 }
0x1295   : > { %6861 = vmatpush3.bf16.msra.mxu0 %v7295_v6 }
0x1296   : > { %6874 = vmatprep.subr.bf16.mxu0 %v7453_v3 }
0x1298   : > { %6863 = vmatmul.mubr.msk.bf16.vlgmr.msra.gmra.mrb[52].mxu0 %vm868_vm2, %v8013_v4 }
0x1299   : > { %6876 = vmatprep.mubr.msk.bf16.mxu0 %vm7454_vm1, %v7453_v3 }
0x135b   : > { %v2429_v10 = vpop.f32.mrb[44].mxu0 }
0x135c   : > { %v2430_v11 = vadd.f32 %v6130_v9, %v2429_v10  ;;  %v6836_v12 = vpop.f32.mrb[45].mxu0  ;;  %v7303_v10 = vld [vmem:[%s8731_s6 + $0x58] sm:$0xff]  }
0x135d   : > { %v2432_v13 = vpop.f32.mrb[46].mxu0 }
0x135e   : > { %v2433_v14 = vadd.f32 %v6130_v9, %v2432_v13  ;;  %v6837_v16 = vpop.f32.mrb[47].mxu0  ;;  %v2436_v52 = vmax.f32 %v2430_v11, 0.0 }
0x1360   : > { %v2437_v17 = vmax.f32 %v2433_v14, 0.0 }
0x1362   : > { %v2446_v19 = vpack.c.bf16 %v2437_v17, %v2436_v52 }
0x1363   : > { %v2626_v20 = vpop.f32.mrb[48].mxu0 }
0x1364   : > { %6847 = vmatmul.mubr.msk.bf16.vlgmr.msra.gmra.mrb[60].mxu1 %vm712_vm0, %v2446_v19  ;;  %v6856_v21 = vpop.f32.mrb[49].mxu0  ;;  %v2627_v33 = vadd.f32 %v6147_v31, %v2626_v20  ;;  %v6185_v20 = vld [vmem:[%s8735_s10 + $0x5] ss:$0 sm:$0xff]  ;;  %v7306_v31 = vld [vmem:[%s8732_s7 + $0x50] sm:$0xff]  }
0x1365   : > { %v2629_v22 = vpop.f32.mrb[50].mxu0  ;;  %6870 = vmatprep.mubr.msk.bf16.mxu1 %vm7454_vm1, %v7453_v3  ;;  %6867 = vmatpush3.bf16.msra.mxu1 %v7300_v48 }
0x1366   : > { %v6857_v23 = vpop.f32.mrb[51].mxu0  ;;  %v2765_v34 = vpack.c.bf16 %v2627_v33, %v2627_v33  ;;  %6868 = vmatprep.subr.bf16.mxu1 %v7453_v3 }
0x1369   : > { %6869 = vmatpush3.bf16.msra.mxu1 %v7301_v35 }
0x136a   : > { %6880 = vmatprep.subr.bf16.mxu1 %v7453_v3 }
0x136b   : > { %v2691_v25 = vpop.f32.mrb[52].mxu0 }
0x136c   : > { %v2692_v26 = vadd.f32 %v6156_v24, %v2691_v25  ;;  %v6864_v27 = vpop.f32.mrb[53].mxu0  ;;  %6871 = vmatmul.mubr.bf16.vlgmr.msra.gmra.mrb[64].mxu1 %v7452_v1  ;;  %v6176_v25 = vld [vmem:[%s8734_s9 + $0x5] ss:$0 sm:$0xff] }
0x136d   : > { %v2694_v28 = vpop.f32.mrb[54].mxu0  ;;  %6882 = vmatprep.mubr.msk.bf16.mxu1 %vm7454_vm1, %v7453_v3 }
0x136e   : > { %v2766_v29 = vpack.c.bf16 %v2692_v26, %v2692_v26  ;;  %v6865_v30 = vpop.f32.mrb[55].mxu0 }
0x1370   : > { %v2771_v32 = vsel %vm1046_vm3, %v2766_v29, 0 }
0x1371   : > { %6875 = vmatpush3.bf16.xpose.msra.mxu0 %v2771_v32  ;;  %v7307_v32 = vld [vmem:[%s8732_s7 + $0x58] sm:$0xff]  }
0x1372   : > { %6886 = vmatprep.subr.bf16.mxu0 %v7453_v3 }
0x1378   : > { %6877 = vmatmul.mubr.msk.bf16.vlgmr.msra.gmra.mrb[56].mxu0 %vm1046_vm3, %v2765_v34 }
0x1379   : > { %6890 = vmatprep.mubr.msk.bf16.mxu0 %vm7454_vm1, %v7453_v3  ;;  %6887 = vmatpush3.bf16.msra.mxu0 %v7304_v63 }
0x137a   : > { %6888 = vmatprep.subr.bf16.mxu0 %v7453_v3 }
0x137d   : > { %6889 = vmatpush3.bf16.msra.mxu0 %v7305_v0  ;;  %v7308_v0 = vld [vmem:[%s8731_s6 + $0x60] sm:$0xff]  }
0x137e   : > { %6902 = vmatprep.subr.bf16.mxu0 %v7453_v3 }
0x1380   : > { %6891 = vmatmul.mubr.msk.bf16.vlgmr.msra.gmra.mrb[60].mxu0 %vm868_vm2, %v8013_v4 }
0x1381   : > { %6906 = vmatprep.mubr.msk.bf16.mxu0 %vm7454_vm1, %v7453_v3  ;;  %6903 = vmatpush3.bf16.msra.mxu0 %v7306_v31 }
0x1382   : > { %6904 = vmatprep.subr.bf16.mxu0 %v7453_v3 }
0x1385   : > { %6905 = vmatpush3.bf16.msra.mxu0 %v7307_v32  ;;  %v6207_v32 = vld [vmem:[%s8734_s9 + $0x6] ss:$0 sm:$0xff] }
0x1386   : > { %6916 = vmatprep.subr.bf16.mxu0 %v7453_v3 }
0x1388   : > { %6907 = vmatmul.mubr.bf16.vlgmr.msra.gmra.mrb[64].mxu0 %v7452_v1 }
0x1389   : > { %6918 = vmatprep.mubr.msk.bf16.mxu0 %vm7454_vm1, %v7453_v3 }
0x1437   : > { %v8068_v37 = vpop.f32.mrb[60].mxu1 }
0x1438   : > { %v6848_v39 = vpop.f32.mrb[61].mxu1 }
0x1439   : > { %v2516_v36 = vpop.f32.mrb[62].mxu1 }
0x143a   : > { %v8076_v41 = vadd.f32 %v8073_v40, %v2516_v36  ;;  %v6849_v38 = vpop.f32.mrb[63].mxu1 }
0x143b   : > { %v6194_v38 = vld [vmem:[%s8736_s11 + $0x5] ss:$0 sm:$0xff] }
0x143f   : > { %v2759_v53 = vpop.f32.mrb[64].mxu1 }
0x1440   : > { %v6872_v54 = vpop.f32.mrb[65].mxu1  ;;  %v2760_v58 = vadd.f32 %v6165_v56, %v2759_v53 }
0x1441   : > { %v2762_v55 = vpop.f32.mrb[66].mxu1  ;;  %v6199_v54 = vld [vmem:[%s8733_s8 + $0x14] sm:$0xf] }
0x1442   : > { %v6873_v57 = vpop.f32.mrb[67].mxu1  ;;  %v2826_v59 = vpack.c.bf16 %v2760_v58, %v2760_v58  ;;  %v3186_v55 = vsel %vm1490_vm5, %v6199_v54, 0  ;;  %v6170_v58 = vld [vmem:[%s8733_s8 + $0x10] sm:$0xf] }
0x1443   : > { %v3232_v63 = vsel %vm1490_vm5, %v6170_v58, 0 }
0x1444   : > { %v2831_v62 = vsel %vm1490_vm5, %v2826_v59, 0 }
0x1445   : > { %6881 = vmatpush3.bf16.msra.mxu1 %v2831_v62 }
0x1446   : > { %6894 = vmatprep.subr.bf16.mxu1 %v7453_v3 }
0x144b   : > { %v2807_v43 = vpop.f32.mrb[56].mxu0 }
0x144c   : > { %v2813_v42 = vmul.f32 0.35355338, %v2807_v43  ;;  %v6878_v44 = vpop.f32.mrb[57].mxu0 }
0x144d   : > { %v2810_v45 = vpop.f32.mrb[58].mxu0 }
0x144e   : > { %v6879_v46 = vpop.f32.mrb[59].mxu0  ;;  %v2814_v47 = vsel %vm1046_vm3, %v2813_v42, -inf }
0x144f   : > { %2815 = vmax.xlane.f32.xlu0 %v2814_v47 }
0x1453   : > { %v2935_v11 = vpop.f32.mrb[60].mxu0 }
0x1454   : > { %v6892_v12 = vpop.f32.mrb[61].mxu0  ;;  %v2936_v29 = vadd.f32 %v6176_v25, %v2935_v11 }
0x1455   : > { %v2938_v13 = vpop.f32.mrb[62].mxu0 }
0x1456   : > { %v6893_v14 = vpop.f32.mrb[63].mxu0  ;;  %v3071_v30 = vpack.c.bf16 %v2936_v29, %v2936_v29  ;;  %v7311_v13 = vld [vmem:[%s8730_s5 + $0x68] sm:$0xff]  }
0x145b   : > { %v3065_v43 = vpop.f32.mrb[64].mxu0 }
0x145c   : > { %v6908_v44 = vpop.f32.mrb[65].mxu0 }
0x145d   : > { %v3068_v45 = vpop.f32.mrb[66].mxu0 }
0x145e   : > { %v6909_v47 = vpop.f32.mrb[67].mxu0 }
0x14dc   : > { %v2816_v15 = vpop.xlane.xlu0 %2815 }
0x14dd   : > { %v2817_v18 = vsub.f32 %v2813_v42, %v2816_v15  ;;  %v3066_v42 = vadd.f32 %v6194_v38, %v3065_v43  ;;  %v7312_v38 = vld [vmem:[%s8732_s7 + $0x60] sm:$0xff]   ;;  %v7313_v43 = vld [vmem:[%s8732_s7 + $0x68] sm:$0xff]  }
0x14df   : > { %v2818_v49 = vmul.f32 1.442695, %v2817_v18  ;;  %v3132_v46 = vpack.c.bf16 %v3066_v42, %v3066_v42 }
0x14e1   : > { %7394 = vpow2.f32 %v2818_v49  ;;  %v3137_v15 = vsel %vm1490_vm5, %v3132_v46, 0 }
0x14e2   : > { %6917 = vmatpush3.bf16.msra.mxu0 %v3137_v15 }
0x14e3   : > { %6928 = vmatprep.subr.bf16.mxu0 %v7453_v3 }
0x14eb   : > { %v7395_v50 = vpop.eup %7394 }
0x14ec   : > { %v2820_v51 = vsel %vm1046_vm3, %v7395_v50, 0.0 }
0x14ed   : > { %2821 = vadd.xlane.f32.xlu1 %v2820_v51 }
0x157a   : > { %v2822_v5 = vpop.xlane.xlu1 %2821 }
0x157b   : > { %7396 = vrcp.f32 %v2822_v5 }
0x1585   : > { %v7397_v6 = vpop.eup %7396 }
0x1586   : > { %v2824_v7 = vmul.f32 %v7397_v6, %v7395_v50  ;;  %v7309_v6 = vld [vmem:[%s8731_s6 + $0x68] sm:$0xff]  }
0x1588   : > { %v2825_v9 = vpack.c.bf16 %v2824_v7, %v2824_v7 }
0x158a   : > { %6883 = vmatmul.mubr.msk.bf16.vlgmr.msra.gmra.mrb[68].mxu1 %vm1046_vm3, %v2825_v9 }
0x158b   : > { %6895 = vmatpush3.bf16.msra.mxu1 %v7302_v8  ;;  %6898 = vmatprep.mubr.msk.bf16.mxu1 %vm7454_vm1, %v7453_v3  ;;  %v7310_v8 = vld [vmem:[%s8730_s5 + $0x60] sm:$0xff]  }
0x158c   : > { %6896 = vmatprep.subr.bf16.mxu1 %v7453_v3 }
0x158f   : > { %6897 = vmatpush3.bf16.msra.mxu1 %v7303_v10 }
0x1590   : > { %6910 = vmatprep.subr.bf16.mxu1 %v7453_v3 }
0x1592   : > { %6899 = vmatmul.mubr.msk.bf16.vlgmr.msra.gmra.mrb[72].mxu1 %vm868_vm2, %v8013_v4 }
0x1593   : > { %6912 = vmatprep.mubr.msk.bf16.mxu1 %vm7454_vm1, %v7453_v3 }
0x165d   : > { %v8112_v16 = vpop.f32.mrb[68].mxu1 }
0x165e   : > { %v6884_v52 = vpop.f32.mrb[69].mxu1  ;;  %v2873_v5 = vpack.c.bf16 %v8112_v16, %v8112_v16 }
0x165f   : > { %v2870_v17 = vpop.f32.mrb[70].mxu1 }
0x1660   : > { %v6885_v19 = vpop.f32.mrb[71].mxu1 }
0x1661   : > { %v6216_v19 = vld [vmem:[%s8735_s10 + $0x6] ss:$0 sm:$0xff] }
0x1665   : > { %v3000_v21 = vpop.f32.mrb[72].mxu1 }
0x1666   : > { %v3001_v22 = vadd.f32 %v6185_v20, %v3000_v21  ;;  %v6900_v23 = vpop.f32.mrb[73].mxu1 }
0x1667   : > { %v3003_v24 = vpop.f32.mrb[74].mxu1 }
0x1668   : > { %v3072_v26 = vpack.c.bf16 %v3001_v22, %v3001_v22  ;;  %v6901_v27 = vpop.f32.mrb[75].mxu1 }
0x166a   : > { %v3077_v28 = vsel %vm1046_vm3, %v3072_v26, 0 }
0x166b   : > { %6911 = vmatpush3.bf16.xpose.msra.mxu1 %v3077_v28 }
0x166c   : > { %6922 = vmatprep.subr.bf16.mxu1 %v7453_v3 }
0x1672   : > { %6913 = vmatmul.mubr.msk.bf16.vlgmr.msra.gmra.mrb[76].mxu1 %vm1046_vm3, %v3071_v30 }
0x1673   : > { %6924 = vmatprep.mubr.msk.bf16.mxu1 %vm7454_vm1, %v7453_v3  ;;  %6923 = vmatpush3.bf16.msra.mxu1 %v3186_v55 }
0x1674   : > { %6934 = vmatprep.subr.bf16.mxu1 %v7453_v3 }
0x1745   : > { %v3113_v33 = vpop.f32.mrb[76].mxu1 }
0x1746   : > { %v3119_v34 = vmul.f32 0.35355338, %v3113_v33  ;;  %v6914_v48 = vpop.f32.mrb[77].mxu1 }
0x1747   : > { %v3116_v35 = vpop.f32.mrb[78].mxu1 }
0x1748   : > { %v6915_v39 = vpop.f32.mrb[79].mxu1  ;;  %v3120_v36 = vsel %vm1046_vm3, %v3119_v34, -inf }
0x1749   : > { %3121 = vmax.xlane.f32.xlu0 %v3120_v36 }
0x17d6   : > { %v3122_v18 = vpop.xlane.xlu0 %3121 }
0x17d7   : > { %v3123_v49 = vsub.f32 %v3119_v34, %v3122_v18 }
0x17d9   : > { %v3124_v50 = vmul.f32 1.442695, %v3123_v49 }
0x17db   : > { %7398 = vpow2.f32 %v3124_v50 }
0x17e5   : > { %v7399_v51 = vpop.eup %7398 }
0x17e6   : > { %v3126_v53 = vsel %vm1046_vm3, %v7399_v51, 0.0 }
0x17e7   : > { %3127 = vadd.xlane.f32.xlu1 %v3126_v53 }
0x1874   : > { %v3128_v56 = vpop.xlane.xlu1 %3127 }
0x1875   : > { %7400 = vrcp.f32 %v3128_v56 }
0x187f   : > { %v7401_v57 = vpop.eup %7400 }
0x1880   : > { %v3130_v59 = vmul.f32 %v7401_v57, %v7399_v51  ;;  %v6225_v57 = vld [vmem:[%s8736_s11 + $0x6] ss:$0 sm:$0xff] }
0x1882   : > { %v3131_v62 = vpack.c.bf16 %v3130_v59, %v3130_v59 }
0x1884   : > { %6919 = vmatmul.mubr.msk.bf16.vlgmr.msra.gmra.mrb[68].mxu0 %vm1046_vm3, %v3131_v62 }
0x1885   : > { %6929 = vmatpush3.bf16.msra.mxu0 %v3232_v63  ;;  %6930 = vmatprep.mubr.msk.bf16.mxu0 %vm7454_vm1, %v7453_v3 }
0x1886   : > { %6942 = vmatprep.subr.bf16.mxu0 %v7453_v3 }
0x188c   : > { %6931 = vmatmul.mubr.msk.bf16.vlgmr.msra.gmra.mrb[72].mxu0 %vm1046_vm3, %v2873_v5 }
0x188d   : > { %6943 = vmatpush3.bf16.msra.mxu0 %v7308_v0  ;;  %6946 = vmatprep.mubr.msk.bf16.mxu0 %vm7454_vm1, %v7453_v3  ;;  %v6230_v0 = vld [vmem:[%s8733_s8 + $0x18] sm:$0xf] }
0x188e   : > { %6944 = vmatprep.subr.bf16.mxu0 %v7453_v3  ;;  %v3584_v5 = vsel %vm1490_vm5, %v6230_v0, 0 }
0x1891   : > { %6945 = vmatpush3.bf16.msra.mxu0 %v7309_v6 }
0x1892   : > { %6958 = vmatprep.subr.bf16.mxu0 %v7453_v3 }
0x1894   : > { %6947 = vmatmul.mubr.msk.bf16.vlgmr.msra.gmra.mrb[76].mxu0 %vm868_vm2, %v8013_v4 }
0x1895   : > { %6960 = vmatprep.mubr.msk.bf16.mxu0 %vm7454_vm1, %v7453_v3 }
0x1957   : > { %v3173_v7 = vpop.f32.mrb[68].mxu0 }
0x1958   : > { %v3179_v9 = vpack.c.bf16 %v3173_v7, %v3173_v7  ;;  %v6920_v10 = vpop.f32.mrb[69].mxu0 }
0x1959   : > { %v3176_v11 = vpop.f32.mrb[70].mxu0  ;;  %v7316_v10 = vld [vmem:[%s8730_s5 + $0x70] sm:$0xff]  }
0x195a   : > { %v6921_v12 = vpop.f32.mrb[71].mxu0  ;;  %6925 = vmatmul.mubr.msk.bf16.vlgmr.msra.gmra.mrb[80].mxu1 %vm1046_vm3, %v3179_v9  ;;  %v7317_v11 = vld [vmem:[%s8730_s5 + $0x78] sm:$0xff]  }
0x195b   : > { %6935 = vmatpush3.bf16.msra.mxu1 %v7310_v8  ;;  %6938 = vmatprep.mubr.msk.bf16.mxu1 %vm7454_vm1, %v7453_v3 }
0x195c   : > { %6936 = vmatprep.subr.bf16.mxu1 %v7453_v3 }
0x195f   : > { %v3268_v14 = vpop.f32.mrb[72].mxu0  ;;  %6937 = vmatpush3.bf16.msra.mxu1 %v7311_v13  ;;  %v7314_v13 = vld [vmem:[%s8731_s6 + $0x70] sm:$0xff]  }
0x1960   : > { %v6932_v16 = vpop.f32.mrb[73].mxu0  ;;  %6950 = vmatprep.subr.bf16.mxu1 %v7453_v3 }
0x1961   : > { %v3271_v52 = vpop.f32.mrb[74].mxu0 }
0x1962   : > { %v6933_v17 = vpop.f32.mrb[75].mxu0  ;;  %6939 = vmatmul.mubr.msk.bf16.vlgmr.msra.gmra.mrb[84].mxu1 %vm868_vm2, %v8013_v4 }
0x1963   : > { %6954 = vmatprep.mubr.msk.bf16.mxu1 %vm7454_vm1, %v7453_v3  ;;  %6951 = vmatpush3.bf16.msra.mxu1 %v7312_v38  ;;  %v7318_v38 = vld [vmem:[%s8732_s7 + $0x70] sm:$0xff]  }
0x1964   : > { %6952 = vmatprep.subr.bf16.mxu1 %v7453_v3 }
0x1967   : > { %v3398_v20 = vpop.f32.mrb[76].mxu0  ;;  %6953 = vmatpush3.bf16.msra.mxu1 %v7313_v43  ;;  %v7319_v43 = vld [vmem:[%s8732_s7 + $0x78] sm:$0xff]  }
0x1968   : > { %v3399_v21 = vadd.f32 %v6216_v19, %v3398_v20  ;;  %v6948_v22 = vpop.f32.mrb[77].mxu0  ;;  %6964 = vmatprep.subr.bf16.mxu1 %v7453_v3  ;;  %v7315_v19 = vld [vmem:[%s8731_s6 + $0x78] sm:$0xff]  }
0x1969   : > { %v3401_v23 = vpop.f32.mrb[78].mxu0 }
0x196a   : > { %v3470_v24 = vpack.c.bf16 %v3399_v21, %v3399_v21  ;;  %v6949_v25 = vpop.f32.mrb[79].mxu0  ;;  %6955 = vmatmul.mubr.bf16.vlgmr.msra.gmra.mrb[88].mxu1 %v7452_v1 }
0x196b   : > { %6966 = vmatprep.mubr.msk.bf16.mxu1 %vm7454_vm1, %v7453_v3 }
0x196c   : > { %v3475_v26 = vsel %vm1046_vm3, %v3470_v24, 0 }
0x196d   : > { %6959 = vmatpush3.bf16.xpose.msra.mxu0 %v3475_v26 }
0x196e   : > { %6970 = vmatprep.subr.bf16.mxu0 %v7453_v3 }
0x1a2d   : > { %v3222_v27 = vpop.f32.mrb[80].mxu1 }
0x1a2e   : > { %v8193_v28 = vadd.f32 %v3268_v14, %v3222_v27  ;;  %v6926_v29 = vpop.f32.mrb[81].mxu1 }
0x1a2f   : > { %v3225_v30 = vpop.f32.mrb[82].mxu1 }
0x1a30   : > { %v6927_v31 = vpop.f32.mrb[83].mxu1  ;;  %v6246_v30 = vld [vmem:[%s8735_s10 + $0x7] ss:$0 sm:$0xff] }
0x1a35   : > { %v3333_v33 = vpop.f32.mrb[84].mxu1 }
0x1a36   : > { %v3334_v34 = vadd.f32 %v6207_v32, %v3333_v33  ;;  %v6940_v48 = vpop.f32.mrb[85].mxu1 }
0x1a37   : > { %v3336_v35 = vpop.f32.mrb[86].mxu1 }
0x1a38   : > { %v3469_v39 = vpack.c.bf16 %v3334_v34, %v3334_v34  ;;  %v6941_v36 = vpop.f32.mrb[87].mxu1  ;;  %v6237_v34 = vld [vmem:[%s8734_s9 + $0x7] ss:$0 sm:$0xff] }
0x1a3a   : > { %6961 = vmatmul.mubr.msk.bf16.vlgmr.msra.gmra.mrb[80].mxu0 %vm1046_vm3, %v3469_v39 }
0x1a3b   : > { %6972 = vmatprep.mubr.msk.bf16.mxu0 %vm7454_vm1, %v7453_v3  ;;  %6971 = vmatpush3.bf16.msra.mxu0 %v3584_v5  ;;  %v6255_v5 = vld [vmem:[%s8736_s11 + $0x7] ss:$0 sm:$0xff] }
0x1a3c   : > { %6984 = vmatprep.subr.bf16.mxu0 %v7453_v3 }
0x1a3d   : > { %v3463_v54 = vpop.f32.mrb[88].mxu1 }
0x1a3e   : > { %v6956_v55 = vpop.f32.mrb[89].mxu1  ;;  %v3464_v59 = vadd.f32 %v6225_v57, %v3463_v54  ;;  %v2521_v57 = vadd.f32 %v8076_v41, %v7992_v61 }
0x1a3f   : > { %v3466_v56 = vpop.f32.mrb[90].mxu1 }
0x1a40   : > { %v6957_v58 = vpop.f32.mrb[91].mxu1  ;;  %v3530_v62 = vpack.c.bf16 %v3464_v59, %v3464_v59 }
0x1a42   : > { %v3535_v63 = vsel %vm1490_vm5, %v3530_v62, 0 }
0x1a43   : > { %6965 = vmatpush3.bf16.msra.mxu1 %v3535_v63 }
0x1a44   : > { %6976 = vmatprep.subr.bf16.mxu1 %v7453_v3 }
0x1b0d   : > { %v3511_v42 = vpop.f32.mrb[80].mxu0 }
0x1b0e   : > { %v3517_v44 = vmul.f32 0.35355338, %v3511_v42  ;;  %v6962_v45 = vpop.f32.mrb[81].mxu0  ;;  %v2514_v42 = vadd.f32 %v8073_v40, %v8068_v37 }
0x1b0f   : > { %v3514_v46 = vpop.f32.mrb[82].mxu0 }
0x1b10   : > { %v6963_v47 = vpop.f32.mrb[83].mxu0  ;;  %v3518_v15 = vsel %vm1046_vm3, %v3517_v44, -inf }
0x1b11   : > { %3519 = vmax.xlane.f32.xlu0 %v3518_v15 }
0x1b9e   : > { %v3520_v18 = vpop.xlane.xlu0 %3519 }
0x1b9f   : > { %v3521_v49 = vsub.f32 %v3517_v44, %v3520_v18 }
0x1ba1   : > { %v3522_v50 = vmul.f32 1.442695, %v3521_v49  ;;  %v2520_v49 = vadd.f32 %v2514_v42, %v7990_v60  ;;  %v2527_v60 = vsel %vm868_vm2, %v2521_v57, 0.0 }
0x1ba3   : > { %7402 = vpow2.f32 %v3522_v50  ;;  %v2524_v50 = vsel %vm868_vm2, %v2520_v49, 0.0 }
0x1bad   : > { %v7403_v51 = vpop.eup %7402 }
0x1bae   : > { %v3524_v53 = vsel %vm1046_vm3, %v7403_v51, 0.0 }
0x1baf   : > { %3525 = vadd.xlane.f32.xlu1 %v3524_v53 }
0x1c3c   : > { %v3526_v6 = vpop.xlane.xlu1 %3525 }
0x1c3d   : > { %7404 = vrcp.f32 %v3526_v6 }
0x1c47   : > { %v7405_v7 = vpop.eup %7404 }
0x1c48   : > { %v3528_v8 = vmul.f32 %v7405_v7, %v7403_v51 }
0x1c4a   : > { %v3529_v9 = vpack.c.bf16 %v3528_v8, %v3528_v8  ;;  %v6260_v8 = vld [vmem:[%s8733_s8 + $0x1c] sm:$0xf] }
0x1c4c   : > { %6967 = vmatmul.mubr.msk.bf16.vlgmr.msra.gmra.mrb[92].mxu1 %vm1046_vm3, %v3529_v9  ;;  %v3937_v9 = vsel %vm1490_vm5, %v6260_v8, 0 }
0x1c4d   : > { %6980 = vmatprep.mubr.msk.bf16.mxu1 %vm7454_vm1, %v7453_v3  ;;  %6977 = vmatpush3.bf16.msra.mxu1 %v7316_v10 }
0x1c4e   : > { %6978 = vmatprep.subr.bf16.mxu1 %v7453_v3 }
0x1c51   : > { %6979 = vmatpush3.bf16.msra.mxu1 %v7317_v11 }
0x1c52   : > { %6992 = vmatprep.subr.bf16.mxu1 %v7453_v3 }
0x1c54   : > { %6981 = vmatmul.mubr.msk.bf16.vlgmr.msra.gmra.mrb[96].mxu1 %vm868_vm2, %v8013_v4 }
0x1c55   : > { %6996 = vmatprep.mubr.msk.bf16.mxu1 %vm7454_vm1, %v7453_v3  ;;  %6993 = vmatpush3.bf16.msra.mxu1 %v7318_v38 }
0x1c56   : > { %6994 = vmatprep.subr.bf16.mxu1 %v7453_v3 }
0x1c59   : > { %6995 = vmatpush3.bf16.msra.mxu1 %v7319_v43 }
0x1c5a   : > { %7006 = vmatprep.subr.bf16.mxu1 %v7453_v3 }
0x1c5c   : > { %6997 = vmatmul.mubr.bf16.vlgmr.msra.gmra.mrb[100].mxu1 %v7452_v1 }
0x1c5d   : > { %7008 = vmatprep.mubr.msk.bf16.mxu1 %vm7454_vm1, %v7453_v3 }
0x1d1f   : > { %v3571_v12 = vpop.f32.mrb[92].mxu1 }
0x1d20   : > { %v3577_v14 = vpack.c.bf16 %v3571_v12, %v3571_v12  ;;  %v6968_v16 = vpop.f32.mrb[93].mxu1 }
0x1d21   : > { %v3574_v52 = vpop.f32.mrb[94].mxu1 }
0x1d22   : > { %v6969_v17 = vpop.f32.mrb[95].mxu1  ;;  %6973 = vmatmul.mubr.msk.bf16.vlgmr.msra.gmra.mrb[84].mxu0 %vm1046_vm3, %v3577_v14 }
0x1d23   : > { %6985 = vmatpush3.bf16.msra.mxu0 %v7314_v13  ;;  %6988 = vmatprep.mubr.msk.bf16.mxu0 %vm7454_vm1, %v7453_v3 }
0x1d24   : > { %6986 = vmatprep.subr.bf16.mxu0 %v7453_v3 }
0x1d27   : > { %6987 = vmatpush3.bf16.msra.mxu0 %v7315_v19  ;;  %v3686_v20 = vpop.f32.mrb[96].mxu1 }
0x1d28   : > { %7000 = vmatprep.subr.bf16.mxu0 %v7453_v3  ;;  %v6982_v21 = vpop.f32.mrb[97].mxu1  ;;  %v3687_v39 = vadd.f32 %v6237_v34, %v3686_v20  ;;  %v7320_v34 = vld [vmem:[%s8731_s6 + $0x80] sm:$0xff]  }
0x1d29   : > { %v3689_v22 = vpop.f32.mrb[98].mxu1 }
0x1d2a   : > { %6989 = vmatmul.mubr.msk.bf16.vlgmr.msra.gmra.mrb[88].mxu0 %vm868_vm2, %v8013_v4  ;;  %v6983_v23 = vpop.f32.mrb[99].mxu1  ;;  %v3822_v36 = vpack.c.bf16 %v3687_v39, %v3687_v39 }
0x1d2b   : > { %7002 = vmatprep.mubr.msk.bf16.mxu0 %vm7454_vm1, %v7453_v3  ;;  %v6262_v23 = vld [vmem:[%s8743_s18 + $0x5] ss:$0 sm:$0xff] }
0x1d2f   : > { %v3816_v62 = vpop.f32.mrb[100].mxu1 }
0x1d30   : > { %v6998_v63 = vpop.f32.mrb[101].mxu1  ;;  %v3817_v7 = vadd.f32 %v6255_v5, %v3816_v62 }
0x1d31   : > { %v3819_v0 = vpop.f32.mrb[102].mxu1 }
0x1d32   : > { %v6999_v6 = vpop.f32.mrb[103].mxu1  ;;  %v3883_v61 = vpack.c.bf16 %v3817_v7, %v3817_v7 }
0x1d33   : > { %v6263_v6 = vld [vmem:[%s8743_s18 + $0x11] ss:$0 sm:$0xff] }
0x1d34   : > { %v3888_v41 = vsel %vm1490_vm5, %v3883_v61, 0  ;;  %v6264_v61 = vld [vmem:[%s8743_s18 + $0x12] ss:$0 sm:$0xff] }
0x1d35   : > { %7007 = vmatpush3.bf16.msra.mxu1 %v3888_v41 }
0x1d36   : > { %7018 = vmatprep.subr.bf16.mxu1 %v7453_v3 }
0x1df5   : > { %v3620_v24 = vpop.f32.mrb[84].mxu0 }
0x1df6   : > { %v8255_v25 = vadd.f32 %v3620_v24, %v8193_v28  ;;  %v6974_v26 = vpop.f32.mrb[85].mxu0 }
0x1df7   : > { %v3623_v27 = vpop.f32.mrb[86].mxu0 }
0x1df8   : > { %v6975_v29 = vpop.f32.mrb[87].mxu0 }
0x1dfd   : > { %v3751_v31 = vpop.f32.mrb[88].mxu0 }
0x1dfe   : > { %v3752_v4 = vadd.f32 %v6246_v30, %v3751_v31  ;;  %v6990_v32 = vpop.f32.mrb[89].mxu0 }
0x1dff   : > { %v3754_v33 = vpop.f32.mrb[90].mxu0 }
0x1e00   : > { %v3823_v48 = vpack.c.bf16 %v3752_v4, %v3752_v4  ;;  %v6991_v35 = vpop.f32.mrb[91].mxu0 }
0x1e02   : > { %v3828_v28 = vsel %vm1046_vm3, %v3823_v48, 0 }
0x1e03   : > { %7001 = vmatpush3.bf16.xpose.msra.mxu0 %v3828_v28 }
0x1e04   : > { %7012 = vmatprep.subr.bf16.mxu0 %v7453_v3 }
0x1e0a   : > { %7003 = vmatmul.mubr.msk.bf16.vlgmr.msra.gmra.mrb[92].mxu0 %vm1046_vm3, %v3822_v36 }
0x1e0b   : > { %7014 = vmatprep.mubr.msk.bf16.mxu0 %vm7454_vm1, %v7453_v3  ;;  %7013 = vmatpush3.bf16.msra.mxu0 %v3937_v9 }
0x1e0c   : > { %7026 = vmatprep.subr.bf16.mxu0 %v7453_v3 }
0x1edd   : > { %v3864_v44 = vpop.f32.mrb[92].mxu0 }
0x1ede   : > { %v3870_v45 = vmul.f32 0.35355338, %v3864_v44  ;;  %v7004_v46 = vpop.f32.mrb[93].mxu0 }
0x1edf   : > { %v3867_v47 = vpop.f32.mrb[94].mxu0 }
0x1ee0   : > { %v7005_v15 = vpop.f32.mrb[95].mxu0  ;;  %v3871_v18 = vsel %vm1046_vm3, %v3870_v45, -inf }
0x1ee1   : > { %3872 = vmax.xlane.f32.xlu0 %v3871_v18  ;;  %v6140_v18 = vld [vmem:[%s8743_s18 + $0xf] ss:$0 sm:$0xff] }
0x1ee5   : > { %2525 = vadd.xlane.f32.xlu0 %v2524_v50 }
0x1f6e   : > { %v3873_v1 = vpop.xlane.xlu0 %3872 }
0x1f6f   : > { %v3874_v51 = vsub.f32 %v3870_v45, %v3873_v1  ;;  %v6141_v1 = vld [vmem:[%s8743_s18 + $0x10] ss:$0 sm:$0xff] }
0x1f71   : > { %v3875_v53 = vmul.f32 1.442695, %v3874_v51 }
0x1f72   : > { %v2526_v54 = vpop.xlane.xlu0 %2525 }
0x1f73   : > { %7406 = vpow2.f32 %v3875_v53  ;;  %v2530_v55 = vmul.f32 0.03125, %v2526_v54 }
0x1f75   : > { %v8284_v40 = vsub.f32 %v2520_v49, %v2530_v55 }
0x1f77   : > { %v2534_v58 = vmul.f32 %v8284_v40, %v8284_v40 }
0x1f79   : > { %v2536_v59 = vsel %vm868_vm2, %v2534_v58, 0.0  ;;  %v7322_v58 = vld [vmem:[%s8730_s5 + $0x80] sm:$0xff]  }
0x1f7d   : > { %v7407_v37 = vpop.eup %7406 }
0x1f7e   : > { %v3877_v56 = vsel %vm1046_vm3, %v7407_v37, 0.0 }
0x1f7f   : > { %3878 = vadd.xlane.f32.xlu1 %v3877_v56 }
0x1f83   : > { %2528 = vadd.xlane.f32.xlu1 %v2527_v60 }
0x1f87   : > { %2537 = vadd.xlane.f32.xlu1 %v2536_v59  ;;  %v7323_v59 = vld [vmem:[%s8730_s5 + $0x88] sm:$0xff]  }
0x200c   : > { %v3879_v10 = vpop.xlane.xlu1 %3878 }
0x200d   : > { %7408 = vrcp.f32 %v3879_v10  ;;  %v7324_v10 = vld [vmem:[%s8732_s7 + $0x80] sm:$0xff]  }
0x2010   : > { %v2529_v20 = vpop.xlane.xlu1 %2528 }
0x2011   : > { %v2531_v21 = vmul.f32 0.03125, %v2529_v20 }
0x2013   : > { %v2533_v24 = vsub.f32 %v2521_v57, %v2531_v21 }
0x2014   : > { %v2538_v48 = vpop.xlane.xlu1 %2537 }
0x2015   : > { %v2535_v32 = vmul.f32 %v2533_v24, %v2533_v24  ;;  %v2542_v35 = vmul.f32 0.03125, %v2538_v48 }
0x2017   : > { %v7409_v11 = vpop.eup %7408  ;;  %v2539_v33 = vsel %vm868_vm2, %v2535_v32, 0.0  ;;  %v2544_v28 = vadd.f32 1e-05, %v2542_v35  ;;  %v7327_v32 = vld [vmem:[%s8730_s5 + $0x98] sm:$0xff]   ;;  %v7328_v35 = vld [vmem:[%s8732_s7 + $0x90] sm:$0xff]  }
0x2018   : > { %v3881_v12 = vmul.f32 %v7409_v11, %v7407_v37  ;;  %v7442_v37 = vld [vmem:[%s8753_s21] sm:$0xff] }
0x2019   : > { %7410 = vrsqrt.f32 %v2544_v28 }
0x201a   : > { %v3882_v13 = vpack.c.bf16 %v3881_v12, %v3881_v12  ;;  %v7325_v12 = vld [vmem:[%s8732_s7 + $0x88] sm:$0xff]  }
0x201c   : > { %7009 = vmatmul.mubr.msk.bf16.vlgmr.msra.gmra.mrb[104].mxu1 %vm1046_vm3, %v3882_v13  ;;  %v6279_v13 = vld [vmem:[%s8735_s10 + $0x8] ss:$0 sm:$0xff] }
0x201d   : > { %7022 = vmatprep.mubr.msk.bf16.mxu1 %vm7454_vm1, %v7453_v3  ;;  %7019 = vmatpush3.bf16.msra.mxu1 %v7322_v58 }
0x201e   : > { %7020 = vmatprep.subr.bf16.mxu1 %v7453_v3 }
0x2021   : > { %7021 = vmatpush3.bf16.msra.mxu1 %v7323_v59 }
0x2022   : > { %7034 = vmatprep.subr.bf16.mxu1 %v7453_v3 }
0x2023   : > { %v7411_v47 = vpop.eup %7410 }
0x2024   : > { %v2548_v15 = vmul.f32 %v7411_v47, %v8284_v40  ;;  %v7443_v40 = vld [vmem:[%s8753_s21 + $0x8] sm:$0xff] }
0x2026   : > { %v2554_v49 = vmul.f32 %v6140_v18, %v2548_v15 }
0x2028   : > { %v2560_v54 = vadd.f32 %v6141_v1, %v2554_v49 }
0x202a   : > { %v4013_v56 = vadd.f32 %v7442_v37, %v2560_v54 }
0x20ef   : > { %v3924_v14 = vpop.f32.mrb[104].mxu1 }
0x20f0   : > { %v3930_v16 = vpack.c.bf16 %v3924_v14, %v3924_v14  ;;  %v7010_v52 = vpop.f32.mrb[105].mxu1 }
0x20f1   : > { %v3927_v17 = vpop.f32.mrb[106].mxu1 }
0x20f2   : > { %v7011_v19 = vpop.f32.mrb[107].mxu1  ;;  %7015 = vmatmul.mubr.msk.bf16.vlgmr.msra.gmra.mrb[96].mxu0 %vm1046_vm3, %v3930_v16 }
0x20f3   : > { %7030 = vmatprep.mubr.msk.bf16.mxu0 %vm7454_vm1, %v7453_v3  ;;  %7027 = vmatpush3.bf16.msra.mxu0 %v7320_v34 }
0x20f4   : > { %7028 = vmatprep.subr.bf16.mxu0 %v7453_v3 }
0x21c5   : > { %v3973_v22 = vpop.f32.mrb[96].mxu0 }
0x21c6   : > { %v3979_v26 = vadd.f32 %v3973_v22, %v8255_v25  ;;  %v7016_v27 = vpop.f32.mrb[97].mxu0  ;;  %v7321_v25 = vld [vmem:[%s8731_s6 + $0x88] sm:$0xff]  }
0x21c7   : > { %v3976_v29 = vpop.f32.mrb[98].mxu0  ;;  %7029 = vmatpush3.bf16.msra.mxu0 %v7321_v25 }
0x21c8   : > { %v7017_v30 = vpop.f32.mrb[99].mxu0  ;;  %v3985_v31 = vadd.f32 %v6262_v23, %v3979_v26  ;;  %7042 = vmatprep.subr.bf16.mxu0 %v7453_v3  ;;  %v6270_v23 = vld [vmem:[%s8734_s9 + $0x8] ss:$0 sm:$0xff] }
0x21c9   : > { %v7326_v30 = vld [vmem:[%s8730_s5 + $0x90] sm:$0xff]  }
0x21ca   : > { %v3989_v4 = vsel %vm868_vm2, %v3985_v31, 0.0 }
0x21cb   : > { %3990 = vadd.xlane.f32.xlu0 %v3989_v4 }
0x21cf   : > { %2540 = vadd.xlane.f32.xlu0 %v2539_v33  ;;  %v6288_v33 = vld [vmem:[%s8736_s11 + $0x8] ss:$0 sm:$0xff] }
0x2258   : > { %v3991_v39 = vpop.xlane.xlu0 %3990 }
0x2259   : > { %v3992_v36 = vmul.f32 0.03125, %v3991_v39 }
0x225b   : > { %v3993_v38 = vsub.f32 %v3985_v31, %v3992_v36 }
0x225c   : > { %v2541_v43 = vpop.xlane.xlu0 %2540 }
0x225d   : > { %v2543_v42 = vmul.f32 0.03125, %v2541_v43  ;;  %v3994_v44 = vmul.f32 %v3993_v38, %v3993_v38  ;;  %v7329_v43 = vld [vmem:[%s8732_s7 + $0x98] sm:$0xff]  }
0x225f   : > { %v2545_v45 = vadd.f32 1e-05, %v2543_v42  ;;  %v3995_v46 = vsel %vm868_vm2, %v3994_v44, 0.0 }
0x2260   : > { %3996 = vadd.xlane.f32.xlu1 %v3995_v46 }
0x2261   : > { %7412 = vrsqrt.f32 %v2545_v45 }
0x226b   : > { %v7413_v50 = vpop.eup %7412 }
0x226c   : > { %v2549_v51 = vmul.f32 %v7413_v50, %v2533_v24 }
0x226e   : > { %v2555_v53 = vmul.f32 %v6140_v18, %v2549_v51  ;;  %v6318_v51 = vld [vmem:[%s8736_s11 + $0x9] ss:$0 sm:$0xff] }
0x2270   : > { %v2561_v55 = vadd.f32 %v6141_v1, %v2555_v53 }
0x2272   : > { %v4014_v57 = vadd.f32 %v7443_v40, %v2561_v55 }
0x2274   : > { %v8337_v60 = vpack.c.bf16 %v4014_v57, %v4013_v56 }
0x2276   : > { %7031 = vmatmul.mubr.msk.bf16.vlgmr.msra.gmra.mrb[100].mxu0 %vm868_vm2, %v8337_v60 }
0x2277   : > { %7044 = vmatprep.mubr.msk.bf16.mxu0 %vm7454_vm1, %v7453_v3 }
0x22ed   : > { %v3997_v62 = vpop.xlane.xlu1 %3996 }
0x22ee   : > { %v3998_v63 = vmul.f32 0.03125, %v3997_v62 }
0x22f0   : > { %v3999_v0 = vadd.f32 1e-05, %v3998_v63 }
0x22f2   : > { %7414 = vrsqrt.f32 %v3999_v0 }
0x22fc   : > { %v7415_v5 = vpop.eup %7414 }
0x22fd   : > { %v4001_v7 = vmul.f32 %v7415_v5, %v3993_v38 }
0x22ff   : > { %v4006_v41 = vmul.f32 %v6263_v6, %v4001_v7 }
0x2301   : > { %v8357_v8 = vadd.f32 %v6264_v61, %v4006_v41  ;;  %v7330_v61 = vld [vmem:[%s8731_s6 + $0x90] sm:$0xff]  }
0x2303   : > { %v4012_v9 = vadd.f32 %v8357_v8, %v8008_v2  ;;  %v8374_v2 = vpack.c.bf16 %v2561_v55, %v2560_v54 }
0x2305   : > { %v8364_v11 = vpack.c.bf16 %v4012_v9, %v4012_v9  ;;  %v7331_v9 = vld [vmem:[%s8731_s6 + $0x98] sm:$0xff]  }
0x2307   : > { %7023 = vmatmul.mubr.msk.bf16.vlgmr.msra.gmra.mrb[108].mxu1 %vm868_vm2, %v8364_v11 }
0x2308   : > { %7035 = vmatpush3.bf16.msra.mxu1 %v7324_v10  ;;  %7038 = vmatprep.mubr.msk.bf16.mxu1 %vm7454_vm1, %v7453_v3 }
0x2309   : > { %7036 = vmatprep.subr.bf16.mxu1 %v7453_v3 }
0x230c   : > { %7037 = vmatpush3.bf16.msra.mxu1 %v7325_v12 }
0x230d   : > { %7048 = vmatprep.subr.bf16.mxu1 %v7453_v3 }
0x230f   : > { %7039 = vmatmul.mubr.msk.bf16.vlgmr.msra.gmra.mrb[112].mxu1 %vm868_vm2, %v8374_v2 }
0x2310   : > { %7050 = vmatprep.mubr.msk.bf16.mxu1 %vm7454_vm1, %v7453_v3 }
0x2349   : > { %v4148_v14 = vpop.f32.mrb[100].mxu0 }
0x234a   : > { %v7032_v16 = vpop.f32.mrb[101].mxu0  ;;  %v4149_v17 = vadd.f32 %v6279_v13, %v4148_v14 }
0x234b   : > { %v4151_v52 = vpop.f32.mrb[102].mxu0  ;;  %v6309_v16 = vld [vmem:[%s8735_s10 + $0x9] ss:$0 sm:$0xff] }
0x234c   : > { %v4152_v19 = vadd.f32 %v6279_v13, %v4151_v52  ;;  %v7033_v20 = vpop.f32.mrb[103].mxu0 }
0x234e   : > { %v4225_v21 = vpack.c.bf16 %v4152_v19, %v4149_v17 }
0x2350   : > { %v4230_v22 = vsel %vm1046_vm3, %v4225_v21, 0 }
0x2351   : > { %7043 = vmatpush3.bf16.xpose.msra.mxu0 %v4230_v22 }
0x2352   : > { %7054 = vmatprep.subr.bf16.mxu0 %v7453_v3 }
0x23da   : > { %v4080_v24 = vpop.f32.mrb[108].mxu1 }
0x23db   : > { %v4081_v26 = vadd.f32 %v6270_v23, %v4080_v24  ;;  %v7024_v27 = vpop.f32.mrb[109].mxu1  ;;  %v6300_v24 = vld [vmem:[%s8734_s9 + $0x9] ss:$0 sm:$0xff] }
0x23dc   : > { %v4083_v29 = vpop.f32.mrb[110].mxu1 }
0x23dd   : > { %v4224_v31 = vpack.c.bf16 %v4081_v26, %v4081_v26  ;;  %v7025_v4 = vpop.f32.mrb[111].mxu1 }
0x23df   : > { %7045 = vmatmul.mubr.msk.bf16.vlgmr.msra.gmra.mrb[104].mxu0 %vm1046_vm3, %v4224_v31 }
0x23e0   : > { %7055 = vmatpush3.bf16.msra.mxu0 %v7326_v30  ;;  %7058 = vmatprep.mubr.msk.bf16.mxu0 %vm7454_vm1, %v7453_v3 }
0x23e1   : > { %7056 = vmatprep.subr.bf16.mxu0 %v7453_v3 }
0x23e2   : > { %v4217_v34 = vpop.f32.mrb[112].mxu1 }
0x23e3   : > { %v7040_v25 = vpop.f32.mrb[113].mxu1  ;;  %v4218_v28 = vadd.f32 %v6288_v33, %v4217_v34 }
0x23e4   : > { %v4220_v48 = vpop.f32.mrb[114].mxu1  ;;  %7057 = vmatpush3.bf16.msra.mxu0 %v7327_v32 }
0x23e5   : > { %v4221_v39 = vadd.f32 %v6288_v33, %v4220_v48  ;;  %v7041_v36 = vpop.f32.mrb[115].mxu1  ;;  %7070 = vmatprep.subr.bf16.mxu0 %v7453_v3 }
0x23e6   : > { %v6324_v36 = vld [vmem:[%s8733_s8 + $0x24] sm:$0xf] }
0x23e7   : > { %v4285_v38 = vpack.c.bf16 %v4221_v39, %v4218_v28  ;;  %7059 = vmatmul.mubr.msk.bf16.vlgmr.msra.gmra.mrb[108].mxu0 %vm868_vm2, %v8364_v11 }
0x23e8   : > { %7071 = vmatpush3.bf16.msra.mxu0 %v7328_v35  ;;  %7074 = vmatprep.mubr.msk.bf16.mxu0 %vm7454_vm1, %v7453_v3 }
0x23e9   : > { %7049 = vmatpush3.bf16.msra.mxu1 %v4285_v38  ;;  %7072 = vmatprep.subr.bf16.mxu0 %v7453_v3  ;;  %v4641_v38 = vsel %vm1490_vm5, %v6324_v36, 0 }
0x23ea   : > { %7062 = vmatprep.subr.bf16.mxu1 %v7453_v3 }
0x23ec   : > { %7073 = vmatpush3.bf16.msra.mxu0 %v7329_v43 }
0x23ed   : > { %7084 = vmatprep.subr.bf16.mxu0 %v7453_v3 }
0x23ef   : > { %7075 = vmatmul.mubr.msk.bf16.vlgmr.msra.gmra.mrb[112].mxu0 %vm868_vm2, %v8374_v2 }
0x23f0   : > { %7086 = vmatprep.mubr.msk.bf16.mxu0 %vm7454_vm1, %v7453_v3 }
0x24b2   : > { %v4266_v42 = vpop.f32.mrb[104].mxu0 }
0x24b3   : > { %v4272_v44 = vmul.f32 0.35355338, %v4266_v42  ;;  %v7046_v45 = vpop.f32.mrb[105].mxu0 }
0x24b4   : > { %v4269_v46 = vpop.f32.mrb[106].mxu0 }
0x24b5   : > { %v7047_v47 = vpop.f32.mrb[107].mxu0  ;;  %v4273_v15 = vsel %vm1096_vm4, %v4272_v44, -inf }
0x24b6   : > { %4274 = vmax.xlane.f32.xlu0 %v4273_v15  ;;  %v7332_v15 = vld [vmem:[%s8731_s6 + $0xa0] sm:$0xff]  }
0x24ba   : > { %v4391_v18 = vpop.f32.mrb[108].mxu0 }
0x24bb   : > { %v7060_v49 = vpop.f32.mrb[109].mxu0  ;;  %v4392_v27 = vadd.f32 %v6300_v24, %v4391_v18 }
0x24bc   : > { %v4394_v50 = vpop.f32.mrb[110].mxu0  ;;  %v7333_v49 = vld [vmem:[%s8731_s6 + $0xa8] sm:$0xff]  }
0x24bd   : > { %v7061_v1 = vpop.f32.mrb[111].mxu0  ;;  %v4529_v29 = vpack.c.bf16 %v4392_v27, %v4392_v27 }
0x24be   : > { %v7334_v1 = vld [vmem:[%s8730_s5 + $0xa0] sm:$0xff]  }
0x24c2   : > { %v4522_v53 = vpop.f32.mrb[112].mxu0 }
0x24c3   : > { %v7076_v54 = vpop.f32.mrb[113].mxu0  ;;  %v4523_v37 = vadd.f32 %v6318_v51, %v4522_v53 }
0x24c4   : > { %v4525_v55 = vpop.f32.mrb[114].mxu0 }
0x24c5   : > { %v4526_v56 = vadd.f32 %v6318_v51, %v4525_v55  ;;  %v7077_v40 = vpop.f32.mrb[115].mxu0 }
0x24c6   : > { %v7336_v40 = vld [vmem:[%s8732_s7 + $0xa0] sm:$0xff]  }
0x24c7   : > { %v4590_v57 = vpack.c.bf16 %v4526_v56, %v4523_v37  ;;  %v7335_v37 = vld [vmem:[%s8730_s5 + $0xa8] sm:$0xff]  }
0x24c9   : > { %7085 = vmatpush3.bf16.msra.mxu0 %v4590_v57 }
0x24ca   : > { %7096 = vmatprep.subr.bf16.mxu0 %v7453_v3 }
0x2543   : > { %v4275_v58 = vpop.xlane.xlu0 %4274 }
0x2544   : > { %v4276_v59 = vsub.f32 %v4272_v44, %v4275_v58  ;;  %v6294_v44 = vld [vmem:[%s8733_s8 + $0x20] sm:$0xf] }
0x2545   : > { %v4687_v47 = vsel %vm1490_vm5, %v6294_v44, 0 }
0x2546   : > { %v4277_v62 = vmul.f32 1.442695, %v4276_v59 }
0x2548   : > { %7416 = vpow2.f32 %v4277_v62  ;;  %v7337_v62 = vld [vmem:[%s8732_s7 + $0xa8] sm:$0xff]  }
0x2552   : > { %v7417_v63 = vpop.eup %7416 }
0x2553   : > { %v4279_v0 = vsel %vm1096_vm4, %v7417_v63, 0.0 }
0x2554   : > { %4280 = vadd.xlane.f32.xlu1 %v4279_v0 }
0x25e1   : > { %v4281_v5 = vpop.xlane.xlu1 %4280 }
0x25e2   : > { %7418 = vrcp.f32 %v4281_v5 }
0x25ec   : > { %v7419_v6 = vpop.eup %7418 }
0x25ed   : > { %v4283_v7 = vmul.f32 %v7419_v6, %v7417_v63  ;;  %v6341_v63 = vld [vmem:[%s8735_s10 + $0xa] ss:$0 sm:$0xff] }
0x25ef   : > { %v4284_v41 = vpack.c.bf16 %v4283_v7, %v4283_v7 }
0x25f1   : > { %7051 = vmatmul.mubr.msk.bf16.vlgmr.msra.gmra.mrb[116].mxu1 %vm1096_vm4, %v4284_v41 }
0x25f2   : > { %7063 = vmatpush3.bf16.msra.mxu1 %v7330_v61  ;;  %7066 = vmatprep.mubr.msk.bf16.mxu1 %vm7454_vm1, %v7453_v3 }
0x25f3   : > { %7064 = vmatprep.subr.bf16.mxu1 %v7453_v3 }
0x25f6   : > { %7065 = vmatpush3.bf16.msra.mxu1 %v7331_v9 }
0x25f7   : > { %7078 = vmatprep.subr.bf16.mxu1 %v7453_v3 }
0x25f9   : > { %7067 = vmatmul.mubr.msk.bf16.vlgmr.msra.gmra.mrb[120].mxu1 %vm868_vm2, %v8337_v60 }
0x25fa   : > { %7080 = vmatprep.mubr.msk.bf16.mxu1 %vm7454_vm1, %v7453_v3 }
0x26c4   : > { %v4323_v10 = vpop.f32.mrb[116].mxu1 }
0x26c5   : > { %v7052_v12 = vpop.f32.mrb[117].mxu1  ;;  %v4329_v18 = vpack.c.bf16 %v4323_v10, %v4323_v10 }
0x26c6   : > { %v4326_v13 = vpop.f32.mrb[118].mxu1 }
0x26c7   : > { %v7053_v14 = vpop.f32.mrb[119].mxu1 }
0x26cc   : > { %v4456_v52 = vpop.f32.mrb[120].mxu1 }
0x26cd   : > { %v7068_v17 = vpop.f32.mrb[121].mxu1  ;;  %v4457_v20 = vadd.f32 %v6309_v16, %v4456_v52 }
0x26ce   : > { %v4459_v19 = vpop.f32.mrb[122].mxu1  ;;  %v6332_v17 = vld [vmem:[%s8734_s9 + $0xa] ss:$0 sm:$0xff] }
0x26cf   : > { %v4460_v21 = vadd.f32 %v6309_v16, %v4459_v19  ;;  %v7069_v22 = vpop.f32.mrb[123].mxu1 }
0x26d1   : > { %v4530_v23 = vpack.c.bf16 %v4460_v21, %v4457_v20 }
0x26d3   : > { %v4535_v26 = vsel %vm1046_vm3, %v4530_v23, 0 }
0x26d4   : > { %7079 = vmatpush3.bf16.xpose.msra.mxu1 %v4535_v26  ;;  %v6350_v26 = vld [vmem:[%s8736_s11 + $0xa] ss:$0 sm:$0xff] }
0x26d5   : > { %7090 = vmatprep.subr.bf16.mxu1 %v7453_v3 }
0x26db   : > { %7081 = vmatmul.mubr.msk.bf16.vlgmr.msra.gmra.mrb[124].mxu1 %vm1046_vm3, %v4529_v29 }
0x26dc   : > { %7092 = vmatprep.mubr.msk.bf16.mxu1 %vm7454_vm1, %v7453_v3  ;;  %7091 = vmatpush3.bf16.msra.mxu1 %v4641_v38 }
0x26dd   : > { %7102 = vmatprep.subr.bf16.mxu1 %v7453_v3 }
0x27ae   : > { %v4571_v30 = vpop.f32.mrb[124].mxu1 }
0x27af   : > { %v4577_v31 = vmul.f32 0.35355338, %v4571_v30  ;;  %v7082_v4 = vpop.f32.mrb[125].mxu1 }
0x27b0   : > { %v4574_v32 = vpop.f32.mrb[126].mxu1 }
0x27b1   : > { %v7083_v33 = vpop.f32.mrb[127].mxu1  ;;  %v4578_v34 = vsel %vm1096_vm4, %v4577_v31, -inf }
0x27b2   : > { %4579 = vmax.xlane.f32.xlu0 %v4578_v34 }
0x283f   : > { %v4580_v25 = vpop.xlane.xlu0 %4579 }
0x2840   : > { %v4581_v48 = vsub.f32 %v4577_v31, %v4580_v25 }
0x2842   : > { %v4582_v35 = vmul.f32 1.442695, %v4581_v48 }
0x2844   : > { %7420 = vpow2.f32 %v4582_v35 }
0x284e   : > { %v7421_v28 = vpop.eup %7420 }
0x284f   : > { %v4584_v39 = vsel %vm1096_vm4, %v7421_v28, 0.0 }
0x2850   : > { %4585 = vadd.xlane.f32.xlu1 %v4584_v39 }
0x28dd   : > { %v4586_v43 = vpop.xlane.xlu1 %4585 }
0x28de   : > { %7422 = vrcp.f32 %v4586_v43 }
0x28e8   : > { %v7423_v42 = vpop.eup %7422 }
0x28e9   : > { %v4588_v45 = vmul.f32 %v7423_v42, %v7421_v28 }
0x28eb   : > { %v4589_v46 = vpack.c.bf16 %v4588_v45, %v4588_v45  ;;  %v6356_v45 = vld [vmem:[%s8733_s8 + $0x28] sm:$0xf] }
0x28ed   : > { %7087 = vmatmul.mubr.msk.bf16.vlgmr.msra.gmra.mrb[116].mxu0 %vm1096_vm4, %v4589_v46  ;;  %v5038_v46 = vsel %vm1490_vm5, %v6356_v45, 0 }
0x28ee   : > { %7097 = vmatpush3.bf16.msra.mxu0 %v4687_v47  ;;  %7098 = vmatprep.mubr.msk.bf16.mxu0 %vm7454_vm1, %v7453_v3 }
0x28ef   : > { %7110 = vmatprep.subr.bf16.mxu0 %v7453_v3 }
0x28f5   : > { %7099 = vmatmul.mubr.msk.bf16.vlgmr.msra.gmra.mrb[120].mxu0 %vm1046_vm3, %v4329_v18 }
0x28f6   : > { %7111 = vmatpush3.bf16.msra.mxu0 %v7332_v15  ;;  %7114 = vmatprep.mubr.msk.bf16.mxu0 %vm7454_vm1, %v7453_v3 }
0x28f7   : > { %7112 = vmatprep.subr.bf16.mxu0 %v7453_v3 }
0x28fa   : > { %7113 = vmatpush3.bf16.msra.mxu0 %v7333_v49  ;;  %v7338_v49 = vld [vmem:[%s8730_s5 + $0xb0] sm:$0xff]  }
0x28fb   : > { %7126 = vmatprep.subr.bf16.mxu0 %v7453_v3 }
0x28fd   : > { %7115 = vmatmul.mubr.msk.bf16.vlgmr.msra.gmra.mrb[124].mxu0 %vm868_vm2, %v8337_v60 }
0x28fe   : > { %7128 = vmatprep.mubr.msk.bf16.mxu0 %vm7454_vm1, %v7453_v3 }
0x29c0   : > { %v4628_v50 = vpop.f32.mrb[116].mxu0 }
0x29c1   : > { %v4634_v51 = vpack.c.bf16 %v4628_v50, %v4628_v50  ;;  %v7088_v53 = vpop.f32.mrb[117].mxu0 }
0x29c2   : > { %v4631_v54 = vpop.f32.mrb[118].mxu0  ;;  %v7341_v53 = vld [vmem:[%s8732_s7 + $0xb8] sm:$0xff]  }
0x29c3   : > { %v7089_v55 = vpop.f32.mrb[119].mxu0  ;;  %7093 = vmatmul.mubr.msk.bf16.vlgmr.msra.gmra.mrb[128].mxu1 %vm1046_vm3, %v4634_v51  ;;  %v7340_v51 = vld [vmem:[%s8732_s7 + $0xb0] sm:$0xff]  }
0x29c4   : > { %7103 = vmatpush3.bf16.msra.mxu1 %v7334_v1  ;;  %7106 = vmatprep.mubr.msk.bf16.mxu1 %vm7454_vm1, %v7453_v3  ;;  %v7339_v1 = vld [vmem:[%s8730_s5 + $0xb8] sm:$0xff]   ;;  %v7342_v54 = vld [vmem:[%s8731_s6 + $0xb0] sm:$0xff]  }
0x29c5   : > { %7104 = vmatprep.subr.bf16.mxu1 %v7453_v3 }
0x29c8   : > { %v4723_v56 = vpop.f32.mrb[120].mxu0  ;;  %7105 = vmatpush3.bf16.msra.mxu1 %v7335_v37 }
0x29c9   : > { %v7100_v57 = vpop.f32.mrb[121].mxu0  ;;  %7118 = vmatprep.subr.bf16.mxu1 %v7453_v3 }
0x29ca   : > { %v4726_v58 = vpop.f32.mrb[122].mxu0  ;;  %v7343_v57 = vld [vmem:[%s8731_s6 + $0xb8] sm:$0xff]  }
0x29cb   : > { %v7101_v59 = vpop.f32.mrb[123].mxu0  ;;  %7107 = vmatmul.mubr.msk.bf16.vlgmr.msra.gmra.mrb[132].mxu1 %vm868_vm2, %v8364_v11 }
0x29cc   : > { %7119 = vmatpush3.bf16.msra.mxu1 %v7336_v40  ;;  %7122 = vmatprep.mubr.msk.bf16.mxu1 %vm7454_vm1, %v7453_v3 }
0x29cd   : > { %7120 = vmatprep.subr.bf16.mxu1 %v7453_v3 }
0x29d0   : > { %v4853_v0 = vpop.f32.mrb[124].mxu0  ;;  %7121 = vmatpush3.bf16.msra.mxu1 %v7337_v62 }
0x29d1   : > { %v7116_v5 = vpop.f32.mrb[125].mxu0  ;;  %7132 = vmatprep.subr.bf16.mxu1 %v7453_v3  ;;  %v4854_v7 = vadd.f32 %v6341_v63, %v4853_v0 }
0x29d2   : > { %v4856_v6 = vpop.f32.mrb[126].mxu0 }
0x29d3   : > { %v4857_v61 = vadd.f32 %v6341_v63, %v4856_v6  ;;  %v7117_v41 = vpop.f32.mrb[127].mxu0  ;;  %7123 = vmatmul.mubr.msk.bf16.vlgmr.msra.gmra.mrb[136].mxu1 %vm868_vm2, %v8374_v2  ;;  %v6381_v63 = vld [vmem:[%s8736_s11 + $0xb] ss:$0 sm:$0xff] }
0x29d4   : > { %7134 = vmatprep.mubr.msk.bf16.mxu1 %vm7454_vm1, %v7453_v3 }
0x29d5   : > { %v4927_v9 = vpack.c.bf16 %v4857_v61, %v4854_v7 }
0x29d7   : > { %v4932_v10 = vsel %vm1046_vm3, %v4927_v9, 0 }
0x29d8   : > { %7127 = vmatpush3.bf16.xpose.msra.mxu0 %v4932_v10 }
0x29d9   : > { %7138 = vmatprep.subr.bf16.mxu0 %v7453_v3 }
0x2a96   : > { %v4677_v12 = vpop.f32.mrb[128].mxu1 }
0x2a97   : > { %v8514_v13 = vadd.f32 %v4723_v56, %v4677_v12  ;;  %v7094_v14 = vpop.f32.mrb[129].mxu1 }
0x2a98   : > { %v4680_v16 = vpop.f32.mrb[130].mxu1 }
0x2a99   : > { %v7095_v52 = vpop.f32.mrb[131].mxu1 }
0x2a9a   : > { %v6372_v52 = vld [vmem:[%s8735_s10 + $0xb] ss:$0 sm:$0xff] }
0x2a9e   : > { %v4788_v19 = vpop.f32.mrb[132].mxu1 }
0x2a9f   : > { %v4789_v20 = vadd.f32 %v6332_v17, %v4788_v19  ;;  %v7108_v21 = vpop.f32.mrb[133].mxu1 }
0x2aa0   : > { %v4791_v22 = vpop.f32.mrb[134].mxu1 }
0x2aa1   : > { %v4926_v23 = vpack.c.bf16 %v4789_v20, %v4789_v20  ;;  %v7109_v24 = vpop.f32.mrb[135].mxu1 }
0x2aa3   : > { %7129 = vmatmul.mubr.msk.bf16.vlgmr.msra.gmra.mrb[128].mxu0 %vm1046_vm3, %v4926_v23 }
0x2aa4   : > { %7140 = vmatprep.mubr.msk.bf16.mxu0 %vm7454_vm1, %v7453_v3  ;;  %7139 = vmatpush3.bf16.msra.mxu0 %v5038_v46 }
0x2aa5   : > { %7152 = vmatprep.subr.bf16.mxu0 %v7453_v3 }
0x2aa6   : > { %v4919_v27 = vpop.f32.mrb[136].mxu1 }
0x2aa7   : > { %v7124_v29 = vpop.f32.mrb[137].mxu1  ;;  %v4920_v31 = vadd.f32 %v6350_v26, %v4919_v27 }
0x2aa8   : > { %v4922_v30 = vpop.f32.mrb[138].mxu1 }
0x2aa9   : > { %v4923_v4 = vadd.f32 %v6350_v26, %v4922_v30  ;;  %v7125_v32 = vpop.f32.mrb[139].mxu1  ;;  %v6363_v26 = vld [vmem:[%s8734_s9 + $0xb] ss:$0 sm:$0xff] }
0x2aab   : > { %v4987_v33 = vpack.c.bf16 %v4923_v4, %v4920_v31 }
0x2aad   : > { %7133 = vmatpush3.bf16.msra.mxu1 %v4987_v33 }
0x2aae   : > { %7144 = vmatprep.subr.bf16.mxu1 %v7453_v3 }
0x2b76   : > { %v4968_v34 = vpop.f32.mrb[128].mxu0 }
0x2b77   : > { %v4974_v25 = vmul.f32 0.35355338, %v4968_v34  ;;  %v7130_v48 = vpop.f32.mrb[129].mxu0 }
0x2b78   : > { %v4971_v35 = vpop.f32.mrb[130].mxu0 }
0x2b79   : > { %v7131_v28 = vpop.f32.mrb[131].mxu0  ;;  %v4975_v39 = vsel %vm1096_vm4, %v4974_v25, -inf }
0x2b7a   : > { %4976 = vmax.xlane.f32.xlu0 %v4975_v39 }
0x2c07   : > { %v4977_v36 = vpop.xlane.xlu0 %4976 }
0x2c08   : > { %v4978_v38 = vsub.f32 %v4974_v25, %v4977_v36  ;;  %v6387_v36 = vld [vmem:[%s8733_s8 + $0x2c] sm:$0xf] }
0x2c0a   : > { %v4979_v43 = vmul.f32 1.442695, %v4978_v38  ;;  %v5390_v38 = vsel %vm1490_vm5, %v6387_v36, 0 }
0x2c0c   : > { %7424 = vpow2.f32 %v4979_v43 }
0x2c16   : > { %v7425_v42 = vpop.eup %7424 }
0x2c17   : > { %v4981_v44 = vsel %vm1096_vm4, %v7425_v42, 0.0 }
0x2c18   : > { %4982 = vadd.xlane.f32.xlu1 %v4981_v44 }
0x2ca5   : > { %v4983_v47 = vpop.xlane.xlu1 %4982 }
0x2ca6   : > { %7426 = vrcp.f32 %v4983_v47 }
0x2cb0   : > { %v7427_v15 = vpop.eup %7426 }
0x2cb1   : > { %v4985_v18 = vmul.f32 %v7427_v15, %v7425_v42 }
0x2cb3   : > { %v4986_v50 = vpack.c.bf16 %v4985_v18, %v4985_v18 }
0x2cb5   : > { %7135 = vmatmul.mubr.msk.bf16.vlgmr.msra.gmra.mrb[140].mxu1 %vm1096_vm4, %v4986_v50 }
0x2cb6   : > { %7145 = vmatpush3.bf16.msra.mxu1 %v7338_v49  ;;  %7148 = vmatprep.mubr.msk.bf16.mxu1 %vm7454_vm1, %v7453_v3 }
0x2cb7   : > { %7146 = vmatprep.subr.bf16.mxu1 %v7453_v3 }
0x2cba   : > { %7147 = vmatpush3.bf16.msra.mxu1 %v7339_v1  ;;  %v6389_v1 = vld [vmem:[%s8743_s18 + $0x6] ss:$0 sm:$0xff] }
0x2cbb   : > { %7160 = vmatprep.subr.bf16.mxu1 %v7453_v3 }
0x2cbd   : > { %7149 = vmatmul.mubr.msk.bf16.vlgmr.msra.gmra.mrb[144].mxu1 %vm868_vm2, %v8364_v11 }
0x2cbe   : > { %7161 = vmatpush3.bf16.msra.mxu1 %v7340_v51  ;;  %7164 = vmatprep.mubr.msk.bf16.mxu1 %vm7454_vm1, %v7453_v3 }
0x2cbf   : > { %7162 = vmatprep.subr.bf16.mxu1 %v7453_v3 }
0x2cc2   : > { %7163 = vmatpush3.bf16.msra.mxu1 %v7341_v53 }
0x2cc3   : > { %7174 = vmatprep.subr.bf16.mxu1 %v7453_v3 }
0x2cc5   : > { %7165 = vmatmul.mubr.msk.bf16.vlgmr.msra.gmra.mrb[148].mxu1 %vm868_vm2, %v8374_v2 }
0x2cc6   : > { %7176 = vmatprep.mubr.msk.bf16.mxu1 %vm7454_vm1, %v7453_v3 }
0x2d88   : > { %v5025_v11 = vpop.f32.mrb[140].mxu1 }
0x2d89   : > { %v5031_v55 = vpack.c.bf16 %v5025_v11, %v5025_v11  ;;  %v7136_v37 = vpop.f32.mrb[141].mxu1 }
0x2d8a   : > { %v5028_v56 = vpop.f32.mrb[142].mxu1 }
0x2d8b   : > { %v7137_v40 = vpop.f32.mrb[143].mxu1  ;;  %7141 = vmatmul.mubr.msk.bf16.vlgmr.msra.gmra.mrb[132].mxu0 %vm1046_vm3, %v5031_v55 }
0x2d8c   : > { %7153 = vmatpush3.bf16.msra.mxu0 %v7342_v54  ;;  %7156 = vmatprep.mubr.msk.bf16.mxu0 %vm7454_vm1, %v7453_v3 }
0x2d8d   : > { %7154 = vmatprep.subr.bf16.mxu0 %v7453_v3 }
0x2d90   : > { %v5140_v2 = vpop.f32.mrb[144].mxu1  ;;  %7155 = vmatpush3.bf16.msra.mxu0 %v7343_v57 }
0x2d91   : > { %v7150_v58 = vpop.f32.mrb[145].mxu1  ;;  %7168 = vmatprep.subr.bf16.mxu0 %v7453_v3  ;;  %v5141_v27 = vadd.f32 %v6363_v26, %v5140_v2 }
0x2d92   : > { %v5143_v59 = vpop.f32.mrb[146].mxu1 }
0x2d93   : > { %v7151_v62 = vpop.f32.mrb[147].mxu1  ;;  %7157 = vmatmul.mubr.msk.bf16.vlgmr.msra.gmra.mrb[136].mxu0 %vm868_vm2, %v8337_v60  ;;  %v5278_v29 = vpack.c.bf16 %v5141_v27, %v5141_v27 }
0x2d94   : > { %7170 = vmatprep.mubr.msk.bf16.mxu0 %vm7454_vm1, %v7453_v3  ;;  %v7344_v62 = vld [vmem:[%s8737_s12 + $0x10] sm:$0xff]  }
0x2d98   : > { %v5271_v0 = vpop.f32.mrb[148].mxu1 }
0x2d99   : > { %v7166_v5 = vpop.f32.mrb[149].mxu1  ;;  %v5272_v7 = vadd.f32 %v6381_v63, %v5271_v0  ;;  %v7347_v0 = vld [vmem:[%s8738_s13 + $0x28] sm:$0xff]  }
0x2d9a   : > { %v5274_v6 = vpop.f32.mrb[150].mxu1 }
0x2d9b   : > { %v5275_v61 = vadd.f32 %v6381_v63, %v5274_v6  ;;  %v7167_v41 = vpop.f32.mrb[151].mxu1  ;;  %v7346_v63 = vld [vmem:[%s8738_s13 + $0x20] sm:$0xff]  }
0x2d9c   : > { %v6390_v41 = vld [vmem:[%s8743_s18 + $0x13] ss:$0 sm:$0xff] }
0x2d9d   : > { %v5339_v9 = vpack.c.bf16 %v5275_v61, %v5272_v7 }
0x2d9f   : > { %7175 = vmatpush3.bf16.msra.mxu1 %v5339_v9 }
0x2da0   : > { %7186 = vmatprep.subr.bf16.mxu1 %v7453_v3 }
0x2e5e   : > { %v5074_v10 = vpop.f32.mrb[132].mxu0 }
0x2e5f   : > { %v5080_v60 = vadd.f32 %v5074_v10, %v8514_v13  ;;  %v7142_v12 = vpop.f32.mrb[133].mxu0  ;;  %v6391_v10 = vld [vmem:[%s8743_s18 + $0x14] ss:$0 sm:$0xff] }
0x2e60   : > { %v5077_v14 = vpop.f32.mrb[134].mxu0 }
0x2e61   : > { %v7143_v16 = vpop.f32.mrb[135].mxu0 }
0x2e62   : > { %v7348_v16 = vld [vmem:[%s8738_s13 + $0x30] sm:$0xff]  }
0x2e66   : > { %v5205_v17 = vpop.f32.mrb[136].mxu0 }
0x2e67   : > { %v7158_v19 = vpop.f32.mrb[137].mxu0  ;;  %v5206_v21 = vadd.f32 %v6372_v52, %v5205_v17  ;;  %v6396_v17 = vld [vmem:[%s8743_s18 + $0x7] ss:$0 sm:$0xff] }
0x2e68   : > { %v5208_v20 = vpop.f32.mrb[138].mxu0 }
0x2e69   : > { %v5209_v22 = vadd.f32 %v6372_v52, %v5208_v20  ;;  %v7159_v23 = vpop.f32.mrb[139].mxu0  ;;  %v7349_v52 = vld [vmem:[%s8738_s13 + $0x38] sm:$0xff]  }
0x2e6b   : > { %v5279_v24 = vpack.c.bf16 %v5209_v22, %v5206_v21 }
0x2e6d   : > { %v5284_v13 = vsel %vm1046_vm3, %v5279_v24, 0 }
0x2e6e   : > { %7169 = vmatpush3.bf16.xpose.msra.mxu0 %v5284_v13  ;;  %v6408_v13 = vld [vmem:[%s8743_s18 + $0x8] ss:$0 sm:$0xff] }
0x2e6f   : > { %7180 = vmatprep.subr.bf16.mxu0 %v7453_v3 }
0x2e75   : > { %7171 = vmatmul.mubr.msk.bf16.vlgmr.msra.gmra.mrb[140].mxu0 %vm1046_vm3, %v5278_v29 }
0x2e76   : > { %7182 = vmatprep.mubr.msk.bf16.mxu0 %vm7454_vm1, %v7453_v3  ;;  %7181 = vmatpush3.bf16.msra.mxu0 %v5390_v38 }
0x2e77   : > { %7194 = vmatprep.subr.bf16.mxu0 %v7453_v3 }
0x2f48   : > { %v5320_v30 = vpop.f32.mrb[140].mxu0 }
0x2f49   : > { %v5326_v31 = vmul.f32 0.35355338, %v5320_v30  ;;  %v7172_v4 = vpop.f32.mrb[141].mxu0 }
0x2f4a   : > { %v5323_v32 = vpop.f32.mrb[142].mxu0 }
0x2f4b   : > { %v7173_v33 = vpop.f32.mrb[143].mxu0  ;;  %v5327_v34 = vsel %vm1096_vm4, %v5326_v31, -inf }
0x2f4c   : > { %5328 = vmax.xlane.f32.xlu0 %v5327_v34 }
0x2fd9   : > { %v5329_v25 = vpop.xlane.xlu0 %5328 }
0x2fda   : > { %v5330_v48 = vsub.f32 %v5326_v31, %v5329_v25 }
0x2fdc   : > { %v5331_v35 = vmul.f32 1.442695, %v5330_v48 }
0x2fde   : > { %7428 = vpow2.f32 %v5331_v35 }
0x2fe8   : > { %v7429_v28 = vpop.eup %7428 }
0x2fe9   : > { %v5333_v39 = vsel %vm1096_vm4, %v7429_v28, 0.0 }
0x2fea   : > { %5334 = vadd.xlane.f32.xlu1 %v5333_v39 }
0x3077   : > { %v5335_v43 = vpop.xlane.xlu1 %5334 }
0x3078   : > { %7430 = vrcp.f32 %v5335_v43 }
0x3082   : > { %v7431_v42 = vpop.eup %7430 }
0x3083   : > { %v5337_v44 = vmul.f32 %v7431_v42, %v7429_v28  ;;  %v6414_v42 = vld [vmem:[%s8743_s18 + $0x15] ss:$0 sm:$0xff] }
0x3085   : > { %v5338_v45 = vpack.c.bf16 %v5337_v44, %v5337_v44 }
0x3087   : > { %7177 = vmatmul.mubr.msk.bf16.vlgmr.msra.gmra.mrb[152].mxu1 %vm1096_vm4, %v5338_v45  ;;  %v6415_v45 = vld [vmem:[%s8743_s18 + $0x16] ss:$0 sm:$0xff] }
0x3088   : > { %7190 = vmatprep.mubr.msk.bf16.mxu1 %vm7454_vm1, %v7453_v3  ;;  %7187 = vmatpush3.bf16.msra.mxu1 %v7344_v62  ;;  %v7352_v62 = vld [vmem:[%s8740_s15] sm:$0xff]  }
0x3089   : > { %7188 = vmatprep.subr.bf16.mxu1 %v7453_v3 }
0x315a   : > { %v5377_v46 = vpop.f32.mrb[152].mxu1 }
0x315b   : > { %v5383_v47 = vpack.c.bf16 %v5377_v46, %v5377_v46  ;;  %v7178_v15 = vpop.f32.mrb[153].mxu1 }
0x315c   : > { %v5380_v18 = vpop.f32.mrb[154].mxu1 }
0x315d   : > { %v7179_v49 = vpop.f32.mrb[155].mxu1  ;;  %7183 = vmatmul.mubr.msk.bf16.vlgmr.msra.gmra.mrb[144].mxu0 %vm1046_vm3, %v5383_v47 }
0x315e   : > { %7202 = vmatprep.mubr.msk.bf16.mxu0 %vm7454_vm1, %v7453_v3  ;;  %7195 = vmatpush3.bf16.msra.mxu0 %v7346_v63  ;;  %v7353_v63 = vld [vmem:[%s8740_s15 + $0x8] sm:$0xff]  }
0x315f   : > { %7196 = vmatprep.subr.bf16.mxu0 %v7453_v3 }
0x3162   : > { %7197 = vmatpush3.bf16.msra.mxu0 %v7347_v0  ;;  %v7354_v0 = vld [vmem:[%s8741_s16] sm:$0xff]  }
0x3163   : > { %7198 = vmatprep.subr.bf16.mxu0 %v7453_v3 }
0x3166   : > { %7199 = vmatpush3.bf16.msra.mxu0 %v7348_v16 }
0x3167   : > { %7200 = vmatprep.subr.bf16.mxu0 %v7453_v3 }
0x316a   : > { %7201 = vmatpush3.bf16.msra.mxu0 %v7349_v52 }
0x316b   : > { %7222 = vmatprep.subr.bf16.mxu0 %v7453_v3 }
0x3230   : > { %v5426_v50 = vpop.f32.mrb[144].mxu0 }
0x3231   : > { %v5432_v51 = vadd.f32 %v5426_v50, %v5080_v60  ;;  %v7184_v53 = vpop.f32.mrb[145].mxu0 }
0x3232   : > { %v5429_v11 = vpop.f32.mrb[146].mxu0  ;;  %v7350_v53 = vld [vmem:[%s8739_s14] sm:$0xff]  }
0x3233   : > { %v5438_v54 = vadd.f32 %v6389_v1, %v5432_v51  ;;  %v7185_v55 = vpop.f32.mrb[147].mxu0  ;;  %v7351_v11 = vld [vmem:[%s8739_s14 + $0x8] sm:$0xff]  }
0x3235   : > { %v5439_v37 = vadd.f32 %v5438_v54, %v8357_v8  ;;  %v7345_v8 = vld [vmem:[%s8737_s12 + $0x18] sm:$0xff]  }
0x3236   : > { %7189 = vmatpush3.bf16.msra.mxu1 %v7345_v8 }
0x3237   : > { %v5442_v56 = vsel %vm868_vm2, %v5439_v37, 0.0  ;;  %7206 = vmatprep.subr.bf16.mxu1 %v7453_v3 }
0x3238   : > { %5443 = vadd.xlane.f32.xlu0 %v5442_v56 }
0x32c5   : > { %v5444_v40 = vpop.xlane.xlu0 %5443 }
0x32c6   : > { %v5445_v57 = vmul.f32 0.03125, %v5444_v40  ;;  %v6416_v40 = vld [vmem:[%s8743_s18 + $0x17] ss:$0 sm:$0xff] }
0x32c8   : > { %v5446_v2 = vsub.f32 %v5439_v37, %v5445_v57 }
0x32ca   : > { %v5447_v58 = vmul.f32 %v5446_v2, %v5446_v2 }
0x32cc   : > { %v5448_v59 = vsel %vm868_vm2, %v5447_v58, 0.0 }
0x32cd   : > { %5449 = vadd.xlane.f32.xlu1 %v5448_v59 }
0x335a   : > { %v5450_v5 = vpop.xlane.xlu1 %5449 }
0x335b   : > { %v5451_v6 = vmul.f32 0.03125, %v5450_v5  ;;  %v7355_v5 = vld [vmem:[%s8741_s16 + $0x8] sm:$0xff]  }
0x335d   : > { %v5452_v7 = vadd.f32 1e-05, %v5451_v6 }
0x335f   : > { %7432 = vrsqrt.f32 %v5452_v7 }
0x3369   : > { %v7433_v61 = vpop.eup %7432 }
0x336a   : > { %v5454_v9 = vmul.f32 %v7433_v61, %v5446_v2  ;;  %v6417_v2 = vld [vmem:[%s8743_s18 + $0x18] ss:$0 sm:$0xff] }
0x336c   : > { %v5459_v60 = vmul.f32 %v6390_v41, %v5454_v9  ;;  %v6422_v9 = vld [vmem:[%s8743_s18 + $0xa] ss:$0 sm:$0xff] }
0x336e   : > { %v5464_v12 = vadd.f32 %v6391_v10, %v5459_v60 }
0x3370   : > { %v5470_v14 = vpack.c.bf16 %v5464_v12, %v5464_v12 }
0x3372   : > { %7191 = vmatmul.mubr.msk.bf16.vlgmr.msra.gmra.mrb[156].mxu1 %vm868_vm2, %v5470_v14 }
0x3373   : > { %7210 = vmatprep.mubr.msk.bf16.mxu1 %vm7454_vm1, %v7453_v3  ;;  %7207 = vmatpush3.bf16.msra.mxu1 %v7350_v53 }
0x3374   : > { %7208 = vmatprep.subr.bf16.mxu1 %v7453_v3 }
0x3377   : > { %7209 = vmatpush3.bf16.msra.mxu1 %v7351_v11 }
0x3378   : > { %7214 = vmatprep.subr.bf16.mxu1 %v7453_v3 }
0x3445   : > { %v5525_v19 = vpop.f32.mrb[156].mxu1 }
0x3446   : > { %v5526_v20 = vadd.f32 %v6396_v17, %v5525_v19  ;;  %v7192_v21 = vpop.f32.mrb[157].mxu1  ;;  %v7356_v19 = vld [vmem:[%s8742_s17] sm:$0xff]  }
0x3447   : > { %v5528_v22 = vpop.f32.mrb[158].mxu1  ;;  %v6426_v21 = vld [vmem:[%s8743_s18 + $0xb] ss:$0 sm:$0xff] }
0x3448   : > { %v5531_v23 = vmax.f32 %v5526_v20, 0.0  ;;  %v7193_v24 = vpop.f32.mrb[159].mxu1  ;;  %v7357_v20 = vld [vmem:[%s8742_s17 + $0x8] sm:$0xff]  }
0x344a   : > { %v5541_v26 = vpack.c.bf16 %v5531_v23, %v5531_v23 }
0x344c   : > { %7203 = vmatmul.mubr.msk.bf16.vlgmr.msra.gmra.mrb[148].mxu0 %vm712_vm0, %v5541_v26 }
0x344d   : > { %7226 = vmatprep.mubr.msk.bf16.mxu0 %vm7454_vm1, %v7453_v3  ;;  %7223 = vmatpush3.bf16.msra.mxu0 %v7354_v0 }
0x344e   : > { %7224 = vmatprep.subr.bf16.mxu0 %v7453_v3 }
0x3451   : > { %7225 = vmatpush3.bf16.msra.mxu0 %v7355_v5 }
0x351f   : > { %v5608_v27 = vpop.f32.mrb[148].mxu0 }
0x3520   : > { %v5609_v29 = vadd.f32 %v6408_v13, %v5608_v27  ;;  %v7204_v30 = vpop.f32.mrb[149].mxu0 }
0x3521   : > { %v5611_v31 = vpop.f32.mrb[150].mxu0 }
0x3522   : > { %v7205_v4 = vpop.f32.mrb[151].mxu0  ;;  %v5614_v32 = vadd.f32 %v5609_v29, %v5464_v12 }
0x3524   : > { %v5617_v33 = vsel %vm868_vm2, %v5614_v32, 0.0 }
0x3525   : > { %5618 = vadd.xlane.f32.xlu0 %v5617_v33 }
0x35b2   : > { %v5619_v34 = vpop.xlane.xlu0 %5618 }
0x35b3   : > { %v5620_v25 = vmul.f32 0.03125, %v5619_v34 }
0x35b5   : > { %v5621_v48 = vsub.f32 %v5614_v32, %v5620_v25 }
0x35b7   : > { %v5622_v35 = vmul.f32 %v5621_v48, %v5621_v48 }
0x35b9   : > { %v5623_v28 = vsel %vm868_vm2, %v5622_v35, 0.0 }
0x35ba   : > { %5624 = vadd.xlane.f32.xlu1 %v5623_v28 }
0x3647   : > { %v5625_v39 = vpop.xlane.xlu1 %5624 }
0x3648   : > { %v5626_v36 = vmul.f32 0.03125, %v5625_v39  ;;  %v6418_v39 = vld [vmem:[%s8743_s18 + $0x9] ss:$0 sm:$0xff] }
0x364a   : > { %v5627_v38 = vadd.f32 1e-05, %v5626_v36 }
0x364c   : > { %7434 = vrsqrt.f32 %v5627_v38 }
0x3656   : > { %v7435_v43 = vpop.eup %7434 }
0x3657   : > { %v5629_v44 = vmul.f32 %v7435_v43, %v5621_v48 }
0x3659   : > { %v5634_v46 = vmul.f32 %v6414_v42, %v5629_v44 }
0x365b   : > { %v5639_v47 = vadd.f32 %v6415_v45, %v5634_v46 }
0x365d   : > { %v5642_v15 = vsel %vm868_vm2, %v5639_v47, 0.0 }
0x365e   : > { %5643 = vadd.xlane.f32.xlu0 %v5642_v15 }
0x36eb   : > { %v5644_v18 = vpop.xlane.xlu0 %5643 }
0x36ec   : > { %v5645_v49 = vmul.f32 0.03125, %v5644_v18 }
0x36ee   : > { %v5646_v50 = vsub.f32 %v5639_v47, %v5645_v49 }
0x36f0   : > { %v5647_v1 = vmul.f32 %v5646_v50, %v5646_v50 }
0x36f2   : > { %v5648_v51 = vsel %vm868_vm2, %v5647_v1, 0.0 }
0x36f3   : > { %5649 = vadd.xlane.f32.xlu1 %v5648_v51 }
0x3780   : > { %v5650_v54 = vpop.xlane.xlu1 %5649 }
0x3781   : > { %v5651_v55 = vmul.f32 0.03125, %v5650_v54 }
0x3783   : > { %v5652_v37 = vadd.f32 1e-05, %v5651_v55 }
0x3785   : > { %7436 = vrsqrt.f32 %v5652_v37 }
0x378f   : > { %v7437_v56 = vpop.eup %7436 }
0x3790   : > { %v5654_v57 = vmul.f32 %v7437_v56, %v5646_v50 }
0x3792   : > { %v5659_v58 = vmul.f32 %v6416_v40, %v5654_v57 }
0x3794   : > { %v5664_v59 = vadd.f32 %v6417_v2, %v5659_v58 }
0x3796   : > { %v5669_v8 = vpack.c.bf16 %v5664_v59, %v5664_v59 }
0x3798   : > { %7211 = vmatmul.mubr.msk.bf16.vlgmr.msra.gmra.mrb[160].mxu1 %vm868_vm2, %v5669_v8 }
0x3799   : > { %7215 = vmatpush3.bf16.msra.mxu1 %v7352_v62  ;;  %7218 = vmatprep.mubr.msk.bf16.mxu1 %vm7454_vm1, %v7453_v3 }
0x379a   : > { %7216 = vmatprep.subr.bf16.mxu1 %v7453_v3 }
0x379d   : > { %7217 = vmatpush3.bf16.msra.mxu1 %v7353_v63 }
0x379e   : > { %7230 = vmatprep.subr.bf16.mxu1 %v7453_v3 }
0x37a0   : > { %7219 = vmatmul.mubr.msk.bf16.vlgmr.msra.gmra.mrb[164].mxu1 %vm868_vm2, %v5669_v8 }
0x37a1   : > { %7234 = vmatprep.mubr.msk.bf16.mxu1 %vm7454_vm1, %v7453_v3  ;;  %7231 = vmatpush3.bf16.msra.mxu1 %v7356_v19 }
0x37a2   : > { %7232 = vmatprep.subr.bf16.mxu1 %v7453_v3  ;;  %v6430_v3 = vld [vmem:[%s8743_s18 + $0xc] ss:$0 sm:$0xff] }
0x37a5   : > { %7233 = vmatpush3.bf16.msra.mxu1 %v7357_v20 }
0x386b   : > { %v5724_v6 = vpop.f32.mrb[160].mxu1 }
0x386c   : > { %v7212_v7 = vpop.f32.mrb[161].mxu1  ;;  %v5725_v36 = vadd.f32 %v6418_v39, %v5724_v6 }
0x386d   : > { %v5727_v61 = vpop.f32.mrb[162].mxu1 }
0x386e   : > { %v7213_v41 = vpop.f32.mrb[163].mxu1 }
0x3873   : > { %v5785_v10 = vpop.f32.mrb[164].mxu1 }
0x3874   : > { %v5786_v60 = vadd.f32 %v6422_v9, %v5785_v10  ;;  %v7220_v12 = vpop.f32.mrb[165].mxu1 }
0x3875   : > { %v5788_v14 = vpop.f32.mrb[166].mxu1 }
0x3876   : > { %v5791_v16 = vmax.f32 %v5786_v60, 0.0  ;;  %v7221_v52 = vpop.f32.mrb[167].mxu1 }
0x3878   : > { %v5796_v17 = vpack.c.bf16 %v5791_v16, %v5791_v16 }
0x387a   : > { %7227 = vmatmul.mubr.msk.bf16.vlgmr.msra.gmra.mrb[152].mxu0 %vm868_vm2, %v5796_v17 }
0x394d   : > { %v5851_v22 = vpop.f32.mrb[152].mxu0 }
0x394e   : > { %v5852_v23 = vadd.f32 %v6426_v21, %v5851_v22  ;;  %v7228_v24 = vpop.f32.mrb[153].mxu0 }
0x394f   : > { %v5854_v26 = vpop.f32.mrb[154].mxu0 }
0x3950   : > { %v5857_v13 = vmax.f32 %v5852_v23, 0.0  ;;  %v7229_v27 = vpop.f32.mrb[155].mxu0 }
0x3952   : > { %v5862_v29 = vpack.c.bf16 %v5857_v13, %v5857_v13 }
0x3954   : > { %7235 = vmatmul.mubr.msk.bf16.vlgmr.msra.gmra.mrb[168].mxu1 %vm868_vm2, %v5862_v29 }
0x3a27   : > { %v5917_v30 = vpop.f32.mrb[168].mxu1 }
0x3a28   : > { %v5918_v31 = vadd.f32 %v6430_v3, %v5917_v30  ;;  %v7236_v4 = vpop.f32.mrb[169].mxu1 }
0x3a29   : > { %v5920_v32 = vpop.f32.mrb[170].mxu1 }
0x3a2a   : > { %v5923_v33 = vsub.f32 0.0, %v5918_v31  ;;  %v7237_v34 = vpop.f32.mrb[171].mxu1 }
0x3a2c   : > { %v5924_v25 = vmul.f32 1.442695, %v5923_v33 }
0x3a2e   : > { %7438 = vpow2.f32 %v5924_v25 }
0x3a38   : > { %v7439_v48 = vpop.eup %7438 }
0x3a39   : > { %v5926_v35 = vadd.f32 1.0, %v7439_v48 }
0x3a3b   : > { %7440 = vrcp.f32 %v5926_v35 }
0x3a45   : > { %v7441_v28 = vpop.eup %7440 }
0x3a46   : > { %5930 = vrot.lane.b32.xlu0 %v7441_v28, %s7455_s20 }
0x3ab8   : > { %v5931_v38 = vpop.permute.xlu0 %5930 }
0x3ab9   : > { %v5934_v43 = vsel %vm5933_vm6, %v5725_v36, %v5931_v38 }
0x3aba   : > { %v5936_v42 = vsel %vm5935_vm7, %v5934_v43, 0.0 }
0x3abb   : > { %5937 = vst [vmem:[%s600_s25] sm:$0xff] %v5936_v42 }
0x3abc PF: > { %s29_s0 = sadd.s32 1, %s7450_s0  }
0x3abd   : > { %p26_p4 = scmp.ge.s32.totalorder %s29_s0, 4  }
0x3abf   :  { %28 = sbr.rel (!%p26_p4) target bundleno = 5 (0x5), region = 205 }

</bundles_post_ra>
